<compile_context>
chip_gen: v5e
topology: v5e:2x2
jax: 0.10.0
libtpu: 0.0.40
codegen_flags: <defaults>
</compile_context>

<pallas_src>
import functools

import numpy as np
import jax
import jax.numpy as jnp
from jax import lax
from jax.experimental import pallas as pl
from jax.experimental.pallas import tpu as pltpu

_LANE = 128


def _round_up(x, m):
    return ((x + m - 1) // m) * m


def _double_conv_kernel(x_ref, w1_ref, b1_ref, w2_ref, b2_ref, *rest,
                        apply_dropout):
    """Fused Conv3x3+bias+ReLU (+dropout) -> Conv3x3+bias+ReLU for one image.

    x_ref   : VMEM (1, H, W, Cin)     f32   input image (NHWC)
    w1_ref  : VMEM (3, 3, Cin, CP)    bf16  conv1 weights (HWIO, Cout padded)
    b1_ref  : VMEM (1, CP)            f32   conv1 bias (padded)
    w2_ref  : VMEM (3, 3, CP, CP)     bf16  conv2 weights
    b2_ref  : VMEM (1, CP)            f32   conv2 bias (padded)
    drop_ref: VMEM (1, H, W, CP)      f32   inverted-dropout scale (train only)
    out_ref : VMEM (1, H, W, CP)      f32   lane-dense padded output (NHWC)
    xp_ref  : VMEM (H+2, W+2, Cin)    f32   zero-padded input scratch
    hp_ref  : VMEM (H+2, W+2, CP)     f32   zero-padded intermediate scratch
    acc_ref : VMEM (H*W, CP)          f32   matmul accumulator scratch
    """
    if apply_dropout:
        drop_ref, out_ref, xp_ref, hp_ref, acc_ref = rest
    else:
        drop_ref = None
        out_ref, xp_ref, hp_ref, acc_ref = rest

    Hp, Wp, Cin = xp_ref.shape
    H, W = Hp - 2, Wp - 2
    CP = acc_ref.shape[-1]

    # ---- SAME padding in VMEM (no host-side jnp.pad HBM pass) -------------
    xp_ref[...] = jnp.zeros_like(xp_ref)
    xp_ref[1:H + 1, 1:W + 1, :] = x_ref[0]

    # ---- conv1: 9 shifted-window matmuls into a VMEM accumulator ----------
    # Bias is folded into the accumulator init (saves one full-tile add).
    acc_ref[...] = jnp.broadcast_to(b1_ref[...], (H * W, CP))
    for ky in range(3):
        for kx in range(3):
            patch = xp_ref[ky:ky + H, kx:kx + W, :]              # (H, W, Cin)
            patch = patch.reshape(H * W, Cin).astype(jnp.bfloat16)
            acc_ref[...] += jnp.dot(patch, w1_ref[ky, kx],
                                    preferred_element_type=jnp.float32)

    h = jnp.maximum(acc_ref[...], 0.0)                           # ReLU
    if apply_dropout:                                            # inverted dropout
        h = h * drop_ref[0].reshape(H * W, CP)

    # Intermediate stays in VMEM, re-padded for the second SAME conv.
    hp_ref[...] = jnp.zeros_like(hp_ref)
    hp_ref[1:H + 1, 1:W + 1, :] = h.reshape(H, W, CP)

    # ---- conv2 -------------------------------------------------------------
    acc_ref[...] = jnp.broadcast_to(b2_ref[...], (H * W, CP))
    for ky in range(3):
        for kx in range(3):
            patch = hp_ref[ky:ky + H, kx:kx + W, :]              # (H, W, CP)
            patch = patch.reshape(H * W, CP).astype(jnp.bfloat16)
            acc_ref[...] += jnp.dot(patch, w2_ref[ky, kx],
                                    preferred_element_type=jnp.float32)

    y = jnp.maximum(acc_ref[...], 0.0)                           # ReLU
    # Lane-dense (CP=128-wide) unmasked store; real channels sliced in wrapper.
    out_ref[0] = y.reshape(H, W, CP)


def _double_conv_pallas(x_nhwc, w1, b1, w2, b2, drop_mask):
    N, H, W, Cin = x_nhwc.shape
    CP = w1.shape[-1]
    apply_dropout = drop_mask is not None

    kernel = functools.partial(_double_conv_kernel, apply_dropout=apply_dropout)

    in_specs = [
        pl.BlockSpec((1, H, W, Cin), lambda n: (n, 0, 0, 0)),     # x
        pl.BlockSpec((3, 3, Cin, CP), lambda n: (0, 0, 0, 0)),    # w1
        pl.BlockSpec((1, CP), lambda n: (0, 0)),                  # b1
        pl.BlockSpec((3, 3, CP, CP), lambda n: (0, 0, 0, 0)),     # w2
        pl.BlockSpec((1, CP), lambda n: (0, 0)),                  # b2
    ]
    args = [x_nhwc, w1, b1, w2, b2]
    if apply_dropout:
        in_specs.append(pl.BlockSpec((1, H, W, CP), lambda n: (n, 0, 0, 0)))
        args.append(drop_mask)

    return pl.pallas_call(
        kernel,
        out_shape=jax.ShapeDtypeStruct((N, H, W, CP), jnp.float32),
        grid=(N,),
        in_specs=in_specs,
        out_specs=pl.BlockSpec((1, H, W, CP), lambda n: (n, 0, 0, 0)),
        scratch_shapes=[
            pltpu.VMEM((H + 2, W + 2, Cin), jnp.float32),   # padded input
            pltpu.VMEM((H + 2, W + 2, CP), jnp.float32),    # padded intermediate
            pltpu.VMEM((H * W, CP), jnp.float32),           # accumulator
        ],
        compiler_params=pltpu.CompilerParams(
            dimension_semantics=("parallel",),
            vmem_limit_bytes=32 * 1024 * 1024,
        ),
    )(*args)


def _dropout_scale_mask(seed, shape, p_drop):
    """Inverted-dropout scale mask: 0 with prob p, 1/(1-p) with prob 1-p."""
    key = jax.random.PRNGKey(seed)
    keep = jax.random.bernoulli(key, 1.0 - p_drop, shape)
    return keep.astype(jnp.float32) / jnp.float32(1.0 - p_drop)


def prepare_double_conv_params(w1_oihw, b1, w2_oihw, b2):
    """PyTorch-style OIHW f32 weights -> kernel layout (HWIO, bf16, lane-padded)."""
    cout, cin = int(w1_oihw.shape[0]), int(w1_oihw.shape[1])
    cp = _round_up(cout, _LANE)
    w1 = jnp.transpose(w1_oihw, (2, 3, 1, 0))                 # -> (3,3,Cin,Cout)
    w1 = jnp.pad(w1, ((0, 0), (0, 0), (0, 0), (0, cp - cout)))
    w2 = jnp.transpose(w2_oihw, (2, 3, 1, 0))                 # -> (3,3,Cout,Cout)
    w2 = jnp.pad(w2, ((0, 0), (0, 0), (0, cp - cout), (0, cp - cout)))
    return {
        "w1": w1.astype(jnp.bfloat16),
        "b1": jnp.pad(b1, (0, cp - cout)).reshape(1, cp).astype(jnp.float32),
        "w2": w2.astype(jnp.bfloat16),
        "b2": jnp.pad(b2, (0, cp - cout)).reshape(1, cp).astype(jnp.float32),
        "cout": cout,
        "cin": cin,
    }


def double_conv_forward(x_nchw, params, *, p_drop=0.3, seed=0, training=True):
    """DoubleConv.forward. Input/output are NCHW like the PyTorch module."""
    # NCHW <-> NHWC only at the module boundary (channels sit on lanes inside).
    x = jnp.transpose(x_nchw, (0, 2, 3, 1))
    N, H, W, _ = x.shape
    cp = params["w1"].shape[-1]

    drop_mask = None
    if training and p_drop > 0.0:
        drop_mask = _dropout_scale_mask(seed, (N, H, W, cp), p_drop)

    y = _double_conv_pallas(x, params["w1"], params["b1"], params["w2"],
                            params["b2"], drop_mask)
    y = y[..., :params["cout"]]                     # drop lane padding (fused by XLA)
    return jnp.transpose(y, (0, 3, 1, 2))


def _reference(x_nchw, w1_oihw, b1, w2_oihw, b2, drop_scale_nchw=None):
    """Pure-JAX reference with the same bf16 matmul-input rounding as the kernel."""
    f32 = jnp.float32
    rb = lambda a: a.astype(jnp.bfloat16).astype(f32)
    dn = ("NCHW", "OIHW", "NCHW")
    h = lax.conv_general_dilated(rb(x_nchw), rb(w1_oihw), (1, 1), "SAME",
                                 dimension_numbers=dn)
    h = jnp.maximum(h + b1[None, :, None, None], 0.0)
    if drop_scale_nchw is not None:
        h = h * drop_scale_nchw
    y = lax.conv_general_dilated(rb(h), rb(w2_oihw), (1, 1), "SAME",
                                 dimension_numbers=dn)
    return jnp.maximum(y + b2[None, :, None, None], 0.0)


if __name__ == "__main__":
    N, Cin, Cout, H, W = 2, 4, 8, 16, 16
    P_DROP = 0.3
    SEED = 0

    key = jax.random.PRNGKey(0)
    k1, k2, k3, k4, k5 = jax.random.split(key, 5)

    # Deterministic init mirroring PyTorch Conv2d default (U(+/- 1/sqrt(fan_in))).
    bound1 = 1.0 / np.sqrt(Cin * 9)
    w1_oihw = jax.random.uniform(k1, (Cout, Cin, 3, 3), jnp.float32, -bound1, bound1)
    b1 = jax.random.uniform(k2, (Cout,), jnp.float32, -bound1, bound1)
    bound2 = 1.0 / np.sqrt(Cout * 9)
    w2_oihw = jax.random.uniform(k3, (Cout, Cout, 3, 3), jnp.float32, -bound2, bound2)
    b2 = jax.random.uniform(k4, (Cout,), jnp.float32, -bound2, bound2)
    x = jax.random.normal(k5, (N, Cin, H, W), jnp.float32)

    params = prepare_double_conv_params(w1_oihw, b1, w2_oihw, b2)

    # ---- eval mode (dropout off): compare against lax.conv reference -------
    y_eval = jax.block_until_ready(
        double_conv_forward(x, params, p_drop=P_DROP, training=False))
    y_ref = _reference(x, w1_oihw, b1, w2_oihw, b2)
    np.testing.assert_allclose(np.asarray(y_eval), np.asarray(y_ref),
                               atol=5e-3, rtol=5e-3)

    # ---- training mode: mask is deterministic given the seed ---------------
    y_train = jax.block_until_ready(
        double_conv_forward(x, params, p_drop=P_DROP, seed=SEED, training=True))
    assert y_train.shape == (N, Cout, H, W)
    cp = params["w1"].shape[-1]
    mask_nhwc = _dropout_scale_mask(SEED, (N, H, W, cp), P_DROP)[..., :Cout]
    mask_nchw = jnp.transpose(mask_nhwc, (0, 3, 1, 2))
    y_train_ref = _reference(x, w1_oihw, b1, w2_oihw, b2, mask_nchw)
    np.testing.assert_allclose(np.asarray(y_train), np.asarray(y_train_ref),
                               atol=5e-3, rtol=5e-3)

    print("KERNEL_OK")
</pallas_src>

<mosaic_0001>
module attributes {stable_mosaic.version = 11 : i64} {
  func.func @_double_conv_kernel(%arg0: i32, %arg1: memref<1x16x16x4xf32, #tpu.memory_space<vmem>>, %arg2: memref<3x3x4x128xbf16, #tpu.memory_space<vmem>>, %arg3: memref<1x128xf32, #tpu.memory_space<vmem>>, %arg4: memref<3x3x128x128xbf16, #tpu.memory_space<vmem>>, %arg5: memref<1x128xf32, #tpu.memory_space<vmem>>, %arg6: memref<1x16x16x128xf32, #tpu.memory_space<vmem>>, %arg7: memref<18x18x4xf32, #tpu.memory_space<vmem>>, %arg8: memref<18x18x128xf32, #tpu.memory_space<vmem>>, %arg9: memref<256x128xf32, #tpu.memory_space<vmem>>) attributes {dimension_semantics = [#tpu.dimension_semantics<parallel>], iteration_bounds = array<i64: 2>, scalar_prefetch = 0 : i64, scratch_operands = 3 : i64, tpu.core_type = #tpu.core_type<tc>, window_params = [{transform_indices = @transform_0, window_bounds = array<i64: 1, 16, 16, 4>}, {pipeline_mode = #tpu.pipeline_mode<synchronous>, transform_indices = @transform_1, window_bounds = array<i64: 3, 3, 4, 128>}, {pipeline_mode = #tpu.pipeline_mode<synchronous>, transform_indices = @transform_2, window_bounds = array<i64: 1, 128>}, {pipeline_mode = #tpu.pipeline_mode<synchronous>, transform_indices = @transform_3, window_bounds = array<i64: 3, 3, 128, 128>}, {pipeline_mode = #tpu.pipeline_mode<synchronous>, transform_indices = @transform_4, window_bounds = array<i64: 1, 128>}, {transform_indices = @transform_5, window_bounds = array<i64: 1, 16, 16, 128>}]} {
    %cst = arith.constant 0.000000e+00 : f32
    %0 = vector.broadcast %cst : f32 to vector<18x18x4xf32>
    %c0 = arith.constant 0 : index
    %c0_0 = arith.constant 0 : index
    %c0_1 = arith.constant 0 : index
    %1 = vector.load %arg7[%c0, %c0_0, %c0_1] : memref<18x18x4xf32, #tpu.memory_space<vmem>>, vector<18x18x4xf32>
    tpu.vector_store %arg7[%c0, %c0_0, %c0_1], %0 {strides = array<i32>} : memref<18x18x4xf32, #tpu.memory_space<vmem>>, vector<18x18x4xf32>,
    %c0_2 = arith.constant 0 : index
    %c0_3 = arith.constant 0 : index
    %c0_4 = arith.constant 0 : index
    %c0_5 = arith.constant 0 : index
    %2 = vector.load %arg1[%c0_2, %c0_3, %c0_4, %c0_5] : memref<1x16x16x4xf32, #tpu.memory_space<vmem>>, vector<1x16x16x4xf32>
    %3 = vector.shape_cast %2 : vector<1x16x16x4xf32> to vector<16x16x4xf32>
    %c1 = arith.constant 1 : index
    %c1_6 = arith.constant 1 : index
    %c0_7 = arith.constant 0 : index
    %4 = vector.load %arg7[%c1, %c1_6, %c0_7] : memref<18x18x4xf32, #tpu.memory_space<vmem>>, vector<16x16x4xf32>
    tpu.vector_store %arg7[%c1, %c1_6, %c0_7], %3 {strides = array<i32>} : memref<18x18x4xf32, #tpu.memory_space<vmem>>, vector<16x16x4xf32>,
    %c0_8 = arith.constant 0 : index
    %c0_9 = arith.constant 0 : index
    %5 = vector.load %arg3[%c0_8, %c0_9] : memref<1x128xf32, #tpu.memory_space<vmem>>, vector<1x128xf32>
    %6 = vector.shape_cast %5 : vector<1x128xf32> to vector<1x128xf32>
    %7 = vector.broadcast %6 : vector<1x128xf32> to vector<256x128xf32>
    %c0_10 = arith.constant 0 : index
    %c0_11 = arith.constant 0 : index
    %8 = vector.load %arg9[%c0_10, %c0_11] : memref<256x128xf32, #tpu.memory_space<vmem>>, vector<256x128xf32>
    tpu.vector_store %arg9[%c0_10, %c0_11], %7 {strides = array<i32>} : memref<256x128xf32, #tpu.memory_space<vmem>>, vector<256x128xf32>,
    %c0_12 = arith.constant 0 : index
    %c0_13 = arith.constant 0 : index
    %c0_14 = arith.constant 0 : index
    %9 = vector.load %arg7[%c0_12, %c0_13, %c0_14] : memref<18x18x4xf32, #tpu.memory_space<vmem>>, vector<16x16x4xf32>
    %10 = vector.shape_cast %9 : vector<16x16x4xf32> to vector<256x4xf32>
    %11 = arith.truncf %10 : vector<256x4xf32> to vector<256x4xbf16>
    %c0_15 = arith.constant 0 : index
    %c0_16 = arith.constant 0 : index
    %12 = vector.load %arg9[%c0_15, %c0_16] : memref<256x128xf32, #tpu.memory_space<vmem>>, vector<256x128xf32>
    %c0_17 = arith.constant 0 : index
    %c0_18 = arith.constant 0 : index
    %c0_19 = arith.constant 0 : index
    %c0_20 = arith.constant 0 : index
    %13 = vector.load %arg2[%c0_17, %c0_18, %c0_19, %c0_20] : memref<3x3x4x128xbf16, #tpu.memory_space<vmem>>, vector<1x1x4x128xbf16>
    %14 = vector.shape_cast %13 : vector<1x1x4x128xbf16> to vector<4x128xbf16>
    %cst_21 = arith.constant dense<0.000000e+00> : vector<256x128xf32>
    %15 = tpu.matmul %11, %14, %cst_21 {dimension_numbers = #tpu.dot_dimension_numbers<[1], [0], [0], [1], [0, 0, 1, 1], [], []>} : vector<256x4xbf16>, vector<4x128xbf16>, vector<256x128xf32> -> vector<256x128xf32>
    %16 = arith.addf %12, %15 : vector<256x128xf32>
    %c0_22 = arith.constant 0 : index
    %c0_23 = arith.constant 0 : index
    %17 = vector.load %arg9[%c0_22, %c0_23] : memref<256x128xf32, #tpu.memory_space<vmem>>, vector<256x128xf32>
    tpu.vector_store %arg9[%c0_22, %c0_23], %16 {strides = array<i32>} : memref<256x128xf32, #tpu.memory_space<vmem>>, vector<256x128xf32>,
    %c0_24 = arith.constant 0 : index
    %c1_25 = arith.constant 1 : index
    %c0_26 = arith.constant 0 : index
    %18 = vector.load %arg7[%c0_24, %c1_25, %c0_26] : memref<18x18x4xf32, #tpu.memory_space<vmem>>, vector<16x16x4xf32>
    %19 = vector.shape_cast %18 : vector<16x16x4xf32> to vector<256x4xf32>
    %20 = arith.truncf %19 : vector<256x4xf32> to vector<256x4xbf16>
    %c0_27 = arith.constant 0 : index
    %c0_28 = arith.constant 0 : index
    %21 = vector.load %arg9[%c0_27, %c0_28] : memref<256x128xf32, #tpu.memory_space<vmem>>, vector<256x128xf32>
    %c0_29 = arith.constant 0 : index
    %c1_30 = arith.constant 1 : index
    %c0_31 = arith.constant 0 : index
    %c0_32 = arith.constant 0 : index
    %22 = vector.load %arg2[%c0_29, %c1_30, %c0_31, %c0_32] : memref<3x3x4x128xbf16, #tpu.memory_space<vmem>>, vector<1x1x4x128xbf16>
    %23 = vector.shape_cast %22 : vector<1x1x4x128xbf16> to vector<4x128xbf16>
    %cst_33 = arith.constant dense<0.000000e+00> : vector<256x128xf32>
    %24 = tpu.matmul %20, %23, %cst_33 {dimension_numbers = #tpu.dot_dimension_numbers<[1], [0], [0], [1], [0, 0, 1, 1], [], []>} : vector<256x4xbf16>, vector<4x128xbf16>, vector<256x128xf32> -> vector<256x128xf32>
    %25 = arith.addf %21, %24 : vector<256x128xf32>
    %c0_34 = arith.constant 0 : index
    %c0_35 = arith.constant 0 : index
    %26 = vector.load %arg9[%c0_34, %c0_35] : memref<256x128xf32, #tpu.memory_space<vmem>>, vector<256x128xf32>
    tpu.vector_store %arg9[%c0_34, %c0_35], %25 {strides = array<i32>} : memref<256x128xf32, #tpu.memory_space<vmem>>, vector<256x128xf32>,
    %c0_36 = arith.constant 0 : index
    %c2 = arith.constant 2 : index
    %c0_37 = arith.constant 0 : index
    %27 = vector.load %arg7[%c0_36, %c2, %c0_37] : memref<18x18x4xf32, #tpu.memory_space<vmem>>, vector<16x16x4xf32>
    %28 = vector.shape_cast %27 : vector<16x16x4xf32> to vector<256x4xf32>
    %29 = arith.truncf %28 : vector<256x4xf32> to vector<256x4xbf16>
    %c0_38 = arith.constant 0 : index
    %c0_39 = arith.constant 0 : index
    %30 = vector.load %arg9[%c0_38, %c0_39] : memref<256x128xf32, #tpu.memory_space<vmem>>, vector<256x128xf32>
    %c0_40 = arith.constant 0 : index
    %c2_41 = arith.constant 2 : index
    %c0_42 = arith.constant 0 : index
    %c0_43 = arith.constant 0 : index
    %31 = vector.load %arg2[%c0_40, %c2_41, %c0_42, %c0_43] : memref<3x3x4x128xbf16, #tpu.memory_space<vmem>>, vector<1x1x4x128xbf16>
    %32 = vector.shape_cast %31 : vector<1x1x4x128xbf16> to vector<4x128xbf16>
    %cst_44 = arith.constant dense<0.000000e+00> : vector<256x128xf32>
    %33 = tpu.matmul %29, %32, %cst_44 {dimension_numbers = #tpu.dot_dimension_numbers<[1], [0], [0], [1], [0, 0, 1, 1], [], []>} : vector<256x4xbf16>, vector<4x128xbf16>, vector<256x128xf32> -> vector<256x128xf32>
    %34 = arith.addf %30, %33 : vector<256x128xf32>
    %c0_45 = arith.constant 0 : index
    %c0_46 = arith.constant 0 : index
    %35 = vector.load %arg9[%c0_45, %c0_46] : memref<256x128xf32, #tpu.memory_space<vmem>>, vector<256x128xf32>
    tpu.vector_store %arg9[%c0_45, %c0_46], %34 {strides = array<i32>} : memref<256x128xf32, #tpu.memory_space<vmem>>, vector<256x128xf32>,
    %c1_47 = arith.constant 1 : index
    %c0_48 = arith.constant 0 : index
    %c0_49 = arith.constant 0 : index
    %36 = vector.load %arg7[%c1_47, %c0_48, %c0_49] : memref<18x18x4xf32, #tpu.memory_space<vmem>>, vector<16x16x4xf32>
    %37 = vector.shape_cast %36 : vector<16x16x4xf32> to vector<256x4xf32>
    %38 = arith.truncf %37 : vector<256x4xf32> to vector<256x4xbf16>
    %c0_50 = arith.constant 0 : index
    %c0_51 = arith.constant 0 : index
    %39 = vector.load %arg9[%c0_50, %c0_51] : memref<256x128xf32, #tpu.memory_space<vmem>>, vector<256x128xf32>
    %c1_52 = arith.constant 1 : index
    %c0_53 = arith.constant 0 : index
    %c0_54 = arith.constant 0 : index
    %c0_55 = arith.constant 0 : index
    %40 = vector.load %arg2[%c1_52, %c0_53, %c0_54, %c0_55] : memref<3x3x4x128xbf16, #tpu.memory_space<vmem>>, vector<1x1x4x128xbf16>
    %41 = vector.shape_cast %40 : vector<1x1x4x128xbf16> to vector<4x128xbf16>
    %cst_56 = arith.constant dense<0.000000e+00> : vector<256x128xf32>
    %42 = tpu.matmul %38, %41, %cst_56 {dimension_numbers = #tpu.dot_dimension_numbers<[1], [0], [0], [1], [0, 0, 1, 1], [], []>} : vector<256x4xbf16>, vector<4x128xbf16>, vector<256x128xf32> -> vector<256x128xf32>
    %43 = arith.addf %39, %42 : vector<256x128xf32>
    %c0_57 = arith.constant 0 : index
    %c0_58 = arith.constant 0 : index
    %44 = vector.load %arg9[%c0_57, %c0_58] : memref<256x128xf32, #tpu.memory_space<vmem>>, vector<256x128xf32>
    tpu.vector_store %arg9[%c0_57, %c0_58], %43 {strides = array<i32>} : memref<256x128xf32, #tpu.memory_space<vmem>>, vector<256x128xf32>,
    %c1_59 = arith.constant 1 : index
    %c1_60 = arith.constant 1 : index
    %c0_61 = arith.constant 0 : index
    %45 = vector.load %arg7[%c1_59, %c1_60, %c0_61] : memref<18x18x4xf32, #tpu.memory_space<vmem>>, vector<16x16x4xf32>
    %46 = vector.shape_cast %45 : vector<16x16x4xf32> to vector<256x4xf32>
    %47 = arith.truncf %46 : vector<256x4xf32> to vector<256x4xbf16>
    %c0_62 = arith.constant 0 : index
    %c0_63 = arith.constant 0 : index
    %48 = vector.load %arg9[%c0_62, %c0_63] : memref<256x128xf32, #tpu.memory_space<vmem>>, vector<256x128xf32>
    %c1_64 = arith.constant 1 : index
    %c1_65 = arith.constant 1 : index
    %c0_66 = arith.constant 0 : index
    %c0_67 = arith.constant 0 : index
    %49 = vector.load %arg2[%c1_64, %c1_65, %c0_66, %c0_67] : memref<3x3x4x128xbf16, #tpu.memory_space<vmem>>, vector<1x1x4x128xbf16>
    %50 = vector.shape_cast %49 : vector<1x1x4x128xbf16> to vector<4x128xbf16>
    %cst_68 = arith.constant dense<0.000000e+00> : vector<256x128xf32>
    %51 = tpu.matmul %47, %50, %cst_68 {dimension_numbers = #tpu.dot_dimension_numbers<[1], [0], [0], [1], [0, 0, 1, 1], [], []>} : vector<256x4xbf16>, vector<4x128xbf16>, vector<256x128xf32> -> vector<256x128xf32>
    %52 = arith.addf %48, %51 : vector<256x128xf32>
    %c0_69 = arith.constant 0 : index
    %c0_70 = arith.constant 0 : index
    %53 = vector.load %arg9[%c0_69, %c0_70] : memref<256x128xf32, #tpu.memory_space<vmem>>, vector<256x128xf32>
    tpu.vector_store %arg9[%c0_69, %c0_70], %52 {strides = array<i32>} : memref<256x128xf32, #tpu.memory_space<vmem>>, vector<256x128xf32>,
    %c1_71 = arith.constant 1 : index
    %c2_72 = arith.constant 2 : index
    %c0_73 = arith.constant 0 : index
    %54 = vector.load %arg7[%c1_71, %c2_72, %c0_73] : memref<18x18x4xf32, #tpu.memory_space<vmem>>, vector<16x16x4xf32>
    %55 = vector.shape_cast %54 : vector<16x16x4xf32> to vector<256x4xf32>
    %56 = arith.truncf %55 : vector<256x4xf32> to vector<256x4xbf16>
    %c0_74 = arith.constant 0 : index
    %c0_75 = arith.constant 0 : index
    %57 = vector.load %arg9[%c0_74, %c0_75] : memref<256x128xf32, #tpu.memory_space<vmem>>, vector<256x128xf32>
    %c1_76 = arith.constant 1 : index
    %c2_77 = arith.constant 2 : index
    %c0_78 = arith.constant 0 : index
    %c0_79 = arith.constant 0 : index
    %58 = vector.load %arg2[%c1_76, %c2_77, %c0_78, %c0_79] : memref<3x3x4x128xbf16, #tpu.memory_space<vmem>>, vector<1x1x4x128xbf16>
    %59 = vector.shape_cast %58 : vector<1x1x4x128xbf16> to vector<4x128xbf16>
    %cst_80 = arith.constant dense<0.000000e+00> : vector<256x128xf32>
    %60 = tpu.matmul %56, %59, %cst_80 {dimension_numbers = #tpu.dot_dimension_numbers<[1], [0], [0], [1], [0, 0, 1, 1], [], []>} : vector<256x4xbf16>, vector<4x128xbf16>, vector<256x128xf32> -> vector<256x128xf32>
    %61 = arith.addf %57, %60 : vector<256x128xf32>
    %c0_81 = arith.constant 0 : index
    %c0_82 = arith.constant 0 : index
    %62 = vector.load %arg9[%c0_81, %c0_82] : memref<256x128xf32, #tpu.memory_space<vmem>>, vector<256x128xf32>
    tpu.vector_store %arg9[%c0_81, %c0_82], %61 {strides = array<i32>} : memref<256x128xf32, #tpu.memory_space<vmem>>, vector<256x128xf32>,
    %c2_83 = arith.constant 2 : index
    %c0_84 = arith.constant 0 : index
    %c0_85 = arith.constant 0 : index
    %63 = vector.load %arg7[%c2_83, %c0_84, %c0_85] : memref<18x18x4xf32, #tpu.memory_space<vmem>>, vector<16x16x4xf32>
    %64 = vector.shape_cast %63 : vector<16x16x4xf32> to vector<256x4xf32>
    %65 = arith.truncf %64 : vector<256x4xf32> to vector<256x4xbf16>
    %c0_86 = arith.constant 0 : index
    %c0_87 = arith.constant 0 : index
    %66 = vector.load %arg9[%c0_86, %c0_87] : memref<256x128xf32, #tpu.memory_space<vmem>>, vector<256x128xf32>
    %c2_88 = arith.constant 2 : index
    %c0_89 = arith.constant 0 : index
    %c0_90 = arith.constant 0 : index
    %c0_91 = arith.constant 0 : index
    %67 = vector.load %arg2[%c2_88, %c0_89, %c0_90, %c0_91] : memref<3x3x4x128xbf16, #tpu.memory_space<vmem>>, vector<1x1x4x128xbf16>
    %68 = vector.shape_cast %67 : vector<1x1x4x128xbf16> to vector<4x128xbf16>
    %cst_92 = arith.constant dense<0.000000e+00> : vector<256x128xf32>
    %69 = tpu.matmul %65, %68, %cst_92 {dimension_numbers = #tpu.dot_dimension_numbers<[1], [0], [0], [1], [0, 0, 1, 1], [], []>} : vector<256x4xbf16>, vector<4x128xbf16>, vector<256x128xf32> -> vector<256x128xf32>
    %70 = arith.addf %66, %69 : vector<256x128xf32>
    %c0_93 = arith.constant 0 : index
    %c0_94 = arith.constant 0 : index
    %71 = vector.load %arg9[%c0_93, %c0_94] : memref<256x128xf32, #tpu.memory_space<vmem>>, vector<256x128xf32>
    tpu.vector_store %arg9[%c0_93, %c0_94], %70 {strides = array<i32>} : memref<256x128xf32, #tpu.memory_space<vmem>>, vector<256x128xf32>,
    %c2_95 = arith.constant 2 : index
    %c1_96 = arith.constant 1 : index
    %c0_97 = arith.constant 0 : index
    %72 = vector.load %arg7[%c2_95, %c1_96, %c0_97] : memref<18x18x4xf32, #tpu.memory_space<vmem>>, vector<16x16x4xf32>
    %73 = vector.shape_cast %72 : vector<16x16x4xf32> to vector<256x4xf32>
    %74 = arith.truncf %73 : vector<256x4xf32> to vector<256x4xbf16>
    %c0_98 = arith.constant 0 : index
    %c0_99 = arith.constant 0 : index
    %75 = vector.load %arg9[%c0_98, %c0_99] : memref<256x128xf32, #tpu.memory_space<vmem>>, vector<256x128xf32>
    %c2_100 = arith.constant 2 : index
    %c1_101 = arith.constant 1 : index
    %c0_102 = arith.constant 0 : index
    %c0_103 = arith.constant 0 : index
    %76 = vector.load %arg2[%c2_100, %c1_101, %c0_102, %c0_103] : memref<3x3x4x128xbf16, #tpu.memory_space<vmem>>, vector<1x1x4x128xbf16>
    %77 = vector.shape_cast %76 : vector<1x1x4x128xbf16> to vector<4x128xbf16>
    %cst_104 = arith.constant dense<0.000000e+00> : vector<256x128xf32>
    %78 = tpu.matmul %74, %77, %cst_104 {dimension_numbers = #tpu.dot_dimension_numbers<[1], [0], [0], [1], [0, 0, 1, 1], [], []>} : vector<256x4xbf16>, vector<4x128xbf16>, vector<256x128xf32> -> vector<256x128xf32>
    %79 = arith.addf %75, %78 : vector<256x128xf32>
    %c0_105 = arith.constant 0 : index
    %c0_106 = arith.constant 0 : index
    %80 = vector.load %arg9[%c0_105, %c0_106] : memref<256x128xf32, #tpu.memory_space<vmem>>, vector<256x128xf32>
    tpu.vector_store %arg9[%c0_105, %c0_106], %79 {strides = array<i32>} : memref<256x128xf32, #tpu.memory_space<vmem>>, vector<256x128xf32>,
    %c2_107 = arith.constant 2 : index
    %c2_108 = arith.constant 2 : index
    %c0_109 = arith.constant 0 : index
    %81 = vector.load %arg7[%c2_107, %c2_108, %c0_109] : memref<18x18x4xf32, #tpu.memory_space<vmem>>, vector<16x16x4xf32>
    %82 = vector.shape_cast %81 : vector<16x16x4xf32> to vector<256x4xf32>
    %83 = arith.truncf %82 : vector<256x4xf32> to vector<256x4xbf16>
    %c0_110 = arith.constant 0 : index
    %c0_111 = arith.constant 0 : index
    %84 = vector.load %arg9[%c0_110, %c0_111] : memref<256x128xf32, #tpu.memory_space<vmem>>, vector<256x128xf32>
    %c2_112 = arith.constant 2 : index
    %c2_113 = arith.constant 2 : index
    %c0_114 = arith.constant 0 : index
    %c0_115 = arith.constant 0 : index
    %85 = vector.load %arg2[%c2_112, %c2_113, %c0_114, %c0_115] : memref<3x3x4x128xbf16, #tpu.memory_space<vmem>>, vector<1x1x4x128xbf16>
    %86 = vector.shape_cast %85 : vector<1x1x4x128xbf16> to vector<4x128xbf16>
    %cst_116 = arith.constant dense<0.000000e+00> : vector<256x128xf32>
    %87 = tpu.matmul %83, %86, %cst_116 {dimension_numbers = #tpu.dot_dimension_numbers<[1], [0], [0], [1], [0, 0, 1, 1], [], []>} : vector<256x4xbf16>, vector<4x128xbf16>, vector<256x128xf32> -> vector<256x128xf32>
    %88 = arith.addf %84, %87 : vector<256x128xf32>
    %c0_117 = arith.constant 0 : index
    %c0_118 = arith.constant 0 : index
    %89 = vector.load %arg9[%c0_117, %c0_118] : memref<256x128xf32, #tpu.memory_space<vmem>>, vector<256x128xf32>
    tpu.vector_store %arg9[%c0_117, %c0_118], %88 {strides = array<i32>} : memref<256x128xf32, #tpu.memory_space<vmem>>, vector<256x128xf32>,
    %c0_119 = arith.constant 0 : index
    %c0_120 = arith.constant 0 : index
    %90 = vector.load %arg9[%c0_119, %c0_120] : memref<256x128xf32, #tpu.memory_space<vmem>>, vector<256x128xf32>
    %cst_121 = arith.constant 0.000000e+00 : f32
    %91 = vector.broadcast %cst_121 : f32 to vector<256x128xf32>
    %92 = arith.maximumf %90, %91 : vector<256x128xf32>
    %cst_122 = arith.constant 0.000000e+00 : f32
    %93 = vector.broadcast %cst_122 : f32 to vector<18x18x128xf32>
    %c0_123 = arith.constant 0 : index
    %c0_124 = arith.constant 0 : index
    %c0_125 = arith.constant 0 : index
    %94 = vector.load %arg8[%c0_123, %c0_124, %c0_125] : memref<18x18x128xf32, #tpu.memory_space<vmem>>, vector<18x18x128xf32>
    tpu.vector_store %arg8[%c0_123, %c0_124, %c0_125], %93 {strides = array<i32>} : memref<18x18x128xf32, #tpu.memory_space<vmem>>, vector<18x18x128xf32>,
    %95 = vector.shape_cast %92 : vector<256x128xf32> to vector<16x16x128xf32>
    %c1_126 = arith.constant 1 : index
    %c1_127 = arith.constant 1 : index
    %c0_128 = arith.constant 0 : index
    %96 = vector.load %arg8[%c1_126, %c1_127, %c0_128] : memref<18x18x128xf32, #tpu.memory_space<vmem>>, vector<16x16x128xf32>
    tpu.vector_store %arg8[%c1_126, %c1_127, %c0_128], %95 {strides = array<i32>} : memref<18x18x128xf32, #tpu.memory_space<vmem>>, vector<16x16x128xf32>,
    %c0_129 = arith.constant 0 : index
    %c0_130 = arith.constant 0 : index
    %97 = vector.load %arg5[%c0_129, %c0_130] : memref<1x128xf32, #tpu.memory_space<vmem>>, vector<1x128xf32>
    %98 = vector.shape_cast %97 : vector<1x128xf32> to vector<1x128xf32>
    %99 = vector.broadcast %98 : vector<1x128xf32> to vector<256x128xf32>
    %c0_131 = arith.constant 0 : index
    %c0_132 = arith.constant 0 : index
    %100 = vector.load %arg9[%c0_131, %c0_132] : memref<256x128xf32, #tpu.memory_space<vmem>>, vector<256x128xf32>
    tpu.vector_store %arg9[%c0_131, %c0_132], %99 {strides = array<i32>} : memref<256x128xf32, #tpu.memory_space<vmem>>, vector<256x128xf32>,
    %c0_133 = arith.constant 0 : index
    %c0_134 = arith.constant 0 : index
    %c0_135 = arith.constant 0 : index
    %101 = vector.load %arg8[%c0_133, %c0_134, %c0_135] : memref<18x18x128xf32, #tpu.memory_space<vmem>>, vector<16x16x128xf32>
    %102 = vector.shape_cast %101 : vector<16x16x128xf32> to vector<256x128xf32>
    %103 = arith.truncf %102 : vector<256x128xf32> to vector<256x128xbf16>
    %c0_136 = arith.constant 0 : index
    %c0_137 = arith.constant 0 : index
    %104 = vector.load %arg9[%c0_136, %c0_137] : memref<256x128xf32, #tpu.memory_space<vmem>>, vector<256x128xf32>
    %c0_138 = arith.constant 0 : index
    %c0_139 = arith.constant 0 : index
    %c0_140 = arith.constant 0 : index
    %c0_141 = arith.constant 0 : index
    %105 = vector.load %arg4[%c0_138, %c0_139, %c0_140, %c0_141] : memref<3x3x128x128xbf16, #tpu.memory_space<vmem>>, vector<1x1x128x128xbf16>
    %106 = vector.shape_cast %105 : vector<1x1x128x128xbf16> to vector<128x128xbf16>
    %cst_142 = arith.constant dense<0.000000e+00> : vector<256x128xf32>
    %107 = tpu.matmul %103, %106, %cst_142 {dimension_numbers = #tpu.dot_dimension_numbers<[1], [0], [0], [1], [0, 0, 1, 1], [], []>} : vector<256x128xbf16>, vector<128x128xbf16>, vector<256x128xf32> -> vector<256x128xf32>
    %108 = arith.addf %104, %107 : vector<256x128xf32>
    %c0_143 = arith.constant 0 : index
    %c0_144 = arith.constant 0 : index
    %109 = vector.load %arg9[%c0_143, %c0_144] : memref<256x128xf32, #tpu.memory_space<vmem>>, vector<256x128xf32>
    tpu.vector_store %arg9[%c0_143, %c0_144], %108 {strides = array<i32>} : memref<256x128xf32, #tpu.memory_space<vmem>>, vector<256x128xf32>,
    %c0_145 = arith.constant 0 : index
    %c1_146 = arith.constant 1 : index
    %c0_147 = arith.constant 0 : index
    %110 = vector.load %arg8[%c0_145, %c1_146, %c0_147] : memref<18x18x128xf32, #tpu.memory_space<vmem>>, vector<16x16x128xf32>
    %111 = vector.shape_cast %110 : vector<16x16x128xf32> to vector<256x128xf32>
    %112 = arith.truncf %111 : vector<256x128xf32> to vector<256x128xbf16>
    %c0_148 = arith.constant 0 : index
    %c0_149 = arith.constant 0 : index
    %113 = vector.load %arg9[%c0_148, %c0_149] : memref<256x128xf32, #tpu.memory_space<vmem>>, vector<256x128xf32>
    %c0_150 = arith.constant 0 : index
    %c1_151 = arith.constant 1 : index
    %c0_152 = arith.constant 0 : index
    %c0_153 = arith.constant 0 : index
    %114 = vector.load %arg4[%c0_150, %c1_151, %c0_152, %c0_153] : memref<3x3x128x128xbf16, #tpu.memory_space<vmem>>, vector<1x1x128x128xbf16>
    %115 = vector.shape_cast %114 : vector<1x1x128x128xbf16> to vector<128x128xbf16>
    %cst_154 = arith.constant dense<0.000000e+00> : vector<256x128xf32>
    %116 = tpu.matmul %112, %115, %cst_154 {dimension_numbers = #tpu.dot_dimension_numbers<[1], [0], [0], [1], [0, 0, 1, 1], [], []>} : vector<256x128xbf16>, vector<128x128xbf16>, vector<256x128xf32> -> vector<256x128xf32>
    %117 = arith.addf %113, %116 : vector<256x128xf32>
    %c0_155 = arith.constant 0 : index
    %c0_156 = arith.constant 0 : index
    %118 = vector.load %arg9[%c0_155, %c0_156] : memref<256x128xf32, #tpu.memory_space<vmem>>, vector<256x128xf32>
    tpu.vector_store %arg9[%c0_155, %c0_156], %117 {strides = array<i32>} : memref<256x128xf32, #tpu.memory_space<vmem>>, vector<256x128xf32>,
    %c0_157 = arith.constant 0 : index
    %c2_158 = arith.constant 2 : index
    %c0_159 = arith.constant 0 : index
    %119 = vector.load %arg8[%c0_157, %c2_158, %c0_159] : memref<18x18x128xf32, #tpu.memory_space<vmem>>, vector<16x16x128xf32>
    %120 = vector.shape_cast %119 : vector<16x16x128xf32> to vector<256x128xf32>
    %121 = arith.truncf %120 : vector<256x128xf32> to vector<256x128xbf16>
    %c0_160 = arith.constant 0 : index
    %c0_161 = arith.constant 0 : index
    %122 = vector.load %arg9[%c0_160, %c0_161] : memref<256x128xf32, #tpu.memory_space<vmem>>, vector<256x128xf32>
    %c0_162 = arith.constant 0 : index
    %c2_163 = arith.constant 2 : index
    %c0_164 = arith.constant 0 : index
    %c0_165 = arith.constant 0 : index
    %123 = vector.load %arg4[%c0_162, %c2_163, %c0_164, %c0_165] : memref<3x3x128x128xbf16, #tpu.memory_space<vmem>>, vector<1x1x128x128xbf16>
    %124 = vector.shape_cast %123 : vector<1x1x128x128xbf16> to vector<128x128xbf16>
    %cst_166 = arith.constant dense<0.000000e+00> : vector<256x128xf32>
    %125 = tpu.matmul %121, %124, %cst_166 {dimension_numbers = #tpu.dot_dimension_numbers<[1], [0], [0], [1], [0, 0, 1, 1], [], []>} : vector<256x128xbf16>, vector<128x128xbf16>, vector<256x128xf32> -> vector<256x128xf32>
    %126 = arith.addf %122, %125 : vector<256x128xf32>
    %c0_167 = arith.constant 0 : index
    %c0_168 = arith.constant 0 : index
    %127 = vector.load %arg9[%c0_167, %c0_168] : memref<256x128xf32, #tpu.memory_space<vmem>>, vector<256x128xf32>
    tpu.vector_store %arg9[%c0_167, %c0_168], %126 {strides = array<i32>} : memref<256x128xf32, #tpu.memory_space<vmem>>, vector<256x128xf32>,
    %c1_169 = arith.constant 1 : index
    %c0_170 = arith.constant 0 : index
    %c0_171 = arith.constant 0 : index
    %128 = vector.load %arg8[%c1_169, %c0_170, %c0_171] : memref<18x18x128xf32, #tpu.memory_space<vmem>>, vector<16x16x128xf32>
    %129 = vector.shape_cast %128 : vector<16x16x128xf32> to vector<256x128xf32>
    %130 = arith.truncf %129 : vector<256x128xf32> to vector<256x128xbf16>
    %c0_172 = arith.constant 0 : index
    %c0_173 = arith.constant 0 : index
    %131 = vector.load %arg9[%c0_172, %c0_173] : memref<256x128xf32, #tpu.memory_space<vmem>>, vector<256x128xf32>
    %c1_174 = arith.constant 1 : index
    %c0_175 = arith.constant 0 : index
    %c0_176 = arith.constant 0 : index
    %c0_177 = arith.constant 0 : index
    %132 = vector.load %arg4[%c1_174, %c0_175, %c0_176, %c0_177] : memref<3x3x128x128xbf16, #tpu.memory_space<vmem>>, vector<1x1x128x128xbf16>
    %133 = vector.shape_cast %132 : vector<1x1x128x128xbf16> to vector<128x128xbf16>
    %cst_178 = arith.constant dense<0.000000e+00> : vector<256x128xf32>
    %134 = tpu.matmul %130, %133, %cst_178 {dimension_numbers = #tpu.dot_dimension_numbers<[1], [0], [0], [1], [0, 0, 1, 1], [], []>} : vector<256x128xbf16>, vector<128x128xbf16>, vector<256x128xf32> -> vector<256x128xf32>
    %135 = arith.addf %131, %134 : vector<256x128xf32>
    %c0_179 = arith.constant 0 : index
    %c0_180 = arith.constant 0 : index
    %136 = vector.load %arg9[%c0_179, %c0_180] : memref<256x128xf32, #tpu.memory_space<vmem>>, vector<256x128xf32>
    tpu.vector_store %arg9[%c0_179, %c0_180], %135 {strides = array<i32>} : memref<256x128xf32, #tpu.memory_space<vmem>>, vector<256x128xf32>,
    %c1_181 = arith.constant 1 : index
    %c1_182 = arith.constant 1 : index
    %c0_183 = arith.constant 0 : index
    %137 = vector.load %arg8[%c1_181, %c1_182, %c0_183] : memref<18x18x128xf32, #tpu.memory_space<vmem>>, vector<16x16x128xf32>
    %138 = vector.shape_cast %137 : vector<16x16x128xf32> to vector<256x128xf32>
    %139 = arith.truncf %138 : vector<256x128xf32> to vector<256x128xbf16>
    %c0_184 = arith.constant 0 : index
    %c0_185 = arith.constant 0 : index
    %140 = vector.load %arg9[%c0_184, %c0_185] : memref<256x128xf32, #tpu.memory_space<vmem>>, vector<256x128xf32>
    %c1_186 = arith.constant 1 : index
    %c1_187 = arith.constant 1 : index
    %c0_188 = arith.constant 0 : index
    %c0_189 = arith.constant 0 : index
    %141 = vector.load %arg4[%c1_186, %c1_187, %c0_188, %c0_189] : memref<3x3x128x128xbf16, #tpu.memory_space<vmem>>, vector<1x1x128x128xbf16>
    %142 = vector.shape_cast %141 : vector<1x1x128x128xbf16> to vector<128x128xbf16>
    %cst_190 = arith.constant dense<0.000000e+00> : vector<256x128xf32>
    %143 = tpu.matmul %139, %142, %cst_190 {dimension_numbers = #tpu.dot_dimension_numbers<[1], [0], [0], [1], [0, 0, 1, 1], [], []>} : vector<256x128xbf16>, vector<128x128xbf16>, vector<256x128xf32> -> vector<256x128xf32>
    %144 = arith.addf %140, %143 : vector<256x128xf32>
    %c0_191 = arith.constant 0 : index
    %c0_192 = arith.constant 0 : index
    %145 = vector.load %arg9[%c0_191, %c0_192] : memref<256x128xf32, #tpu.memory_space<vmem>>, vector<256x128xf32>
    tpu.vector_store %arg9[%c0_191, %c0_192], %144 {strides = array<i32>} : memref<256x128xf32, #tpu.memory_space<vmem>>, vector<256x128xf32>,
    %c1_193 = arith.constant 1 : index
    %c2_194 = arith.constant 2 : index
    %c0_195 = arith.constant 0 : index
    %146 = vector.load %arg8[%c1_193, %c2_194, %c0_195] : memref<18x18x128xf32, #tpu.memory_space<vmem>>, vector<16x16x128xf32>
    %147 = vector.shape_cast %146 : vector<16x16x128xf32> to vector<256x128xf32>
    %148 = arith.truncf %147 : vector<256x128xf32> to vector<256x128xbf16>
    %c0_196 = arith.constant 0 : index
    %c0_197 = arith.constant 0 : index
    %149 = vector.load %arg9[%c0_196, %c0_197] : memref<256x128xf32, #tpu.memory_space<vmem>>, vector<256x128xf32>
    %c1_198 = arith.constant 1 : index
    %c2_199 = arith.constant 2 : index
    %c0_200 = arith.constant 0 : index
    %c0_201 = arith.constant 0 : index
    %150 = vector.load %arg4[%c1_198, %c2_199, %c0_200, %c0_201] : memref<3x3x128x128xbf16, #tpu.memory_space<vmem>>, vector<1x1x128x128xbf16>
    %151 = vector.shape_cast %150 : vector<1x1x128x128xbf16> to vector<128x128xbf16>
    %cst_202 = arith.constant dense<0.000000e+00> : vector<256x128xf32>
    %152 = tpu.matmul %148, %151, %cst_202 {dimension_numbers = #tpu.dot_dimension_numbers<[1], [0], [0], [1], [0, 0, 1, 1], [], []>} : vector<256x128xbf16>, vector<128x128xbf16>, vector<256x128xf32> -> vector<256x128xf32>
    %153 = arith.addf %149, %152 : vector<256x128xf32>
    %c0_203 = arith.constant 0 : index
    %c0_204 = arith.constant 0 : index
    %154 = vector.load %arg9[%c0_203, %c0_204] : memref<256x128xf32, #tpu.memory_space<vmem>>, vector<256x128xf32>
    tpu.vector_store %arg9[%c0_203, %c0_204], %153 {strides = array<i32>} : memref<256x128xf32, #tpu.memory_space<vmem>>, vector<256x128xf32>,
    %c2_205 = arith.constant 2 : index
    %c0_206 = arith.constant 0 : index
    %c0_207 = arith.constant 0 : index
    %155 = vector.load %arg8[%c2_205, %c0_206, %c0_207] : memref<18x18x128xf32, #tpu.memory_space<vmem>>, vector<16x16x128xf32>
    %156 = vector.shape_cast %155 : vector<16x16x128xf32> to vector<256x128xf32>
    %157 = arith.truncf %156 : vector<256x128xf32> to vector<256x128xbf16>
    %c0_208 = arith.constant 0 : index
    %c0_209 = arith.constant 0 : index
    %158 = vector.load %arg9[%c0_208, %c0_209] : memref<256x128xf32, #tpu.memory_space<vmem>>, vector<256x128xf32>
    %c2_210 = arith.constant 2 : index
    %c0_211 = arith.constant 0 : index
    %c0_212 = arith.constant 0 : index
    %c0_213 = arith.constant 0 : index
    %159 = vector.load %arg4[%c2_210, %c0_211, %c0_212, %c0_213] : memref<3x3x128x128xbf16, #tpu.memory_space<vmem>>, vector<1x1x128x128xbf16>
    %160 = vector.shape_cast %159 : vector<1x1x128x128xbf16> to vector<128x128xbf16>
    %cst_214 = arith.constant dense<0.000000e+00> : vector<256x128xf32>
    %161 = tpu.matmul %157, %160, %cst_214 {dimension_numbers = #tpu.dot_dimension_numbers<[1], [0], [0], [1], [0, 0, 1, 1], [], []>} : vector<256x128xbf16>, vector<128x128xbf16>, vector<256x128xf32> -> vector<256x128xf32>
    %162 = arith.addf %158, %161 : vector<256x128xf32>
    %c0_215 = arith.constant 0 : index
    %c0_216 = arith.constant 0 : index
    %163 = vector.load %arg9[%c0_215, %c0_216] : memref<256x128xf32, #tpu.memory_space<vmem>>, vector<256x128xf32>
    tpu.vector_store %arg9[%c0_215, %c0_216], %162 {strides = array<i32>} : memref<256x128xf32, #tpu.memory_space<vmem>>, vector<256x128xf32>,
    %c2_217 = arith.constant 2 : index
    %c1_218 = arith.constant 1 : index
    %c0_219 = arith.constant 0 : index
    %164 = vector.load %arg8[%c2_217, %c1_218, %c0_219] : memref<18x18x128xf32, #tpu.memory_space<vmem>>, vector<16x16x128xf32>
    %165 = vector.shape_cast %164 : vector<16x16x128xf32> to vector<256x128xf32>
    %166 = arith.truncf %165 : vector<256x128xf32> to vector<256x128xbf16>
    %c0_220 = arith.constant 0 : index
    %c0_221 = arith.constant 0 : index
    %167 = vector.load %arg9[%c0_220, %c0_221] : memref<256x128xf32, #tpu.memory_space<vmem>>, vector<256x128xf32>
    %c2_222 = arith.constant 2 : index
    %c1_223 = arith.constant 1 : index
    %c0_224 = arith.constant 0 : index
    %c0_225 = arith.constant 0 : index
    %168 = vector.load %arg4[%c2_222, %c1_223, %c0_224, %c0_225] : memref<3x3x128x128xbf16, #tpu.memory_space<vmem>>, vector<1x1x128x128xbf16>
    %169 = vector.shape_cast %168 : vector<1x1x128x128xbf16> to vector<128x128xbf16>
    %cst_226 = arith.constant dense<0.000000e+00> : vector<256x128xf32>
    %170 = tpu.matmul %166, %169, %cst_226 {dimension_numbers = #tpu.dot_dimension_numbers<[1], [0], [0], [1], [0, 0, 1, 1], [], []>} : vector<256x128xbf16>, vector<128x128xbf16>, vector<256x128xf32> -> vector<256x128xf32>
    %171 = arith.addf %167, %170 : vector<256x128xf32>
    %c0_227 = arith.constant 0 : index
    %c0_228 = arith.constant 0 : index
    %172 = vector.load %arg9[%c0_227, %c0_228] : memref<256x128xf32, #tpu.memory_space<vmem>>, vector<256x128xf32>
    tpu.vector_store %arg9[%c0_227, %c0_228], %171 {strides = array<i32>} : memref<256x128xf32, #tpu.memory_space<vmem>>, vector<256x128xf32>,
    %c2_229 = arith.constant 2 : index
    %c2_230 = arith.constant 2 : index
    %c0_231 = arith.constant 0 : index
    %173 = vector.load %arg8[%c2_229, %c2_230, %c0_231] : memref<18x18x128xf32, #tpu.memory_space<vmem>>, vector<16x16x128xf32>
    %174 = vector.shape_cast %173 : vector<16x16x128xf32> to vector<256x128xf32>
    %175 = arith.truncf %174 : vector<256x128xf32> to vector<256x128xbf16>
    %c0_232 = arith.constant 0 : index
    %c0_233 = arith.constant 0 : index
    %176 = vector.load %arg9[%c0_232, %c0_233] : memref<256x128xf32, #tpu.memory_space<vmem>>, vector<256x128xf32>
    %c2_234 = arith.constant 2 : index
    %c2_235 = arith.constant 2 : index
    %c0_236 = arith.constant 0 : index
    %c0_237 = arith.constant 0 : index
    %177 = vector.load %arg4[%c2_234, %c2_235, %c0_236, %c0_237] : memref<3x3x128x128xbf16, #tpu.memory_space<vmem>>, vector<1x1x128x128xbf16>
    %178 = vector.shape_cast %177 : vector<1x1x128x128xbf16> to vector<128x128xbf16>
    %cst_238 = arith.constant dense<0.000000e+00> : vector<256x128xf32>
    %179 = tpu.matmul %175, %178, %cst_238 {dimension_numbers = #tpu.dot_dimension_numbers<[1], [0], [0], [1], [0, 0, 1, 1], [], []>} : vector<256x128xbf16>, vector<128x128xbf16>, vector<256x128xf32> -> vector<256x128xf32>
    %180 = arith.addf %176, %179 : vector<256x128xf32>
    %c0_239 = arith.constant 0 : index
    %c0_240 = arith.constant 0 : index
    %181 = vector.load %arg9[%c0_239, %c0_240] : memref<256x128xf32, #tpu.memory_space<vmem>>, vector<256x128xf32>
    tpu.vector_store %arg9[%c0_239, %c0_240], %180 {strides = array<i32>} : memref<256x128xf32, #tpu.memory_space<vmem>>, vector<256x128xf32>,
    %c0_241 = arith.constant 0 : index
    %c0_242 = arith.constant 0 : index
    %182 = vector.load %arg9[%c0_241, %c0_242] : memref<256x128xf32, #tpu.memory_space<vmem>>, vector<256x128xf32>
    %cst_243 = arith.constant 0.000000e+00 : f32
    %183 = vector.broadcast %cst_243 : f32 to vector<256x128xf32>
    %184 = arith.maximumf %182, %183 : vector<256x128xf32>
    %185 = vector.shape_cast %184 : vector<256x128xf32> to vector<16x16x128xf32>
    %c0_244 = arith.constant 0 : index
    %c0_245 = arith.constant 0 : index
    %c0_246 = arith.constant 0 : index
    %c0_247 = arith.constant 0 : index
    %186 = vector.load %arg6[%c0_244, %c0_245, %c0_246, %c0_247] : memref<1x16x16x128xf32, #tpu.memory_space<vmem>>, vector<1x16x16x128xf32>
    %187 = vector.shape_cast %186 : vector<1x16x16x128xf32> to vector<16x16x128xf32>
    %188 = vector.shape_cast %185 : vector<16x16x128xf32> to vector<1x16x16x128xf32>
    tpu.vector_store %arg6[%c0_244, %c0_245, %c0_246, %c0_247], %188 {strides = array<i32>} : memref<1x16x16x128xf32, #tpu.memory_space<vmem>>, vector<1x16x16x128xf32>,
    return
  }
  func.func @transform_0(%arg0: i32) -> (i32, i32, i32, i32) {
    %c0_i32 = arith.constant 0 : i32
    %c0_i32_0 = arith.constant 0 : i32
    %c0_i32_1 = arith.constant 0 : i32
    %c0_i32_2 = arith.constant 0 : i32
    return %arg0, %c0_i32, %c0_i32_0, %c0_i32_1 : i32, i32, i32, i32
  }
  func.func @transform_1(%arg0: i32) -> (i32, i32, i32, i32) {
    %c0_i32 = arith.constant 0 : i32
    %c0_i32_0 = arith.constant 0 : i32
    %c0_i32_1 = arith.constant 0 : i32
    %c0_i32_2 = arith.constant 0 : i32
    %c0_i32_3 = arith.constant 0 : i32
    return %c0_i32, %c0_i32_0, %c0_i32_1, %c0_i32_2 : i32, i32, i32, i32
  }
  func.func @transform_2(%arg0: i32) -> (i32, i32) {
    %c0_i32 = arith.constant 0 : i32
    %c0_i32_0 = arith.constant 0 : i32
    %c0_i32_1 = arith.constant 0 : i32
    return %c0_i32, %c0_i32_0 : i32, i32
  }
  func.func @transform_3(%arg0: i32) -> (i32, i32, i32, i32) {
    %c0_i32 = arith.constant 0 : i32
    %c0_i32_0 = arith.constant 0 : i32
    %c0_i32_1 = arith.constant 0 : i32
    %c0_i32_2 = arith.constant 0 : i32
    %c0_i32_3 = arith.constant 0 : i32
    return %c0_i32, %c0_i32_0, %c0_i32_1, %c0_i32_2 : i32, i32, i32, i32
  }
  func.func @transform_4(%arg0: i32) -> (i32, i32) {
    %c0_i32 = arith.constant 0 : i32
    %c0_i32_0 = arith.constant 0 : i32
    %c0_i32_1 = arith.constant 0 : i32
    return %c0_i32, %c0_i32_0 : i32, i32
  }
  func.func @transform_5(%arg0: i32) -> (i32, i32, i32, i32) {
    %c0_i32 = arith.constant 0 : i32
    %c0_i32_0 = arith.constant 0 : i32
    %c0_i32_1 = arith.constant 0 : i32
    %c0_i32_2 = arith.constant 0 : i32
    return %arg0, %c0_i32, %c0_i32_0, %c0_i32_1 : i32, i32, i32, i32
  }
}

</mosaic_0001>

<bundles_post_ra>
// kernel: tpu_custom_call.1
= control target key start
LH: loop header
LB: loop body
LE: loop exit
PB: predicated region body
PF: predicated region fallthrough
CT: control target
= control target key end

     0   :  { %10 = vsyncpa [#allocation6], 0  ;;  %s8586_s0 = inlined_call_operand.vmem [shape: f32[2,16,16,4], index: 0, kind: input, shape index: {}]   ;;  %s8587_s1 = inlined_call_operand.vmem [shape: bf16[3,3,4,128], index: 1, kind: input, shape index: {}]   ;;  %s8588_s2 = inlined_call_operand.vmem [shape: f32[1,128], index: 2, kind: input, shape index: {}]   ;;  %s8589_s3 = inlined_call_operand.vmem [shape: bf16[3,3,128,128], index: 3, kind: input, shape index: {}]   ;;  %s8590_s4 = inlined_call_operand.vmem [shape: f32[1,128], index: 4, kind: input, shape index: {}]   ;;  %s8591_s5 = inlined_call_operand.hbm [shape: f32[2,16,16,128], index: 5, kind: output, shape index: {}]  }
   0x1   :  { %12 = vsyncpa [#allocation6 + $0x1], 0  ;;  %s6798_s18 = smov 0   ;;  %s6800_s19 = smov 0  }
   0x2   :  { %s6802_s20 = smov 0   ;;  %s6804_s21 = smov 0  }
   0x3 LB: > { %s6819_s22 = sadd.s32 4294967295, %s6763_s21   ;;  %s5999_s23 = sadd.s32 4294967294, %s6763_s21   ;;  %s6763_s21 = sphi %s6804_s21, %s8631_s21   ;;  %s6759_s20 = sphi %s6802_s20, %s8630_s20   ;;  %s6755_s19 = sphi %s6800_s19, %s8629_s19   ;;  %s6751_s18 = sphi %s6798_s18, %s8628_s18  }
   0x4   : > { %s6823_s24 = sadd.s32 1, %s6763_s21   ;;  %s135_s25 = sadd.s32 1, %s6759_s20 }
   0x5   : > { %s132_s26 = ssub.s32 %s6763_s21, %s6823_s24  ;;  %p145_p0 = scmp.ne.s32.totalorder %s6759_s20, %s6755_s19 }
   0x6   : > { %p133_p1 = scmp.eq.s32.totalorder %s132_s26, 0  ;;  %p146_p2 = scmp.eq.s32.totalorder %s6819_s22, 1 }
   0x7   : > { %p151_p3 = scmp.ne.s32.totalorder %s6755_s19, %s6751_s18  ;;  %p152_p4 = scmp.eq.s32.totalorder %s5999_s23, 1 }
   0x8   : > { %s6834_s27 = scalar_select %p133_p1, %s6759_s20, %s135_s25  }
   0x9   : > { %p6836_p5 = por %p146_p2, %p145_p0  ;;  %p6840_p6 = por %p152_p4, %p151_p3 }
   0xa   : > { %p6002_p7 = scmp.ge.s32.totalorder %s6763_s21, 1  ;;  %p190_p8 = scmp.lt.s32.totalorder %s6763_s21, 3 }
   0xc   : > { %p191_p9 = pnand %p6002_p7, %p190_p8 }
   0xe   : > { %194 = sbr.rel (%p191_p9) target bundleno = 1549 (0x60d), region = 40 }
  0x13   : > { %v461_v0 = vld [vmem:[%s8587_s1] sm:$0x3]  ;;  %vm510_vm0 = vcmask 1041408   ;;  %vm224_vm1 = vcmask 31744   ;;  %v6765_v2 = vmov 0.0   ;;  %p218_p10 = scmp.lt.s32.totalorder %s6819_s22, 1 }
  0x14   : > { %v512_v1 = vsel %vm510_vm0, %v461_v0, 0  ;;  %225 = vst.msk [vmem:[#allocation2] sm:$0xff] %vm224_vm1, %v6765_v2  ;;  %v6022_v3 = vld [vmem:[%s8587_s1 + $0x2] sm:$0x3]  ;;  %v6039_v8 = vld [vmem:[%s8587_s1 + $0x4] sm:$0x3] }
  0x15   : > { %521 = vmatpush.bf16.msra.mxu0 %v512_v1  ;;  %226 = vst.msk [vmem:[#allocation2 + $0x8] sm:$0xff] %vm224_vm1, %v6765_v2  ;;  %6653 = vmatpush.bf16.msra.mxu2 %v512_v1  ;;  %v798_v4 = vsel %vm510_vm0, %v6022_v3, 0  ;;  %v6056_v9 = vld [vmem:[%s8587_s1 + $0x6] sm:$0x3]  ;;  %s219_s13 = scalar_select %p218_p10, %s6819_s22, 1  ;;  %v1084_v10 = vsel %vm510_vm0, %v6039_v8, 0 }
  0x16   : > { %229 = vst.msk [vmem:[#allocation2 + $0x18] sm:$0xff] %vm224_vm1, %v6765_v2  ;;  %6654 = vmatpush.bf16.msra.mxu3 %v798_v4  ;;  %807 = vmatpush.bf16.msra.mxu1 %v798_v4  ;;  %v1370_v11 = vsel %vm510_vm0, %v6056_v9, 0  ;;  %vm227_vm2 = vcmask 25600   ;;  %v6073_v14 = vld [vmem:[%s8587_s1 + $0x8] sm:$0x3]  ;;  %s215_s16 = sand.u32 1, %s6755_s19  }
  0x17   : > { %230 = vst.msk [vmem:[#allocation2 + $0x20] sm:$0xff] %vm224_vm1, %v6765_v2  ;;  %s6579_s14 = sshll.u32 %s219_s13, 8  ;;  %v1656_v15 = vsel %vm510_vm0, %v6073_v14, 0  ;;  %s6003_s23 = sshll.u32 %s215_s16, 8 }
  0x18   : > { %232 = vst.msk [vmem:[#allocation2 + $0x30] sm:$0xff] %vm224_vm1, %v6765_v2  ;;  %s6990_s17 = scalar_lea.vmem %s8586_s0, %s6579_s14  ;;  %s8481_s25 = scalar_lea.vmem [#allocation5], %s6003_s23 }
  0x19   : > { %233 = vst.msk [vmem:[#allocation2 + $0x38] sm:$0xff] %vm224_vm1, %v6765_v2  ;;  %1093 = vmatpush.bf16.msrb.mxu2 %v1084_v10  ;;  %v294_v12 = vld [vmem:[%s6990_s17 + $0x70] sm:$0xff]  ;;  %v295_v13 = vld [vmem:[%s6990_s17 + $0x78] sm:$0xff]  ;;  %1665 = vmatpush.bf16.msrb.mxu0 %v1656_v15  ;;  %v280_v25 = vld [vmem:[%s6990_s17] sm:$0xff]  ;;  %s6652_s26 = sshll.u32 %s6819_s22, 8  ;;  %s5934_s7 = sshll.u32 %s8481_s25, 4  ;;  %s5935_s7 = int_to_ptr.vmem [resolvable:$true] %s5934_s7 }
  0x1a   : > { %235 = vst.msk [vmem:[#allocation2 + $0x48] sm:$0xff] %vm224_vm1, %v6765_v2  ;;  %1379 = vmatpush.bf16.msrb.mxu3 %v1370_v11  ;;  %v281_v26 = vld [vmem:[%s6990_s17 + $0x8] sm:$0xff]  ;;  %v296_v27 = vld [vmem:[%s6990_s17 + $0x80] sm:$0xff]  ;;  %v282_v29 = vld [vmem:[%s6990_s17 + $0x10] sm:$0xff]  ;;  %s5933_s6 = scalar_lea.hbm %s8591_s5, %s6652_s26  ;;  %s5922_s22 = scalar_lea.sflag [#allocation6], %s215_s16 }
  0x1b   : > { %v381_v5 = vld [vmem:[#allocation2] sm:$0xff]  ;;  %236 = vst.msk [vmem:[#allocation2 + $0x50] sm:$0xff] %vm224_vm1, %v6765_v2  ;;  %v297_v28 = vld [vmem:[%s6990_s17 + $0x88] sm:$0xff]  ;;  %v283_v30 = vld [vmem:[%s6990_s17 + $0x18] sm:$0xff]  ;;  %s5936_s8 = sshll.u32 %s5933_s6, 4  ;;  %s6721_s13 = scalar_lea.hbm %s8591_s5, 512  ;;  %s5937_s8 = int_to_ptr.hbm [resolvable:$true] %s5936_s8 }
  0x1c   : > { %v382_v6 = vld [vmem:[#allocation2 + $0x8] sm:$0xff]  ;;  %238 = vst.msk [vmem:[#allocation2 + $0x60] sm:$0xff] %vm224_vm1, %v6765_v2  ;;  %v298_v31 = vld [vmem:[%s6990_s17 + $0x90] sm:$0xff]  ;;  %v299_v32 = vld [vmem:[%s6990_s17 + $0x98] sm:$0xff]  ;;  %s6715_s9 = sshra.s32 %s5937_s8, 4  ;;  %s6716_s9 = int_to_ptr.hbm [resolvable:$true] %s6715_s9 }
  0x1d   : > { %v413_v7 = vpack.c.bf16 %v382_v6, %v381_v5  ;;  %239 = vst.msk [vmem:[#allocation2 + $0x68] sm:$0xff] %vm224_vm1, %v6765_v2  ;;  %v667_v18 = vld [vmem:[#allocation2 + $0x1] sm:$0xff]  ;;  %v286_v49 = vld [vmem:[%s6990_s17 + $0x30] sm:$0xff]  ;;  %v287_v50 = vld [vmem:[%s6990_s17 + $0x38] sm:$0xff]  ;;  %s6717_s10 = scalar_lea.hbm %s6716_s9, 256  ;;  %p6722_p0 = scmp.lt.s32.totalorder %s6716_s9, %s8591_s5 }
  0x1e   : > { %241 = vst.msk [vmem:[#allocation2 + $0x78] sm:$0xff] %vm224_vm1, %v6765_v2  ;;  %v284_v33 = vld [vmem:[%s6990_s17 + $0x20] sm:$0xff]  ;;  %v285_v34 = vld [vmem:[%s6990_s17 + $0x28] sm:$0xff]  ;;  %v302_v59 = vld [vmem:[%s6990_s17 + $0xb0] sm:$0xff]  ;;  %p6718_p11 = scmp.ne.s32.totalorder %s6716_s9, %s6717_s10  ;;  %p6723_p1 = scmp.lt.s32.totalorder %s6721_s13, %s6717_s10 }
  0x1f   : > { %6006 = vmatmul.msk.bf16.vlgmr.msra.gmra.mxu0 %vm224_vm1, %v413_v7  ;;  %242 = vst.msk [vmem:[#allocation2 + $0x80] sm:$0xff] %vm224_vm1, %v6765_v2  ;;  %v300_v37 = vld [vmem:[%s6990_s17 + $0xa0] sm:$0xff]  ;;  %v301_v40 = vld [vmem:[%s6990_s17 + $0xa8] sm:$0xff]  ;;  %v303_v60 = vld [vmem:[%s6990_s17 + $0xb8] sm:$0xff] }
  0x20   : > { %244 = vst.msk [vmem:[#allocation2 + $0x90] sm:$0xff] %vm224_vm1, %v6765_v2  ;;  %v288_v1 = vld [vmem:[%s6990_s17 + $0x40] sm:$0xff]  ;;  %p6719_p12 = pnand %p6718_p11, %p6836_p5  ;;  %p6724_p2 = por %p6723_p1, %p6722_p0 }
  0x21   : > { %245 = vst.msk [vmem:[#allocation2 + $0x98] sm:$0xff] %vm224_vm1, %v6765_v2  ;;  %v304_v11 = vld [vmem:[%s6990_s17 + $0xc0] sm:$0xff] }
  0x22   : > { %247 = vst.msk [vmem:[#allocation2 + $0xa8] sm:$0xff] %vm224_vm1, %v6765_v2  ;;  %p6720_p13 = pneg %p6719_p12 }
  0x23   : > { %248 = vst.msk [vmem:[#allocation2 + $0xb0] sm:$0xff] %vm224_vm1, %v6765_v2 }
  0x24   : > { %250 = vst.msk [vmem:[#allocation2 + $0xc0] sm:$0xff] %vm224_vm1, %v6765_v2  ;;  %p6725_p3 = pnand %p6724_p2, %p6720_p13 }
  0x25   : > { %251 = vst.msk [vmem:[#allocation2 + $0xc8] sm:$0xff] %vm224_vm1, %v6765_v2 }
  0x26   : > { %253 = vst.msk [vmem:[#allocation2 + $0xd8] sm:$0xff] %vm224_vm1, %v6765_v2 }
  0x27   : > { %254 = vst.msk [vmem:[#allocation2 + $0xe0] sm:$0xff] %vm224_vm1, %v6765_v2 }
  0x28   : > { %256 = vst.msk [vmem:[#allocation2 + $0xf0] sm:$0xff] %vm224_vm1, %v6765_v2 }
  0x29   : > { %257 = vst.msk [vmem:[#allocation2 + $0xf8] sm:$0xff] %vm224_vm1, %v6765_v2 }
  0x2a   : > { %259 = vst.msk [vmem:[#allocation2 + $0x108] sm:$0xff] %vm224_vm1, %v6765_v2 }
  0x2b   : > { %260 = vst.msk [vmem:[#allocation2 + $0x110] sm:$0xff] %vm224_vm1, %v6765_v2 }
  0x2c   : > { %262 = vst.msk [vmem:[#allocation2 + $0x120] sm:$0xff] %vm224_vm1, %v6765_v2 }
  0x2d   : > { %263 = vst.msk [vmem:[#allocation2 + $0x128] sm:$0xff] %vm224_vm1, %v6765_v2 }
  0x2e   : > { %265 = vst.msk [vmem:[#allocation2 + $0x138] sm:$0xff] %vm224_vm1, %v6765_v2 }
  0x2f   : > { %266 = vst.msk [vmem:[#allocation2 + $0x140] sm:$0xff] %vm224_vm1, %v6765_v2 }
  0x30   : > { %268 = vst.msk [vmem:[#allocation2 + $0x150] sm:$0xff] %vm224_vm1, %v6765_v2 }
  0x31   : > { %269 = vst.msk [vmem:[#allocation2 + $0x158] sm:$0xff] %vm224_vm1, %v6765_v2 }
  0x32   : > { %271 = vst.msk [vmem:[#allocation2 + $0x168] sm:$0xff] %vm224_vm1, %v6765_v2 }
  0x33   : > { %272 = vst.msk [vmem:[#allocation2 + $0x170] sm:$0xff] %vm224_vm1, %v6765_v2 }
  0x34   : > { %274 = vst.msk [vmem:[#allocation2 + $0x180] sm:$0xff] %vm224_vm1, %v6765_v2 }
  0x35   : > { %275 = vst.msk [vmem:[#allocation2 + $0x188] sm:$0xff] %vm224_vm1, %v6765_v2 }
  0x36   : > { %277 = vst.msk [vmem:[#allocation2 + $0x198] sm:$0xff] %vm224_vm1, %v6765_v2 }
  0x37   : > { %278 = vst.msk [vmem:[#allocation2 + $0x1a0] sm:$0xff] %vm224_vm1, %v6765_v2 }
  0x38   : > { %3020 = vst [vmem:[#allocation3] sm:$0xff] %v6765_v2 }
  0x39   : > { %3021 = vst [vmem:[#allocation3 + $0x8] sm:$0xff] %v6765_v2 }
  0x3a   : > { %3022 = vst [vmem:[#allocation3 + $0x10] sm:$0x3] %v6765_v2 }
  0x3b   : > { %3023 = vst [vmem:[#allocation3 + $0x18] sm:$0xff] %v6765_v2 }
  0x3c   : > { %3024 = vst [vmem:[#allocation3 + $0x20] sm:$0xff] %v6765_v2 }
  0x3d   : > { %3025 = vst [vmem:[#allocation3 + $0x28] sm:$0x3] %v6765_v2 }
  0x3e   : > { %3026 = vst [vmem:[#allocation3 + $0x30] sm:$0xff] %v6765_v2 }
  0x3f   : > { %3027 = vst [vmem:[#allocation3 + $0x38] sm:$0xff] %v6765_v2 }
  0x40   : > { %3028 = vst [vmem:[#allocation3 + $0x40] sm:$0x3] %v6765_v2 }
  0x41   : > { %3029 = vst [vmem:[#allocation3 + $0x48] sm:$0xff] %v6765_v2 }
  0x42   : > { %3030 = vst [vmem:[#allocation3 + $0x50] sm:$0xff] %v6765_v2 }
  0x43   : > { %3031 = vst [vmem:[#allocation3 + $0x58] sm:$0x3] %v6765_v2 }
  0x44   : > { %3032 = vst [vmem:[#allocation3 + $0x60] sm:$0xff] %v6765_v2 }
  0x45   : > { %3033 = vst [vmem:[#allocation3 + $0x68] sm:$0xff] %v6765_v2 }
  0x46   : > { %3034 = vst [vmem:[#allocation3 + $0x70] sm:$0x3] %v6765_v2 }
  0x47   : > { %3035 = vst [vmem:[#allocation3 + $0x78] sm:$0xff] %v6765_v2 }
  0x48   : > { %3036 = vst [vmem:[#allocation3 + $0x80] sm:$0xff] %v6765_v2 }
  0x49   : > { %3037 = vst [vmem:[#allocation3 + $0x88] sm:$0x3] %v6765_v2 }
  0x4a   : > { %3038 = vst [vmem:[#allocation3 + $0x90] sm:$0xff] %v6765_v2 }
  0x4b   : > { %3039 = vst [vmem:[#allocation3 + $0x98] sm:$0xff] %v6765_v2 }
  0x4c   : > { %3040 = vst [vmem:[#allocation3 + $0xa0] sm:$0x3] %v6765_v2 }
  0x4d   : > { %3041 = vst [vmem:[#allocation3 + $0xa8] sm:$0xff] %v6765_v2 }
  0x4e   : > { %3042 = vst [vmem:[#allocation3 + $0xb0] sm:$0xff] %v6765_v2 }
  0x4f   : > { %3043 = vst [vmem:[#allocation3 + $0xb8] sm:$0x3] %v6765_v2 }
  0x50   : > { %3044 = vst [vmem:[#allocation3 + $0xc0] sm:$0xff] %v6765_v2 }
  0x51   : > { %3045 = vst [vmem:[#allocation3 + $0xc8] sm:$0xff] %v6765_v2 }
  0x52   : > { %3046 = vst [vmem:[#allocation3 + $0xd0] sm:$0x3] %v6765_v2 }
  0x53   : > { %3047 = vst [vmem:[#allocation3 + $0xd8] sm:$0xff] %v6765_v2 }
  0x54   : > { %3048 = vst [vmem:[#allocation3 + $0xe0] sm:$0xff] %v6765_v2 }
  0x55   : > { %3049 = vst [vmem:[#allocation3 + $0xe8] sm:$0x3] %v6765_v2 }
  0x56   : > { %3050 = vst [vmem:[#allocation3 + $0xf0] sm:$0xff] %v6765_v2 }
  0x57   : > { %3051 = vst [vmem:[#allocation3 + $0xf8] sm:$0xff] %v6765_v2 }
  0x58   : > { %3052 = vst [vmem:[#allocation3 + $0x100] sm:$0x3] %v6765_v2 }
  0x59   : > { %3053 = vst [vmem:[#allocation3 + $0x108] sm:$0xff] %v6765_v2 }
  0x5a   : > { %3054 = vst [vmem:[#allocation3 + $0x110] sm:$0xff] %v6765_v2 }
  0x5b   : > { %3055 = vst [vmem:[#allocation3 + $0x118] sm:$0x3] %v6765_v2 }
  0x5c   : > { %3056 = vst [vmem:[#allocation3 + $0x120] sm:$0xff] %v6765_v2 }
  0x5d   : > { %3057 = vst [vmem:[#allocation3 + $0x128] sm:$0xff] %v6765_v2 }
  0x5e   : > { %3058 = vst [vmem:[#allocation3 + $0x130] sm:$0x3] %v6765_v2 }
  0x5f   : > { %3059 = vst [vmem:[#allocation3 + $0x138] sm:$0xff] %v6765_v2 }
  0x60   : > { %3060 = vst [vmem:[#allocation3 + $0x140] sm:$0xff] %v6765_v2 }
  0x61   : > { %3061 = vst [vmem:[#allocation3 + $0x148] sm:$0x3] %v6765_v2 }
  0x62   : > { %3062 = vst [vmem:[#allocation3 + $0x150] sm:$0xff] %v6765_v2 }
  0x63   : > { %3063 = vst [vmem:[#allocation3 + $0x158] sm:$0xff] %v6765_v2 }
  0x64   : > { %3064 = vst [vmem:[#allocation3 + $0x160] sm:$0x3] %v6765_v2 }
  0x65   : > { %3065 = vst [vmem:[#allocation3 + $0x168] sm:$0xff] %v6765_v2 }
  0x66   : > { %3066 = vst [vmem:[#allocation3 + $0x170] sm:$0xff] %v6765_v2 }
  0x67   : > { %3067 = vst [vmem:[#allocation3 + $0x178] sm:$0x3] %v6765_v2 }
  0x68   : > { %3068 = vst [vmem:[#allocation3 + $0x180] sm:$0xff] %v6765_v2 }
  0x69   : > { %3069 = vst [vmem:[#allocation3 + $0x188] sm:$0xff] %v6765_v2 }
  0x6a   : > { %3070 = vst [vmem:[#allocation3 + $0x190] sm:$0x3] %v6765_v2 }
  0x6b   : > { %3071 = vst [vmem:[#allocation3 + $0x198] sm:$0xff] %v6765_v2 }
  0x6c   : > { %3072 = vst [vmem:[#allocation3 + $0x1a0] sm:$0xff] %v6765_v2 }
  0x6d   : > { %3073 = vst [vmem:[#allocation3 + $0x1a8] sm:$0x3] %v6765_v2 }
  0x6e   : > { %252 = vst.msk [vmem:[#allocation2 + $0xd0] sm:$0x3] %vm227_vm2, %v6765_v2 }
  0x6f   : > { %327 = vst.msk [vmem:[#allocation2 + $0xc1] sm:$0xff] %vm224_vm1, %v294_v12  ;;  %v305_v12 = vld [vmem:[%s6990_s17 + $0xc8] sm:$0xff] }
  0x70   : > { %328 = vst.msk [vmem:[#allocation2 + $0xc9] sm:$0xff] %vm224_vm1, %v295_v13 }
  0x71   : > { %228 = vst.msk [vmem:[#allocation2 + $0x10] sm:$0x3] %vm227_vm2, %v6765_v2 }
  0x72   : > { %231 = vst.msk [vmem:[#allocation2 + $0x28] sm:$0x3] %vm227_vm2, %v6765_v2 }
  0x73   : > { %234 = vst.msk [vmem:[#allocation2 + $0x40] sm:$0x3] %vm227_vm2, %v6765_v2 }
  0x74   : > { %237 = vst.msk [vmem:[#allocation2 + $0x58] sm:$0x3] %vm227_vm2, %v6765_v2 }
  0x75   : > { %240 = vst.msk [vmem:[#allocation2 + $0x70] sm:$0x3] %vm227_vm2, %v6765_v2 }
  0x76   : > { %v397_v16 = vld [vmem:[#allocation2 + $0xc0] sm:$0xff]  ;;  %243 = vst.msk [vmem:[#allocation2 + $0x88] sm:$0x3] %vm227_vm2, %v6765_v2 }
  0x77   : > { %v683_v17 = vld [vmem:[#allocation2 + $0xc1] sm:$0xff]  ;;  %246 = vst.msk [vmem:[#allocation2 + $0xa0] sm:$0x3] %vm227_vm2, %v6765_v2  ;;  %v684_v20 = vld [vmem:[#allocation2 + $0xc9] sm:$0xff] }
  0x78   : > { %v398_v19 = vld [vmem:[#allocation2 + $0xc8] sm:$0xff]  ;;  %249 = vst.msk [vmem:[#allocation2 + $0xb8] sm:$0x3] %vm227_vm2, %v6765_v2  ;;  %v7024_v22 = vpack.c.bf16 %v684_v20, %v683_v17  ;;  %v290_v17 = vld [vmem:[%s6990_s17 + $0x50] sm:$0xff] }
  0x79   : > { %v7020_v21 = vpack.c.bf16 %v398_v19, %v397_v16  ;;  %v668_v23 = vld [vmem:[#allocation2 + $0x9] sm:$0xff]  ;;  %255 = vst.msk [vmem:[#allocation2 + $0xe8] sm:$0x3] %vm227_vm2, %v6765_v2 }
  0x7a   : > { %v699_v24 = vpack.c.bf16 %v668_v23, %v667_v18  ;;  %258 = vst.msk [vmem:[#allocation2 + $0x100] sm:$0x3] %vm227_vm2, %v6765_v2  ;;  %6031 = vmatmul.msk.bf16.vlgmr.msra.gmra.mxu3 %vm224_vm1, %v7024_v22  ;;  %v291_v18 = vld [vmem:[%s6990_s17 + $0x58] sm:$0xff] }
  0x7b   : > { %6014 = vmatmul.msk.bf16.vlgmr.msra.gmra.mxu2 %vm224_vm1, %v7020_v21  ;;  %261 = vst.msk [vmem:[#allocation2 + $0x118] sm:$0x3] %vm227_vm2, %v6765_v2 }
  0x7c   : > { %6023 = vmatmul.msk.bf16.vlgmr.msra.gmra.mxu1 %vm224_vm1, %v699_v24  ;;  %264 = vst.msk [vmem:[#allocation2 + $0x130] sm:$0x3] %vm227_vm2, %v6765_v2 }
  0x7d   : > { %267 = vst.msk [vmem:[#allocation2 + $0x148] sm:$0x3] %vm227_vm2, %v6765_v2 }
  0x7e   : > { %270 = vst.msk [vmem:[#allocation2 + $0x160] sm:$0x3] %vm227_vm2, %v6765_v2 }
  0x7f   : > { %273 = vst.msk [vmem:[#allocation2 + $0x178] sm:$0x3] %vm227_vm2, %v6765_v2 }
  0x80   : > { %276 = vst.msk [vmem:[#allocation2 + $0x190] sm:$0x3] %vm227_vm2, %v6765_v2 }
  0x81   : > { %279 = vst.msk [vmem:[#allocation2 + $0x1a8] sm:$0x3] %vm227_vm2, %v6765_v2  ;;  %v289_v2 = vld [vmem:[%s6990_s17 + $0x48] sm:$0xff] }
  0x82   : > { %313 = vst.msk [vmem:[#allocation2 + $0x19] sm:$0xff] %vm224_vm1, %v280_v25 }
  0x83   : > { %314 = vst.msk [vmem:[#allocation2 + $0x21] sm:$0xff] %vm224_vm1, %v281_v26 }
  0x84   : > { %329 = vst.msk [vmem:[#allocation2 + $0xd9] sm:$0xff] %vm224_vm1, %v296_v27 }
  0x85   : > { %330 = vst.msk [vmem:[#allocation2 + $0xe1] sm:$0xff] %vm224_vm1, %v297_v28 }
  0x86   : > { %315 = vst.msk [vmem:[#allocation2 + $0x31] sm:$0xff] %vm224_vm1, %v282_v29  ;;  %v306_v29 = vld [vmem:[%s6990_s17 + $0xd0] sm:$0xff] }
  0x87   : > { %316 = vst.msk [vmem:[#allocation2 + $0x39] sm:$0xff] %vm224_vm1, %v283_v30  ;;  %v307_v30 = vld [vmem:[%s6990_s17 + $0xd8] sm:$0xff] }
  0x88   : > { %331 = vst.msk [vmem:[#allocation2 + $0xf1] sm:$0xff] %vm224_vm1, %v298_v31 }
  0x89   : > { %v383_v35 = vld [vmem:[#allocation2 + $0x18] sm:$0xff]  ;;  %332 = vst.msk [vmem:[#allocation2 + $0xf9] sm:$0xff] %vm224_vm1, %v299_v32 }
  0x8a   : > { %v669_v36 = vld [vmem:[#allocation2 + $0x19] sm:$0xff]  ;;  %v670_v39 = vld [vmem:[#allocation2 + $0x21] sm:$0xff]  ;;  %317 = vst.msk [vmem:[#allocation2 + $0x49] sm:$0xff] %vm224_vm1, %v284_v33 }
  0x8b   : > { %v384_v38 = vld [vmem:[#allocation2 + $0x20] sm:$0xff]  ;;  %v399_v42 = vld [vmem:[#allocation2 + $0xd8] sm:$0xff]  ;;  %v7072_v44 = vpack.c.bf16 %v670_v39, %v669_v36  ;;  %318 = vst.msk [vmem:[#allocation2 + $0x51] sm:$0xff] %vm224_vm1, %v285_v34  ;;  %v293_v36 = vld [vmem:[%s6990_s17 + $0x68] sm:$0xff] }
  0x8c   : > { %v7070_v41 = vpack.c.bf16 %v384_v38, %v383_v35  ;;  %v685_v43 = vld [vmem:[#allocation2 + $0xd9] sm:$0xff]  ;;  %v686_v46 = vld [vmem:[#allocation2 + $0xe1] sm:$0xff]  ;;  %333 = vst.msk [vmem:[#allocation2 + $0x109] sm:$0xff] %vm224_vm1, %v300_v37 }
  0x8d   : > { %v400_v45 = vld [vmem:[#allocation2 + $0xe0] sm:$0xff]  ;;  %v7080_v48 = vpack.c.bf16 %v686_v46, %v685_v43  ;;  %6024 = vmatmul.msk.bf16.gmra.mxu1 %vm224_vm1, %v7072_v44  ;;  %334 = vst.msk [vmem:[#allocation2 + $0x111] sm:$0xff] %vm224_vm1, %v301_v40  ;;  %v385_v51 = vld [vmem:[#allocation2 + $0x30] sm:$0xff] }
  0x8e   : > { %6007 = vmatmul.msk.bf16.gmra.mxu0 %vm224_vm1, %v7070_v41  ;;  %v7078_v47 = vpack.c.bf16 %v400_v45, %v399_v42  ;;  %319 = vst.msk [vmem:[#allocation2 + $0x61] sm:$0xff] %vm224_vm1, %v286_v49  ;;  %v386_v52 = vld [vmem:[#allocation2 + $0x38] sm:$0xff]  ;;  %v292_v35 = vld [vmem:[%s6990_s17 + $0x60] sm:$0xff] }
  0x8f   : > { %6032 = vmatmul.msk.bf16.gmra.mxu3 %vm224_vm1, %v7080_v48  ;;  %320 = vst.msk [vmem:[#allocation2 + $0x69] sm:$0xff] %vm224_vm1, %v287_v50  ;;  %v671_v53 = vld [vmem:[#allocation2 + $0x31] sm:$0xff]  ;;  %v672_v54 = vld [vmem:[#allocation2 + $0x39] sm:$0xff]  ;;  %v7095_v61 = vpack.c.bf16 %v386_v52, %v385_v51  ;;  %v309_v50 = vld [vmem:[%s6990_s17 + $0xe8] sm:$0xff] }
  0x90   : > { %6015 = vmatmul.msk.bf16.gmra.mxu2 %vm224_vm1, %v7078_v47  ;;  %v401_v55 = vld [vmem:[#allocation2 + $0xf0] sm:$0xff]  ;;  %v402_v56 = vld [vmem:[#allocation2 + $0xf8] sm:$0xff]  ;;  %v7097_v62 = vpack.c.bf16 %v672_v54, %v671_v53  ;;  %335 = vst.msk [vmem:[#allocation2 + $0x121] sm:$0xff] %vm224_vm1, %v302_v59  ;;  %v308_v49 = vld [vmem:[%s6990_s17 + $0xe0] sm:$0xff] }
  0x91   : > { %v687_v57 = vld [vmem:[#allocation2 + $0xf1] sm:$0xff]  ;;  %v688_v58 = vld [vmem:[#allocation2 + $0xf9] sm:$0xff]  ;;  %336 = vst.msk [vmem:[#allocation2 + $0x129] sm:$0xff] %vm224_vm1, %v303_v60  ;;  %v7101_v63 = vpack.c.bf16 %v402_v56, %v401_v55  ;;  %v387_v3 = vld [vmem:[#allocation2 + $0x48] sm:$0xff] }
  0x92   : > { %v7103_v0 = vpack.c.bf16 %v688_v58, %v687_v57  ;;  %321 = vst.msk [vmem:[#allocation2 + $0x79] sm:$0xff] %vm224_vm1, %v288_v1  ;;  %v388_v4 = vld [vmem:[#allocation2 + $0x50] sm:$0xff] }
  0x93   : > { %322 = vst.msk [vmem:[#allocation2 + $0x81] sm:$0xff] %vm224_vm1, %v289_v2  ;;  %v673_v5 = vld [vmem:[#allocation2 + $0x49] sm:$0xff]  ;;  %v674_v6 = vld [vmem:[#allocation2 + $0x51] sm:$0xff]  ;;  %v7119_v13 = vpack.c.bf16 %v388_v4, %v387_v3 }
  0x94   : > { %v403_v7 = vld [vmem:[#allocation2 + $0x108] sm:$0xff]  ;;  %v404_v8 = vld [vmem:[#allocation2 + $0x110] sm:$0xff]  ;;  %v7121_v14 = vpack.c.bf16 %v674_v6, %v673_v5  ;;  %337 = vst.msk [vmem:[#allocation2 + $0x139] sm:$0xff] %vm224_vm1, %v304_v11 }
  0x95   : > { %v689_v9 = vld [vmem:[#allocation2 + $0x109] sm:$0xff]  ;;  %v690_v10 = vld [vmem:[#allocation2 + $0x111] sm:$0xff]  ;;  %338 = vst.msk [vmem:[#allocation2 + $0x141] sm:$0xff] %vm224_vm1, %v305_v12  ;;  %v7125_v15 = vpack.c.bf16 %v404_v8, %v403_v7  ;;  %v389_v19 = vld [vmem:[#allocation2 + $0x60] sm:$0xff] }
  0x96   : > { %v7127_v16 = vpack.c.bf16 %v690_v10, %v689_v9  ;;  %323 = vst.msk [vmem:[#allocation2 + $0x91] sm:$0xff] %vm224_vm1, %v290_v17  ;;  %v390_v20 = vld [vmem:[#allocation2 + $0x68] sm:$0xff] }
  0x97   : > { %324 = vst.msk [vmem:[#allocation2 + $0x99] sm:$0xff] %vm224_vm1, %v291_v18  ;;  %v675_v23 = vld [vmem:[#allocation2 + $0x61] sm:$0xff]  ;;  %v676_v24 = vld [vmem:[#allocation2 + $0x69] sm:$0xff]  ;;  %v7143_v31 = vpack.c.bf16 %v390_v20, %v389_v19 }
  0x98   : > { %v405_v25 = vld [vmem:[#allocation2 + $0x120] sm:$0xff]  ;;  %v406_v26 = vld [vmem:[#allocation2 + $0x128] sm:$0xff]  ;;  %v7145_v32 = vpack.c.bf16 %v676_v24, %v675_v23  ;;  %339 = vst.msk [vmem:[#allocation2 + $0x151] sm:$0xff] %vm224_vm1, %v306_v29 }
  0x99   : > { %v691_v27 = vld [vmem:[#allocation2 + $0x121] sm:$0xff]  ;;  %v692_v28 = vld [vmem:[#allocation2 + $0x129] sm:$0xff]  ;;  %340 = vst.msk [vmem:[#allocation2 + $0x159] sm:$0xff] %vm224_vm1, %v307_v30  ;;  %v7149_v33 = vpack.c.bf16 %v406_v26, %v405_v25  ;;  %v391_v37 = vld [vmem:[#allocation2 + $0x78] sm:$0xff] }
  0x9a   : > { %v7151_v34 = vpack.c.bf16 %v692_v28, %v691_v27  ;;  %325 = vst.msk [vmem:[#allocation2 + $0xa9] sm:$0xff] %vm224_vm1, %v292_v35  ;;  %v392_v38 = vld [vmem:[#allocation2 + $0x80] sm:$0xff]  ;;  %v6107_v7 = vld [vmem:[%s8587_s1 + $0xc] sm:$0x3]  ;;  %v6124_v8 = vld [vmem:[%s8587_s1 + $0xe] sm:$0x3] }
  0x9b   : > { %326 = vst.msk [vmem:[#allocation2 + $0xb1] sm:$0xff] %vm224_vm1, %v293_v36  ;;  %v677_v39 = vld [vmem:[#allocation2 + $0x79] sm:$0xff]  ;;  %v678_v40 = vld [vmem:[#allocation2 + $0x81] sm:$0xff]  ;;  %v7167_v51 = vpack.c.bf16 %v392_v38, %v391_v37  ;;  %v2229_v9 = vsel %vm510_vm0, %v6107_v7, 0  ;;  %v2515_v10 = vsel %vm510_vm0, %v6124_v8, 0 }
  0x9c   : > { %v407_v42 = vld [vmem:[#allocation2 + $0x138] sm:$0xff]  ;;  %v408_v43 = vld [vmem:[#allocation2 + $0x140] sm:$0xff]  ;;  %v7169_v52 = vpack.c.bf16 %v678_v40, %v677_v39  ;;  %341 = vst.msk [vmem:[#allocation2 + $0x169] sm:$0xff] %vm224_vm1, %v308_v49  ;;  %2238 = vmatpush.bf16.msra.mxu2 %v2229_v9  ;;  %2524 = vmatpush.bf16.msra.mxu3 %v2515_v10  ;;  %v6090_v27 = vld [vmem:[%s8587_s1 + $0xa] sm:$0x3]  ;;  %v523_v38 = vpop.f32.mrf.mxu0 }
  0x9d   : > { %6025 = vmatmul.msk.bf16.gmra.mxu1 %vm224_vm1, %v7097_v62  ;;  %v693_v45 = vld [vmem:[#allocation2 + $0x139] sm:$0xff]  ;;  %v694_v46 = vld [vmem:[#allocation2 + $0x141] sm:$0xff]  ;;  %342 = vst.msk [vmem:[#allocation2 + $0x171] sm:$0xff] %vm224_vm1, %v309_v50  ;;  %v7173_v53 = vpack.c.bf16 %v408_v43, %v407_v42  ;;  %v393_v55 = vld [vmem:[#allocation2 + $0x90] sm:$0xff]  ;;  %v1942_v30 = vsel %vm510_vm0, %v6090_v27, 0 }
  0x9e   : > { %6008 = vmatmul.msk.bf16.gmra.mxu0 %vm224_vm1, %v7095_v61  ;;  %v7175_v54 = vpack.c.bf16 %v694_v46, %v693_v45  ;;  %v394_v56 = vld [vmem:[#allocation2 + $0x98] sm:$0xff]  ;;  %1951 = vmatpush.bf16.msrb.mxu1 %v1942_v30  ;;  %v6141_v35 = vld [vmem:[%s8587_s1 + $0x10] sm:$0x3]  ;;  %v7236_v37 = vld [vmem:[%s8588_s2] ss:$0 sm:$0xff] }
  0x9f   : > { %6033 = vmatmul.msk.bf16.gmra.mxu3 %vm224_vm1, %v7103_v0  ;;  %v679_v57 = vld [vmem:[#allocation2 + $0x91] sm:$0xff]  ;;  %v680_v58 = vld [vmem:[#allocation2 + $0x99] sm:$0xff]  ;;  %v7185_v3 = vpack.c.bf16 %v394_v56, %v393_v55  ;;  %v2801_v36 = vsel %vm510_vm0, %v6141_v35, 0  ;;  %v603_v39 = vadd.f32 %v7236_v37, %v523_v38  ;;  %v1812_v42 = vld [vmem:[#allocation2 + $0x22] sm:$0xff] }
  0xa0   : > { %6016 = vmatmul.msk.bf16.gmra.mxu2 %vm224_vm1, %v7101_v63  ;;  %v409_v59 = vld [vmem:[#allocation2 + $0x150] sm:$0xff]  ;;  %v410_v60 = vld [vmem:[#allocation2 + $0x158] sm:$0xff]  ;;  %v7187_v4 = vpack.c.bf16 %v680_v58, %v679_v57  ;;  %2810 = vmatpush.bf16.msra.mxu0 %v2801_v36  ;;  %v953_v43 = vld [vmem:[#allocation2 + $0x2] sm:$0xff] }
  0xa1   : > { %v695_v1 = vld [vmem:[#allocation2 + $0x151] sm:$0xff]  ;;  %v696_v2 = vld [vmem:[#allocation2 + $0x159] sm:$0xff]  ;;  %v7189_v5 = vpack.c.bf16 %v410_v60, %v409_v59  ;;  %v395_v11 = vld [vmem:[#allocation2 + $0xa8] sm:$0xff] }
  0xa2   : > { %v7191_v6 = vpack.c.bf16 %v696_v2, %v695_v1  ;;  %v396_v12 = vld [vmem:[#allocation2 + $0xb0] sm:$0xff]  ;;  %v1811_v40 = vld [vmem:[#allocation2 + $0x1a] sm:$0xff] }
  0xa3   : > { %v681_v17 = vld [vmem:[#allocation2 + $0xa9] sm:$0xff]  ;;  %v682_v18 = vld [vmem:[#allocation2 + $0xb1] sm:$0xff]  ;;  %v7209_v25 = vpack.c.bf16 %v396_v12, %v395_v11  ;;  %v1843_v50 = vpack.c.bf16 %v1812_v42, %v1811_v40  ;;  %v1814_v8 = vld [vmem:[#allocation2 + $0x3a] sm:$0xff] }
  0xa4   : > { %v411_v19 = vld [vmem:[#allocation2 + $0x168] sm:$0xff]  ;;  %v412_v20 = vld [vmem:[#allocation2 + $0x170] sm:$0xff]  ;;  %v7211_v26 = vpack.c.bf16 %v682_v18, %v681_v17  ;;  %v7248_v59 = vpop.f32.mrf.mxu0 }
  0xa5   : > { %v697_v23 = vld [vmem:[#allocation2 + $0x169] sm:$0xff]  ;;  %v698_v24 = vld [vmem:[#allocation2 + $0x171] sm:$0xff]  ;;  %v7216_v28 = vpack.c.bf16 %v412_v20, %v411_v19 }
  0xa6   : > { %v7218_v29 = vpack.c.bf16 %v698_v24, %v697_v23  ;;  %v954_v45 = vld [vmem:[#allocation2 + $0xa] sm:$0xff]  ;;  %v1813_v7 = vld [vmem:[#allocation2 + $0x32] sm:$0xff] }
  0xa7   : > { %v985_v55 = vpack.c.bf16 %v954_v45, %v953_v43  ;;  %v7257_v11 = vpack.c.bf16 %v1814_v8, %v1813_v7  ;;  %v1815_v36 = vld [vmem:[#allocation2 + $0x4a] sm:$0xff]  ;;  %v1816_v38 = vld [vmem:[#allocation2 + $0x52] sm:$0xff] }
  0xad   : > { %6026 = vmatmul.msk.bf16.gmra.mxu1 %vm224_vm1, %v7121_v14 }
  0xae   : > { %6009 = vmatmul.msk.bf16.gmra.mxu0 %vm224_vm1, %v7119_v13 }
  0xaf   : > { %6034 = vmatmul.msk.bf16.gmra.mxu3 %vm224_vm1, %v7127_v16 }
  0xb0   : > { %6017 = vmatmul.msk.bf16.gmra.mxu2 %vm224_vm1, %v7125_v15 }
  0xbd   : > { %6027 = vmatmul.msk.bf16.gmra.mxu1 %vm224_vm1, %v7145_v32 }
  0xbe   : > { %6010 = vmatmul.msk.bf16.gmra.mxu0 %vm224_vm1, %v7143_v31 }
  0xbf   : > { %6035 = vmatmul.msk.bf16.gmra.mxu3 %vm224_vm1, %v7151_v34 }
  0xc0   : > { %6018 = vmatmul.msk.bf16.gmra.mxu2 %vm224_vm1, %v7149_v33 }
  0xcd   : > { %6028 = vmatmul.msk.bf16.gmra.mxu1 %vm224_vm1, %v7169_v52 }
  0xce   : > { %6011 = vmatmul.msk.bf16.gmra.mxu0 %vm224_vm1, %v7167_v51 }
  0xcf   : > { %6036 = vmatmul.msk.bf16.gmra.mxu3 %vm224_vm1, %v7175_v54 }
  0xd0   : > { %6019 = vmatmul.msk.bf16.gmra.mxu2 %vm224_vm1, %v7173_v53 }
  0xdd   : > { %6029 = vmatmul.msk.bf16.gmra.mxu1 %vm224_vm1, %v7187_v4 }
  0xde   : > { %6012 = vmatmul.msk.bf16.gmra.mxu0 %vm224_vm1, %v7185_v3 }
  0xdf   : > { %6037 = vmatmul.msk.bf16.gmra.mxu3 %vm224_vm1, %v7191_v6 }
  0xe0   : > { %6020 = vmatmul.msk.bf16.gmra.mxu2 %vm224_vm1, %v7189_v5 }
  0xed   : > { %6030 = vmatmul.msk.bf16.gmra.mxu1 %vm224_vm1, %v7211_v26 }
  0xee   : > { %6013 = vmatmul.msk.bf16.gmra.mxu0 %vm224_vm1, %v7209_v25 }
  0xef   : > { %6038 = vmatmul.msk.bf16.gmra.mxu3 %vm224_vm1, %v7218_v29 }
  0xf0   : > { %6021 = vmatmul.msk.bf16.gmra.mxu2 %vm224_vm1, %v7216_v28 }
  0xf9   : > { %v809_v46 = vpop.f32.mrf.mxu1 }
  0xfa   : > { %v7239_v49 = vadd.f32 %v809_v46, %v603_v39  ;;  %v7275_v39 = vpack.c.bf16 %v1816_v38, %v1815_v36 }
  0xfd   : > { %v849_v57 = vpop.f32.mrf.mxu3  ;;  %6091 = vmatmul.msk.bf16.vlgmr.msrb.gmra.mxu1 %vm224_vm1, %v1843_v50 }
  0xfe   : > { %6074 = vmatmul.msk.bf16.vlgmr.msrb.gmra.mxu0 %vm224_vm1, %v7072_v44  ;;  %v563_v56 = vpop.f32.mrf.mxu2 }
  0xff   : > { %v619_v58 = vadd.f32 %v7236_v37, %v563_v56  ;;  %6057 = vmatmul.msk.bf16.vlgmr.msrb.gmra.mxu3 %vm224_vm1, %v7070_v41 }
 0x100   : > { %6040 = vmatmul.msk.bf16.vlgmr.msrb.gmra.mxu2 %vm224_vm1, %v985_v55 }
 0x101   : > { %v7250_v60 = vadd.f32 %v849_v57, %v619_v58  ;;  %v7252_v1 = vpop.f32.mrf.mxu1 }
 0x105   : > { %v851_v9 = vpop.f32.mrf.mxu3 }
 0x106   : > { %v565_v2 = vpop.f32.mrf.mxu2 }
 0x107   : > { %v620_v44 = vadd.f32 %v7236_v37, %v565_v2 }
 0x109   : > { %v7255_v10 = vadd.f32 %v851_v9, %v620_v44  ;;  %v1817_v9 = vld [vmem:[#allocation2 + $0x62] sm:$0xff] }
 0x10a   : > { %v814_v17 = vpop.f32.mrf.mxu1 }
 0x10b   : > { %v528_v12 = vpop.f32.mrf.mxu0 }
 0x10c   : > { %v605_v41 = vadd.f32 %v7236_v37, %v528_v12  ;;  %v1818_v12 = vld [vmem:[#allocation2 + $0x6a] sm:$0xff] }
 0x10d   : > { %6092 = vmatmul.msk.bf16.gmra.mxu1 %vm224_vm1, %v7257_v11 }
 0x10e   : > { %6075 = vmatmul.msk.bf16.gmra.mxu0 %vm224_vm1, %v7097_v62  ;;  %v7262_v18 = vadd.f32 %v814_v17, %v605_v41  ;;  %v7297_v17 = vpack.c.bf16 %v1818_v12, %v1817_v9 }
 0x10f   : > { %6058 = vmatmul.msk.bf16.gmra.mxu3 %vm224_vm1, %v7095_v61 }
 0x110   : > { %6041 = vmatmul.msk.bf16.gmra.mxu2 %vm224_vm1, %v1843_v50 }
 0x112   : > { %v854_v27 = vpop.f32.mrf.mxu3  ;;  %v816_v30 = vpop.f32.mrf.mxu1 }
 0x113   : > { %v530_v19 = vpop.f32.mrf.mxu0  ;;  %v568_v20 = vpop.f32.mrf.mxu2 }
 0x114   : > { %v606_v23 = vadd.f32 %v7236_v37, %v530_v19  ;;  %v621_v24 = vadd.f32 %v7236_v37, %v568_v20 }
 0x116   : > { %v7271_v35 = vadd.f32 %v854_v27, %v621_v24  ;;  %v7273_v62 = vadd.f32 %v816_v30, %v606_v23 }
 0x11a   : > { %v856_v45 = vpop.f32.mrf.mxu3  ;;  %v819_v46 = vpop.f32.mrf.mxu1 }
 0x11b   : > { %v533_v40 = vpop.f32.mrf.mxu0  ;;  %v570_v42 = vpop.f32.mrf.mxu2 }
 0x11c   : > { %v607_v61 = vadd.f32 %v7236_v37, %v533_v40  ;;  %v622_v43 = vadd.f32 %v7236_v37, %v570_v42 }
 0x11d   : > { %6093 = vmatmul.msk.bf16.gmra.mxu1 %vm224_vm1, %v7275_v39 }
 0x11e   : > { %6076 = vmatmul.msk.bf16.gmra.mxu0 %vm224_vm1, %v7121_v14  ;;  %v7281_v50 = vadd.f32 %v856_v45, %v622_v43  ;;  %v7283_v55 = vadd.f32 %v819_v46, %v607_v61  ;;  %v1819_v46 = vld [vmem:[#allocation2 + $0x7a] sm:$0xff] }
 0x11f   : > { %6059 = vmatmul.msk.bf16.gmra.mxu3 %vm224_vm1, %v7119_v13 }
 0x120   : > { %6042 = vmatmul.msk.bf16.gmra.mxu2 %vm224_vm1, %v7257_v11 }
 0x122   : > { %v859_v14 = vpop.f32.mrf.mxu3  ;;  %v821_v44 = vpop.f32.mrf.mxu1 }
 0x123   : > { %v535_v56 = vpop.f32.mrf.mxu0  ;;  %v573_v57 = vpop.f32.mrf.mxu2 }
 0x124   : > { %v608_v58 = vadd.f32 %v7236_v37, %v535_v56  ;;  %v623_v2 = vadd.f32 %v7236_v37, %v573_v57  ;;  %v1820_v56 = vld [vmem:[#allocation2 + $0x82] sm:$0xff] }
 0x125   : > { %v7319_v57 = vpack.c.bf16 %v1820_v56, %v1819_v46 }
 0x126   : > { %v7293_v7 = vadd.f32 %v859_v14, %v623_v2  ;;  %v7295_v8 = vadd.f32 %v821_v44, %v608_v58 }
 0x12a   : > { %v861_v23 = vpop.f32.mrf.mxu3  ;;  %v824_v24 = vpop.f32.mrf.mxu1 }
 0x12b   : > { %v538_v41 = vpop.f32.mrf.mxu0  ;;  %v575_v19 = vpop.f32.mrf.mxu2 }
 0x12c   : > { %v609_v13 = vadd.f32 %v7236_v37, %v538_v41  ;;  %v624_v20 = vadd.f32 %v7236_v37, %v575_v19 }
 0x12d   : > { %6094 = vmatmul.msk.bf16.gmra.mxu1 %vm224_vm1, %v7297_v17 }
 0x12e   : > { %6077 = vmatmul.msk.bf16.gmra.mxu0 %vm224_vm1, %v7145_v32  ;;  %v7303_v27 = vadd.f32 %v861_v23, %v624_v20  ;;  %v7305_v30 = vadd.f32 %v824_v24, %v609_v13 }
 0x12f   : > { %6060 = vmatmul.msk.bf16.gmra.mxu3 %vm224_vm1, %v7143_v31 }
 0x130   : > { %6043 = vmatmul.msk.bf16.gmra.mxu2 %vm224_vm1, %v7275_v39 }
 0x132   : > { %v864_v32 = vpop.f32.mrf.mxu3  ;;  %v826_v61 = vpop.f32.mrf.mxu1 }
 0x133   : > { %v540_v36 = vpop.f32.mrf.mxu0  ;;  %v578_v38 = vpop.f32.mrf.mxu2 }
 0x134   : > { %v610_v40 = vadd.f32 %v7236_v37, %v540_v36  ;;  %v625_v42 = vadd.f32 %v7236_v37, %v578_v38 }
 0x136   : > { %v7315_v43 = vadd.f32 %v864_v32, %v625_v42  ;;  %v7317_v45 = vadd.f32 %v826_v61, %v610_v40  ;;  %v1821_v40 = vld [vmem:[#allocation2 + $0x92] sm:$0xff]  ;;  %v1822_v42 = vld [vmem:[#allocation2 + $0x9a] sm:$0xff] }
 0x137   : > { %v7341_v32 = vpack.c.bf16 %v1822_v42, %v1821_v40  ;;  %v1824_v40 = vld [vmem:[#allocation2 + $0xb2] sm:$0xff] }
 0x13a   : > { %v866_v44 = vpop.f32.mrf.mxu3  ;;  %v829_v9 = vpop.f32.mrf.mxu1 }
 0x13b   : > { %v543_v58 = vpop.f32.mrf.mxu0  ;;  %v580_v2 = vpop.f32.mrf.mxu2 }
 0x13c   : > { %v611_v31 = vadd.f32 %v7236_v37, %v543_v58  ;;  %v626_v14 = vadd.f32 %v7236_v37, %v580_v2 }
 0x13d   : > { %6095 = vmatmul.msk.bf16.gmra.mxu1 %vm224_vm1, %v7319_v57 }
 0x13e   : > { %6078 = vmatmul.msk.bf16.gmra.mxu0 %vm224_vm1, %v7169_v52  ;;  %v7325_v12 = vadd.f32 %v866_v44, %v626_v14  ;;  %v7327_v41 = vadd.f32 %v829_v9, %v611_v31 }
 0x13f   : > { %6061 = vmatmul.msk.bf16.gmra.mxu3 %vm224_vm1, %v7167_v51 }
 0x140   : > { %6044 = vmatmul.msk.bf16.gmra.mxu2 %vm224_vm1, %v7297_v17 }
 0x142   : > { %v869_v52 = vpop.f32.mrf.mxu3  ;;  %v831_v24 = vpop.f32.mrf.mxu1 }
 0x143   : > { %v545_v19 = vpop.f32.mrf.mxu0  ;;  %v583_v13 = vpop.f32.mrf.mxu2 }
 0x144   : > { %v612_v20 = vadd.f32 %v7236_v37, %v545_v19  ;;  %v627_v23 = vadd.f32 %v7236_v37, %v583_v13 }
 0x146   : > { %v7337_v36 = vadd.f32 %v869_v52, %v627_v23  ;;  %v7339_v38 = vadd.f32 %v831_v24, %v612_v20  ;;  %v1823_v24 = vld [vmem:[#allocation2 + $0xaa] sm:$0xff] }
 0x147   : > { %v7363_v42 = vpack.c.bf16 %v1824_v40, %v1823_v24 }
 0x149   : > { %8598 = vst [vmem:[#allocation10_spill] sm:$0xff] %v7363_v42 }
 0x14a   : > { %v871_v58 = vpop.f32.mrf.mxu3  ;;  %v834_v2 = vpop.f32.mrf.mxu1 }
 0x14b   : > { %v548_v61 = vpop.f32.mrf.mxu0  ;;  %v585_v46 = vpop.f32.mrf.mxu2 }
 0x14c   : > { %v613_v51 = vadd.f32 %v7236_v37, %v548_v61  ;;  %v628_v56 = vadd.f32 %v7236_v37, %v585_v46 }
 0x14d   : > { %6096 = vmatmul.msk.bf16.gmra.mxu1 %vm224_vm1, %v7341_v32 }
 0x14e   : > { %6079 = vmatmul.msk.bf16.gmra.mxu0 %vm224_vm1, %v7187_v4  ;;  %v7347_v31 = vadd.f32 %v871_v58, %v628_v56  ;;  %v7349_v14 = vadd.f32 %v834_v2, %v613_v51 }
 0x14f   : > { %6062 = vmatmul.msk.bf16.gmra.mxu3 %vm224_vm1, %v7185_v3 }
 0x150   : > { %8596 = vst [vmem:[#allocation8_spill] sm:$0xff] %v7347_v31  ;;  %6045 = vmatmul.msk.bf16.gmra.mxu2 %vm224_vm1, %v7319_v57 }
 0x152   : > { %v874_v4 = vpop.f32.mrf.mxu3  ;;  %v836_v20 = vpop.f32.mrf.mxu1 }
 0x153   : > { %v550_v44 = vpop.f32.mrf.mxu0  ;;  %v588_v9 = vpop.f32.mrf.mxu2 }
 0x154   : > { %v614_v19 = vadd.f32 %v7236_v37, %v550_v44  ;;  %v629_v13 = vadd.f32 %v7236_v37, %v588_v9 }
 0x156   : > { %v7359_v23 = vadd.f32 %v874_v4, %v629_v13  ;;  %v7361_v52 = vadd.f32 %v836_v20, %v614_v19 }
 0x158   : > { %8597 = vst [vmem:[#allocation9_spill] sm:$0xff] %v7359_v23 }
 0x15a   : > { %v876_v56 = vpop.f32.mrf.mxu3  ;;  %v839_v58 = vpop.f32.mrf.mxu1 }
 0x15b   : > { %v553_v61 = vpop.f32.mrf.mxu0  ;;  %v590_v46 = vpop.f32.mrf.mxu2 }
 0x15c   : > { %v615_v3 = vadd.f32 %v7236_v37, %v553_v61  ;;  %v630_v51 = vadd.f32 %v7236_v37, %v590_v46  ;;  %v1825_v61 = vld [vmem:[#allocation2 + $0xc2] sm:$0xff]  ;;  %v1826_v46 = vld [vmem:[#allocation2 + $0xca] sm:$0xff] }
 0x15d   : > { %6097 = vmatmul.msk.bf16.gmra.mxu1 %vm224_vm1, %v7363_v42 }
 0x15e   : > { %6080 = vmatmul.msk.bf16.gmra.mxu0 %vm224_vm1, %v7211_v26  ;;  %v7369_v2 = vadd.f32 %v876_v56, %v630_v51  ;;  %v7371_v44 = vadd.f32 %v839_v58, %v615_v3  ;;  %v7385_v3 = vpack.c.bf16 %v1826_v46, %v1825_v61 }
 0x15f   : > { %6063 = vmatmul.msk.bf16.gmra.mxu3 %vm224_vm1, %v7209_v25 }
 0x160   : > { %8599 = vst [vmem:[#allocation11_spill] sm:$0xff] %v7369_v2  ;;  %6046 = vmatmul.msk.bf16.gmra.mxu2 %vm224_vm1, %v7341_v32 }
 0x161   : > { %8601 = vst [vmem:[#allocation13_spill] sm:$0xff] %v7385_v3 }
 0x162   : > { %v879_v26 = vpop.f32.mrf.mxu3  ;;  %v841_v20 = vpop.f32.mrf.mxu1 }
 0x163   : > { %v555_v9 = vpop.f32.mrf.mxu0  ;;  %v593_v19 = vpop.f32.mrf.mxu2 }
 0x164   : > { %v616_v13 = vadd.f32 %v7236_v37, %v555_v9  ;;  %v631_v4 = vadd.f32 %v7236_v37, %v593_v19 }
 0x166   : > { %v7381_v24 = vadd.f32 %v879_v26, %v631_v4  ;;  %v7383_v40 = vadd.f32 %v841_v20, %v616_v13  ;;  %v6587_v13 = vld [vmem:[%s8589_s3 + $0x38] sm:$0xff] }
 0x167   : > { %3287 = vmatpush.bf16.msra.mxu1 %v6587_v13 }
 0x168   : > { %8600 = vst [vmem:[#allocation12_spill] sm:$0xff] %v7381_v24 }
 0x16a   : > { %v881_v2 = vpop.f32.mrf.mxu3  ;;  %v844_v9 = vpop.f32.mrf.mxu1 }
 0x16b   : > { %v558_v51 = vpop.f32.mrf.mxu0  ;;  %v595_v56 = vpop.f32.mrf.mxu2 }
 0x16c   : > { %v617_v25 = vadd.f32 %v7236_v37, %v558_v51  ;;  %v632_v58 = vadd.f32 %v7236_v37, %v595_v56 }
 0x16d   : > { %6098 = vmatmul.msk.bf16.gmra.mxu1 %vm224_vm1, %v7385_v3 }
 0x16e   : > { %6081 = vmatmul.msk.bf16.gmra.mxu0 %vm224_vm1, %v7024_v22  ;;  %v7391_v19 = vadd.f32 %v881_v2, %v632_v58  ;;  %v7393_v4 = vadd.f32 %v844_v9, %v617_v25  ;;  %v1827_v25 = vld [vmem:[#allocation2 + $0xda] sm:$0xff]  ;;  %v1828_v58 = vld [vmem:[#allocation2 + $0xe2] sm:$0xff] }
 0x16f   : > { %6064 = vmatmul.msk.bf16.gmra.mxu3 %vm224_vm1, %v7020_v21  ;;  %v7410_v9 = vpack.c.bf16 %v1828_v58, %v1827_v25  ;;  %v1829_v25 = vld [vmem:[#allocation2 + $0xf2] sm:$0xff]  ;;  %v1830_v58 = vld [vmem:[#allocation2 + $0xfa] sm:$0xff] }
 0x170   : > { %8602 = vst [vmem:[#allocation14_spill] sm:$0xff] %v7391_v19  ;;  %6047 = vmatmul.msk.bf16.gmra.mxu2 %vm224_vm1, %v7363_v42 }
 0x172   : > { %v884_v61 = vpop.f32.mrf.mxu3  ;;  %v846_v46 = vpop.f32.mrf.mxu1 }
 0x173   : > { %v560_v26 = vpop.f32.mrf.mxu0  ;;  %v598_v22 = vpop.f32.mrf.mxu2 }
 0x174   : > { %v618_v2 = vadd.f32 %v7236_v37, %v560_v26  ;;  %v633_v20 = vadd.f32 %v7236_v37, %v598_v22 }
 0x176   : > { %v7406_v51 = vadd.f32 %v884_v61, %v633_v20  ;;  %v7408_v56 = vadd.f32 %v846_v46, %v618_v2 }
 0x178   : > { %8603 = vst [vmem:[#allocation15_spill] sm:$0xff] %v7406_v51  ;;  %v7429_v51 = vpack.c.bf16 %v1830_v58, %v1829_v25 }
 0x17a   : > { %v886_v13 = vpop.f32.mrf.mxu3  ;;  %v1953_v23 = vpop.f32.mrf.mxu1 }
 0x17b   : > { %v1667_v19 = vpop.f32.mrf.mxu0  ;;  %v600_v24 = vpop.f32.mrf.mxu2 }
 0x17c   : > { %v634_v21 = vadd.f32 %v7236_v37, %v600_v24 }
 0x17d   : > { %6099 = vmatmul.msk.bf16.gmra.mxu1 %vm224_vm1, %v7410_v9 }
 0x17e   : > { %6082 = vmatmul.msk.bf16.gmra.mxu0 %vm224_vm1, %v7080_v48  ;;  %v7415_v26 = vadd.f32 %v886_v13, %v634_v21  ;;  %v604_v48 = vadd.f32 %v7236_v37, %v7248_v59  ;;  %v6586_v37 = vld [vmem:[%s8589_s3 + $0x30] sm:$0xff] }
 0x17f   : > { %6065 = vmatmul.msk.bf16.gmra.mxu3 %vm224_vm1, %v7078_v47  ;;  %3288 = vmatpush.bf16.msra.mxu1 %v6586_v37 }
 0x180   : > { %8604 = vst [vmem:[#allocation16_spill] sm:$0xff] %v7415_v26  ;;  %6048 = vmatmul.msk.bf16.gmra.mxu2 %vm224_vm1, %v7385_v3  ;;  %v890_v13 = vadd.f32 %v7252_v1, %v604_v48 }
 0x182   : > { %v1381_v20 = vpop.f32.mrf.mxu3  ;;  %v1955_v61 = vpop.f32.mrf.mxu1 }
 0x183   : > { %v1669_v22 = vpop.f32.mrf.mxu0  ;;  %v1095_v2 = vpop.f32.mrf.mxu2 }
 0x184   : > { %v1175_v24 = vadd.f32 %v1095_v2, %v7239_v49 }
 0x186   : > { %v1461_v46 = vadd.f32 %v1381_v20, %v1175_v24  ;;  %v1831_v24 = vld [vmem:[#allocation2 + $0x10a] sm:$0xff]  ;;  %v1832_v20 = vld [vmem:[#allocation2 + $0x112] sm:$0xff] }
 0x187   : > { %v7447_v25 = vpack.c.bf16 %v1832_v20, %v1831_v24 }
 0x188   : > { %v1747_v21 = vadd.f32 %v1667_v19, %v1461_v46 }
 0x18a   : > { %v7427_v26 = vadd.f32 %v1953_v23, %v1747_v21  ;;  %v1383_v31 = vpop.f32.mrf.mxu3  ;;  %v1958_v49 = vpop.f32.mrf.mxu1 }
 0x18b   : > { %v1672_v47 = vpop.f32.mrf.mxu0  ;;  %v1097_v3 = vpop.f32.mrf.mxu2 }
 0x18c   : > { %v1176_v42 = vadd.f32 %v1097_v3, %v890_v13 }
 0x18d   : > { %6100 = vmatmul.msk.bf16.gmra.mxu1 %vm224_vm1, %v7429_v51 }
 0x18e   : > { %6083 = vmatmul.msk.bf16.gmra.mxu0 %vm224_vm1, %v7103_v0  ;;  %v1462_v2 = vadd.f32 %v1383_v31, %v1176_v42 }
 0x18f   : > { %6066 = vmatmul.msk.bf16.gmra.mxu3 %vm224_vm1, %v7101_v63 }
 0x190   : > { %6049 = vmatmul.msk.bf16.gmra.mxu2 %vm224_vm1, %v7410_v9  ;;  %v1748_v59 = vadd.f32 %v1669_v22, %v1462_v2 }
 0x192   : > { %v7442_v1 = vadd.f32 %v1955_v61, %v1748_v59  ;;  %v1386_v42 = vpop.f32.mrf.mxu3  ;;  %v1960_v3 = vpop.f32.mrf.mxu1 }
 0x193   : > { %v1674_v23 = vpop.f32.mrf.mxu0  ;;  %v1100_v0 = vpop.f32.mrf.mxu2 }
 0x194   : > { %v1177_v31 = vadd.f32 %v1100_v0, %v7262_v18  ;;  %v1833_v0 = vld [vmem:[#allocation2 + $0x122] sm:$0xff] }
 0x196   : > { %v1463_v19 = vadd.f32 %v1386_v42, %v1177_v31  ;;  %v1834_v31 = vld [vmem:[#allocation2 + $0x12a] sm:$0xff] }
 0x197   : > { %v7463_v24 = vpack.c.bf16 %v1834_v31, %v1833_v0 }
 0x198   : > { %v1749_v48 = vadd.f32 %v1672_v47, %v1463_v19 }
 0x19a   : > { %v7445_v46 = vadd.f32 %v1958_v49, %v1749_v48  ;;  %v1388_v61 = vpop.f32.mrf.mxu3  ;;  %v1963_v21 = vpop.f32.mrf.mxu1 }
 0x19b   : > { %v1677_v58 = vpop.f32.mrf.mxu0  ;;  %v1102_v63 = vpop.f32.mrf.mxu2 }
 0x19c   : > { %v1178_v22 = vadd.f32 %v1102_v63, %v7273_v62 }
 0x19d   : > { %6101 = vmatmul.msk.bf16.gmra.mxu1 %vm224_vm1, %v7447_v25 }
 0x19e   : > { %6084 = vmatmul.msk.bf16.gmra.mxu0 %vm224_vm1, %v7127_v16  ;;  %v1464_v18 = vadd.f32 %v1388_v61, %v1178_v22 }
 0x19f   : > { %6067 = vmatmul.msk.bf16.gmra.mxu3 %vm224_vm1, %v7125_v15 }
 0x1a0   : > { %6050 = vmatmul.msk.bf16.gmra.mxu2 %vm224_vm1, %v7429_v51  ;;  %v1750_v13 = vadd.f32 %v1674_v23, %v1464_v18 }
 0x1a2   : > { %v7458_v47 = vadd.f32 %v1960_v3, %v1750_v13  ;;  %v1391_v37 = vpop.f32.mrf.mxu3  ;;  %v1965_v59 = vpop.f32.mrf.mxu1 }
 0x1a3   : > { %v1679_v49 = vpop.f32.mrf.mxu0  ;;  %v1105_v62 = vpop.f32.mrf.mxu2 }
 0x1a4   : > { %v1179_v2 = vadd.f32 %v1105_v62, %v7283_v55  ;;  %v1835_v62 = vld [vmem:[#allocation2 + $0x13a] sm:$0xff] }
 0x1a6   : > { %v1465_v16 = vadd.f32 %v1391_v37, %v1179_v2  ;;  %v1836_v2 = vld [vmem:[#allocation2 + $0x142] sm:$0xff] }
 0x1a7   : > { %v7482_v0 = vpack.c.bf16 %v1836_v2, %v1835_v62 }
 0x1a8   : > { %v1751_v42 = vadd.f32 %v1677_v58, %v1465_v16  ;;  %v6585_v58 = vld [vmem:[%s8589_s3 + $0x28] sm:$0xff] }
 0x1a9   : > { %3289 = vmatpush.bf16.msra.mxu1 %v6585_v58 }
 0x1aa   : > { %v7461_v19 = vadd.f32 %v1963_v21, %v1751_v42  ;;  %v1393_v23 = vpop.f32.mrf.mxu3  ;;  %v1968_v3 = vpop.f32.mrf.mxu1 }
 0x1ab   : > { %v1682_v20 = vpop.f32.mrf.mxu0  ;;  %v1107_v48 = vpop.f32.mrf.mxu2 }
 0x1ac   : > { %v1180_v15 = vadd.f32 %v1107_v48, %v7295_v8 }
 0x1ad   : > { %6102 = vmatmul.msk.bf16.gmra.mxu1 %vm224_vm1, %v7463_v24 }
 0x1ae   : > { %6085 = vmatmul.msk.bf16.gmra.mxu0 %vm224_vm1, %v7151_v34  ;;  %v1466_v55 = vadd.f32 %v1393_v23, %v1180_v15  ;;  %v310_v23 = vld [vmem:[%s6990_s17 + $0xf0] sm:$0xff] }
 0x1af   : > { %6068 = vmatmul.msk.bf16.gmra.mxu3 %vm224_vm1, %v7149_v33  ;;  %343 = vst.msk [vmem:[#allocation2 + $0x181] sm:$0xff] %vm224_vm1, %v310_v23 }
 0x1b0   : > { %6051 = vmatmul.msk.bf16.gmra.mxu2 %vm224_vm1, %v7447_v25  ;;  %v1752_v8 = vadd.f32 %v1679_v49, %v1466_v55 }
 0x1b2   : > { %v7477_v63 = vadd.f32 %v1965_v59, %v1752_v8  ;;  %v1396_v21 = vpop.f32.mrf.mxu3  ;;  %v1970_v18 = vpop.f32.mrf.mxu1 }
 0x1b3   : > { %v1684_v22 = vpop.f32.mrf.mxu0  ;;  %v1110_v34 = vpop.f32.mrf.mxu2 }
 0x1b4   : > { %v1181_v61 = vadd.f32 %v1110_v34, %v7305_v30  ;;  %v1837_v34 = vld [vmem:[#allocation2 + $0x152] sm:$0xff] }
 0x1b6   : > { %v1467_v13 = vadd.f32 %v1396_v21, %v1181_v61  ;;  %v1838_v61 = vld [vmem:[#allocation2 + $0x15a] sm:$0xff] }
 0x1b7   : > { %v7504_v21 = vpack.c.bf16 %v1838_v61, %v1837_v34 }
 0x1b8   : > { %v1753_v37 = vadd.f32 %v1682_v20, %v1467_v13 }
 0x1ba   : > { %v7480_v16 = vadd.f32 %v1968_v3, %v1753_v37  ;;  %v1398_v31 = vpop.f32.mrf.mxu3  ;;  %v1973_v42 = vpop.f32.mrf.mxu1  ;;  %v311_v3 = vld [vmem:[%s6990_s17 + $0xf8] sm:$0xff] }
 0x1bb   : > { %v1687_v33 = vpop.f32.mrf.mxu0  ;;  %v1112_v49 = vpop.f32.mrf.mxu2  ;;  %344 = vst.msk [vmem:[#allocation2 + $0x189] sm:$0xff] %vm224_vm1, %v311_v3 }
 0x1bc   : > { %v1182_v59 = vadd.f32 %v1112_v49, %v7317_v45 }
 0x1bd   : > { %6103 = vmatmul.msk.bf16.gmra.mxu1 %vm224_vm1, %v7482_v0 }
 0x1be   : > { %6086 = vmatmul.msk.bf16.gmra.mxu0 %vm224_vm1, %v7175_v54  ;;  %v1468_v30 = vadd.f32 %v1398_v31, %v1182_v59 }
 0x1bf   : > { %6069 = vmatmul.msk.bf16.gmra.mxu3 %vm224_vm1, %v7173_v53 }
 0x1c0   : > { %6052 = vmatmul.msk.bf16.gmra.mxu2 %vm224_vm1, %v7463_v24  ;;  %v1754_v20 = vadd.f32 %v1684_v22, %v1468_v30 }
 0x1c2   : > { %v7493_v48 = vadd.f32 %v1970_v18, %v1754_v20  ;;  %v1401_v54 = vpop.f32.mrf.mxu3  ;;  %v7498_v58 = vpop.f32.mrf.mxu1  ;;  %v1839_v20 = vld [vmem:[#allocation2 + $0x16a] sm:$0xff] }
 0x1c3   : > { %v1689_v15 = vpop.f32.mrf.mxu0  ;;  %v1115_v45 = vpop.f32.mrf.mxu2 }
 0x1c4   : > { %v1183_v55 = vadd.f32 %v1115_v45, %v7327_v41  ;;  %v1840_v45 = vld [vmem:[#allocation2 + $0x172] sm:$0xff] }
 0x1c6   : > { %v1469_v8 = vadd.f32 %v1401_v54, %v1183_v55  ;;  %v7525_v55 = vpack.c.bf16 %v1840_v45, %v1839_v20 }
 0x1c8   : > { %v1755_v53 = vadd.f32 %v1687_v33, %v1469_v8  ;;  %v6584_v33 = vld [vmem:[%s8589_s3 + $0x20] sm:$0xff] }
 0x1c9   : > { %3290 = vmatpush.bf16.msra.mxu1 %v6584_v33  ;;  %v1842_v33 = vld [vmem:[#allocation2 + $0x18a] sm:$0xff] }
 0x1ca   : > { %v7502_v22 = vadd.f32 %v1973_v42, %v1755_v53  ;;  %v1403_v41 = vpop.f32.mrf.mxu3  ;;  %v1978_v2 = vpop.f32.mrf.mxu1 }
 0x1cb   : > { %v1692_v18 = vpop.f32.mrf.mxu0  ;;  %v1117_v13 = vpop.f32.mrf.mxu2 }
 0x1cc   : > { %v1184_v62 = vadd.f32 %v1117_v13, %v7339_v38 }
 0x1cd   : > { %6104 = vmatmul.msk.bf16.gmra.mxu1 %vm224_vm1, %v7504_v21 }
 0x1ce   : > { %6087 = vmatmul.msk.bf16.gmra.mxu0 %vm224_vm1, %v7191_v6  ;;  %v1470_v37 = vadd.f32 %v1403_v41, %v1184_v62  ;;  %v1555_v41 = vld [vmem:[#allocation2 + $0x181] sm:$0xff] }
 0x1cf   : > { %6070 = vmatmul.msk.bf16.gmra.mxu3 %vm224_vm1, %v7189_v5 }
 0x1d0   : > { %6053 = vmatmul.msk.bf16.gmra.mxu2 %vm224_vm1, %v7482_v0  ;;  %v7518_v38 = vadd.f32 %v1689_v15, %v1470_v37  ;;  %v1841_v37 = vld [vmem:[#allocation2 + $0x182] sm:$0xff] }
 0x1d2   : > { %v1406_v31 = vpop.f32.mrf.mxu3  ;;  %v7521_v42 = vpop.f32.mrf.mxu1 }
 0x1d3   : > { %v1694_v49 = vpop.f32.mrf.mxu0  ;;  %v1120_v59 = vpop.f32.mrf.mxu2 }
 0x1d4   : > { %v1185_v6 = vadd.f32 %v1120_v59, %v7349_v14 }
 0x1d6   : > { %v1471_v30 = vadd.f32 %v1406_v31, %v1185_v6  ;;  %v1269_v6 = vld [vmem:[#allocation2 + $0x180] sm:$0xff]  ;;  %v1270_v31 = vld [vmem:[#allocation2 + $0x188] sm:$0xff] }
 0x1d8   : > { %v1757_v23 = vadd.f32 %v1692_v18, %v1471_v30 }
 0x1da   : > { %v7523_v3 = vadd.f32 %v1978_v2, %v1757_v23  ;;  %v1408_v8 = vpop.f32.mrf.mxu3  ;;  %v1983_v34 = vpop.f32.mrf.mxu1  ;;  %v1556_v2 = vld [vmem:[#allocation2 + $0x189] sm:$0xff] }
 0x1db   : > { %v1697_v54 = vpop.f32.mrf.mxu0  ;;  %v1122_v5 = vpop.f32.mrf.mxu2 }
 0x1dc   : > { %v1186_v15 = vadd.f32 %v1122_v5, %v7361_v52  ;;  %v7546_v5 = vpack.c.bf16 %v1270_v31, %v1269_v6 }
 0x1dd   : > { %6105 = vmatmul.msk.bf16.gmra.mxu1 %vm224_vm1, %v7525_v55 }
 0x1de   : > { %6088 = vmatmul.msk.bf16.gmra.mxu0 %vm224_vm1, %v7218_v29  ;;  %v1472_v14 = vadd.f32 %v1408_v8, %v1186_v15 }
 0x1df   : > { %6071 = vmatmul.msk.bf16.gmra.mxu3 %vm224_vm1, %v7216_v28  ;;  %v1572_v28 = vpack.c.bf16 %v1556_v2, %v1555_v41  ;;  %v2098_v2 = vld [vmem:[#allocation2 + $0x30] sm:$0xff] }
 0x1e0   : > { %6054 = vmatmul.msk.bf16.gmra.mxu2 %vm224_vm1, %v7504_v21  ;;  %v7536_v61 = vadd.f32 %v1694_v49, %v1472_v14  ;;  %v7543_v49 = vpack.c.bf16 %v1842_v33, %v1841_v37  ;;  %v2099_v37 = vld [vmem:[#allocation2 + $0x38] sm:$0xff] }
 0x1e1   : > { %v2384_v33 = vld [vmem:[#allocation2 + $0x31] sm:$0xff] }
 0x1e2   : > { %v1411_v13 = vpop.f32.mrf.mxu3  ;;  %v7539_v62 = vpop.f32.mrf.mxu1 }
 0x1e3   : > { %v1699_v53 = vpop.f32.mrf.mxu0  ;;  %v1125_v18 = vpop.f32.mrf.mxu2 }
 0x1e4   : > { %v1187_v52 = vadd.f32 %v1125_v18, %v7371_v44 }
 0x1e6   : > { %v1473_v29 = vadd.f32 %v1411_v13, %v1187_v52 }
 0x1e8   : > { %v1759_v59 = vadd.f32 %v1697_v54, %v1473_v29  ;;  %v6583_v54 = vld [vmem:[%s8589_s3 + $0x18] sm:$0xff] }
 0x1e9   : > { %3291 = vmatpush.bf16.msra.mxu1 %v6583_v54 }
 0x1ea   : > { %v7541_v30 = vadd.f32 %v1983_v34, %v1759_v59  ;;  %v1413_v23 = vpop.f32.mrf.mxu3  ;;  %v1988_v15 = vpop.f32.mrf.mxu1  ;;  %v2385_v59 = vld [vmem:[#allocation2 + $0x39] sm:$0xff] }
 0x1eb   : > { %v1702_v20 = vpop.f32.mrf.mxu0  ;;  %v1127_v45 = vpop.f32.mrf.mxu2 }
 0x1ec   : > { %v1188_v44 = vadd.f32 %v1127_v45, %v7383_v40 }
 0x1ed   : > { %6106 = vmatmul.msk.bf16.gmra.mxu1 %vm224_vm1, %v7543_v49 }
 0x1ee   : > { %6089 = vmatmul.msk.bf16.gmra.mxu0 %vm224_vm1, %v1572_v28  ;;  %v1474_v8 = vadd.f32 %v1413_v23, %v1188_v44  ;;  %v2130_v44 = vpack.c.bf16 %v2099_v37, %v2098_v2  ;;  %v2416_v23 = vpack.c.bf16 %v2385_v59, %v2384_v33  ;;  %v2101_v2 = vld [vmem:[#allocation2 + $0x50] sm:$0xff] }
 0x1ef   : > { %6072 = vmatmul.msk.bf16.gmra.mxu3 %vm224_vm1, %v7546_v5  ;;  %v2386_v37 = vld [vmem:[#allocation2 + $0x49] sm:$0xff] }
 0x1f0   : > { %6055 = vmatmul.msk.bf16.gmra.mxu2 %vm224_vm1, %v7525_v55  ;;  %v7558_v40 = vadd.f32 %v1699_v53, %v1474_v8 }
 0x1f2   : > { %v1416_v52 = vpop.f32.mrf.mxu3  ;;  %v7561_v13 = vpop.f32.mrf.mxu1 }
 0x1f3   : > { %v1704_v34 = vpop.f32.mrf.mxu0  ;;  %v1130_v14 = vpop.f32.mrf.mxu2 }
 0x1f4   : > { %v1189_v18 = vadd.f32 %v1130_v14, %v7393_v4 }
 0x1f6   : > { %v1475_v29 = vadd.f32 %v1416_v52, %v1189_v18 }
 0x1f8   : > { %v1761_v41 = vadd.f32 %v1702_v20, %v1475_v29 }
 0x1fa   : > { %v7563_v6 = vadd.f32 %v1988_v15, %v1761_v41  ;;  %v1418_v45 = vpop.f32.mrf.mxu3  ;;  %v1993_v8 = vpop.f32.mrf.mxu1  ;;  %v2100_v41 = vld [vmem:[#allocation2 + $0x48] sm:$0xff] }
 0x1fb   : > { %v1707_v31 = vpop.f32.mrf.mxu0  ;;  %v1132_v28 = vpop.f32.mrf.mxu2 }
 0x1fc   : > { %v1190_v53 = vadd.f32 %v1132_v28, %v7408_v56 }
 0x1fe   : > { %6142 = vmatmul.msk.bf16.vlgmr.msra.gmra.mxu0 %vm224_vm1, %v7257_v11  ;;  %v1476_v4 = vadd.f32 %v1418_v45, %v1190_v53  ;;  %v2387_v11 = vld [vmem:[#allocation2 + $0x51] sm:$0xff]  ;;  %v2131_v45 = vpack.c.bf16 %v2101_v2, %v2100_v41  ;;  %v2103_v41 = vld [vmem:[#allocation2 + $0x68] sm:$0xff] }
 0x1ff   : > { %6125 = vmatmul.msk.bf16.vlgmr.msra.gmra.mxu3 %vm224_vm1, %v2416_v23  ;;  %v2388_v2 = vld [vmem:[#allocation2 + $0x61] sm:$0xff] }
 0x200   : > { %6108 = vmatmul.msk.bf16.vlgmr.msra.gmra.mxu2 %vm224_vm1, %v2130_v44  ;;  %v7570_v20 = vadd.f32 %v1704_v34, %v1476_v4  ;;  %v2417_v44 = vpack.c.bf16 %v2387_v11, %v2386_v37  ;;  %v2389_v37 = vld [vmem:[#allocation2 + $0x69] sm:$0xff] }
 0x202   : > { %v1421_v18 = vpop.f32.mrf.mxu3  ;;  %v7573_v56 = vpop.f32.mrf.mxu1 }
 0x203   : > { %v1709_v15 = vpop.f32.mrf.mxu0  ;;  %v1135_v54 = vpop.f32.mrf.mxu2 }
 0x204   : > { %v1191_v14 = vadd.f32 %v1135_v54, %v7250_v60 }
 0x206   : > { %v1477_v52 = vadd.f32 %v1421_v18, %v1191_v14 }
 0x208   : > { %v1763_v29 = vadd.f32 %v1707_v31, %v1477_v52  ;;  %v6582_v31 = vld [vmem:[%s8589_s3 + $0x10] sm:$0xff] }
 0x209   : > { %3292 = vmatpush.bf16.msra.mxu1 %v6582_v31 }
 0x20a   : > { %v7575_v33 = vadd.f32 %v1993_v8, %v1763_v29  ;;  %v1423_v53 = vpop.f32.mrf.mxu3  ;;  %v1998_v23 = vpop.f32.mrf.mxu1  ;;  %v2102_v29 = vld [vmem:[#allocation2 + $0x60] sm:$0xff] }
 0x20b   : > { %v1712_v59 = vpop.f32.mrf.mxu0  ;;  %v1137_v28 = vpop.f32.mrf.mxu2 }
 0x20c   : > { %v1192_v34 = vadd.f32 %v1137_v28, %v7255_v10 }
 0x20e   : > { %6143 = vmatmul.msk.bf16.gmra.mxu0 %vm224_vm1, %v7275_v39  ;;  %v1478_v60 = vadd.f32 %v1423_v53, %v1192_v34 }
 0x20f   : > { %6126 = vmatmul.msk.bf16.gmra.mxu3 %vm224_vm1, %v2417_v44  ;;  %v2418_v44 = vpack.c.bf16 %v2389_v37, %v2388_v2 }
 0x210   : > { %6109 = vmatmul.msk.bf16.gmra.mxu2 %vm224_vm1, %v2131_v45  ;;  %v7585_v8 = vadd.f32 %v1709_v15, %v1478_v60  ;;  %v2132_v45 = vpack.c.bf16 %v2103_v41, %v2102_v29  ;;  %v2105_v29 = vld [vmem:[#allocation2 + $0x80] sm:$0xff] }
 0x211   : > { %v2390_v41 = vld [vmem:[#allocation2 + $0x79] sm:$0xff] }
 0x212   : > { %v1426_v14 = vpop.f32.mrf.mxu3  ;;  %v7588_v18 = vpop.f32.mrf.mxu1 }
 0x213   : > { %v1714_v10 = vpop.f32.mrf.mxu0  ;;  %v1140_v4 = vpop.f32.mrf.mxu2 }
 0x214   : > { %v1193_v54 = vadd.f32 %v1140_v4, %v7271_v35 }
 0x216   : > { %v1479_v39 = vadd.f32 %v1426_v14, %v1193_v54 }
 0x218   : > { %v1765_v52 = vadd.f32 %v1712_v59, %v1479_v39 }
 0x21a   : > { %v7590_v11 = vadd.f32 %v1998_v23, %v1765_v52  ;;  %v1428_v53 = vpop.f32.mrf.mxu3  ;;  %v2003_v60 = vpop.f32.mrf.mxu1  ;;  %v2104_v52 = vld [vmem:[#allocation2 + $0x78] sm:$0xff] }
 0x21b   : > { %v1717_v28 = vpop.f32.mrf.mxu0  ;;  %v1142_v34 = vpop.f32.mrf.mxu2 }
 0x21c   : > { %v1194_v15 = vadd.f32 %v1142_v34, %v7281_v50 }
 0x21e   : > { %6144 = vmatmul.msk.bf16.gmra.mxu0 %vm224_vm1, %v7297_v17  ;;  %v1480_v35 = vadd.f32 %v1428_v53, %v1194_v15  ;;  %v2391_v17 = vld [vmem:[#allocation2 + $0x81] sm:$0xff]  ;;  %v2133_v53 = vpack.c.bf16 %v2105_v29, %v2104_v52  ;;  %v2107_v52 = vld [vmem:[#allocation2 + $0x98] sm:$0xff] }
 0x21f   : > { %6127 = vmatmul.msk.bf16.gmra.mxu3 %vm224_vm1, %v2418_v44  ;;  %v2392_v29 = vld [vmem:[#allocation2 + $0x91] sm:$0xff] }
 0x220   : > { %6110 = vmatmul.msk.bf16.gmra.mxu2 %vm224_vm1, %v2132_v45  ;;  %v7597_v59 = vadd.f32 %v1714_v10, %v1480_v35  ;;  %v2419_v45 = vpack.c.bf16 %v2391_v17, %v2390_v41  ;;  %v2393_v41 = vld [vmem:[#allocation2 + $0x99] sm:$0xff] }
 0x222   : > { %v1431_v54 = vpop.f32.mrf.mxu3  ;;  %v7600_v50 = vpop.f32.mrf.mxu1 }
 0x223   : > { %v1719_v23 = vpop.f32.mrf.mxu0  ;;  %v1145_v31 = vpop.f32.mrf.mxu2 }
 0x224   : > { %v1195_v4 = vadd.f32 %v1145_v31, %v7293_v7 }
 0x226   : > { %v1481_v14 = vadd.f32 %v1431_v54, %v1195_v4 }
 0x228   : > { %v1767_v39 = vadd.f32 %v1717_v28, %v1481_v14  ;;  %v6581_v28 = vld [vmem:[%s8589_s3 + $0x8] sm:$0xff] }
 0x229   : > { %3293 = vmatpush.bf16.msra.mxu1 %v6581_v28 }
 0x22a   : > { %v7602_v2 = vadd.f32 %v2003_v60, %v1767_v39  ;;  %v1433_v15 = vpop.f32.mrf.mxu3  ;;  %v2008_v44 = vpop.f32.mrf.mxu1  ;;  %v2106_v39 = vld [vmem:[#allocation2 + $0x90] sm:$0xff] }
 0x22b   : > { %v1722_v37 = vpop.f32.mrf.mxu0  ;;  %v1147_v34 = vpop.f32.mrf.mxu2 }
 0x22c   : > { %v1196_v10 = vadd.f32 %v1147_v34, %v7303_v27 }
 0x22e   : > { %6145 = vmatmul.msk.bf16.gmra.mxu0 %vm224_vm1, %v7319_v57  ;;  %v1482_v7 = vadd.f32 %v1433_v15, %v1196_v10 }
 0x22f   : > { %6128 = vmatmul.msk.bf16.gmra.mxu3 %vm224_vm1, %v2419_v45  ;;  %v2420_v45 = vpack.c.bf16 %v2393_v41, %v2392_v29 }
 0x230   : > { %6111 = vmatmul.msk.bf16.gmra.mxu2 %vm224_vm1, %v2133_v53  ;;  %v7612_v60 = vadd.f32 %v1719_v23, %v1482_v7  ;;  %v2134_v53 = vpack.c.bf16 %v2107_v52, %v2106_v39  ;;  %v2109_v39 = vld [vmem:[#allocation2 + $0xb0] sm:$0xff] }
 0x231   : > { %v2394_v52 = vld [vmem:[#allocation2 + $0xa9] sm:$0xff] }
 0x232   : > { %v1436_v4 = vpop.f32.mrf.mxu3  ;;  %v7615_v54 = vpop.f32.mrf.mxu1 }
 0x233   : > { %v1724_v27 = vpop.f32.mrf.mxu0  ;;  %v1150_v35 = vpop.f32.mrf.mxu2 }
 0x234   : > { %v1197_v31 = vadd.f32 %v1150_v35, %v7315_v43 }
 0x236   : > { %v1483_v57 = vadd.f32 %v1436_v4, %v1197_v31 }
 0x238   : > { %v1769_v14 = vadd.f32 %v1722_v37, %v1483_v57 }
 0x23a   : > { %v7617_v17 = vadd.f32 %v2008_v44, %v1769_v14  ;;  %v1438_v15 = vpop.f32.mrf.mxu3  ;;  %v2013_v7 = vpop.f32.mrf.mxu1  ;;  %v2108_v14 = vld [vmem:[#allocation2 + $0xa8] sm:$0xff] }
 0x23b   : > { %v1727_v34 = vpop.f32.mrf.mxu0  ;;  %v1152_v10 = vpop.f32.mrf.mxu2 }
 0x23c   : > { %v1198_v23 = vadd.f32 %v1152_v10, %v7325_v12 }
 0x23e   : > { %6146 = vmatmul.msk.bf16.gmra.mxu0 %vm224_vm1, %v7341_v32  ;;  %v1484_v43 = vadd.f32 %v1438_v15, %v1198_v23  ;;  %v2395_v32 = vld [vmem:[#allocation2 + $0xb1] sm:$0xff]  ;;  %v8607_v23 = vld [vmem:[#allocation8_spill] sm:$0xff] }
 0x23f   : > { %6129 = vmatmul.msk.bf16.gmra.mxu3 %vm224_vm1, %v2420_v45  ;;  %v2421_v45 = vpack.c.bf16 %v2395_v32, %v2394_v52  ;;  %v2110_v32 = vld [vmem:[#allocation2 + $0xc0] sm:$0xff] }
 0x240   : > { %6112 = vmatmul.msk.bf16.gmra.mxu2 %vm224_vm1, %v2134_v53  ;;  %v7624_v37 = vadd.f32 %v1724_v27, %v1484_v43  ;;  %v2135_v53 = vpack.c.bf16 %v2109_v39, %v2108_v14  ;;  %v8608_v43 = vld [vmem:[#allocation10_spill] sm:$0xff] }
 0x242   : > { %v1441_v31 = vpop.f32.mrf.mxu3  ;;  %v7627_v12 = vpop.f32.mrf.mxu1 }
 0x243   : > { %v1729_v44 = vpop.f32.mrf.mxu0  ;;  %v1155_v28 = vpop.f32.mrf.mxu2  ;;  %8605 = vst [vmem:[#allocation17_spill] sm:$0xff] %v7627_v12 }
 0x244   : > { %v1199_v35 = vadd.f32 %v1155_v28, %v7337_v36 }
 0x246   : > { %v1485_v4 = vadd.f32 %v1441_v31, %v1199_v35 }
 0x248   : > { %v1771_v57 = vadd.f32 %v1727_v34, %v1485_v4  ;;  %v6580_v34 = vld [vmem:[%s8589_s3] sm:$0xff]  ;;  %v8610_v4 = vld [vmem:[#allocation9_spill] sm:$0xff] }
 0x249   : > { %3294 = vmatpush.bf16.msra.mxu1 %v6580_v34 }
 0x24a   : > { %v7629_v29 = vadd.f32 %v2013_v7, %v1771_v57  ;;  %v1443_v15 = vpop.f32.mrf.mxu3  ;;  %v2018_v28 = vpop.f32.mrf.mxu1 }
 0x24b   : > { %v1732_v41 = vpop.f32.mrf.mxu0  ;;  %v1157_v10 = vpop.f32.mrf.mxu2 }
 0x24c   : > { %8606 = vst [vmem:[#allocation18_spill] sm:$0xff] %v7629_v29  ;;  %v1200_v27 = vadd.f32 %v1157_v10, %v8607_v23  ;;  %v2111_v23 = vld [vmem:[#allocation2 + $0xc8] sm:$0xff] }
 0x24d   : > { %v2136_v12 = vpack.c.bf16 %v2111_v23, %v2110_v32  ;;  %v8614_v29 = vld [vmem:[#allocation13_spill] sm:$0xff] }
 0x24e   : > { %6147 = vmatmul.msk.bf16.gmra.mxu0 %vm224_vm1, %v8608_v43  ;;  %v1486_v36 = vadd.f32 %v1443_v15, %v1200_v27  ;;  %v2396_v27 = vld [vmem:[#allocation2 + $0xc1] sm:$0xff]  ;;  %v2397_v15 = vld [vmem:[#allocation2 + $0xc9] sm:$0xff] }
 0x24f   : > { %6130 = vmatmul.msk.bf16.gmra.mxu3 %vm224_vm1, %v2421_v45 }
 0x250   : > { %6113 = vmatmul.msk.bf16.gmra.mxu2 %vm224_vm1, %v2135_v53  ;;  %v7639_v7 = vadd.f32 %v1729_v44, %v1486_v36  ;;  %v8613_v44 = vld [vmem:[#allocation11_spill] sm:$0xff] }
 0x252   : > { %8609 = vst [vmem:[#allocation8_spill] sm:$0xff] %v7639_v7  ;;  %v1446_v14 = vpop.f32.mrf.mxu3  ;;  %v7642_v10 = vpop.f32.mrf.mxu1  ;;  %v2422_v7 = vpack.c.bf16 %v2397_v15, %v2396_v27  ;;  %v2112_v27 = vld [vmem:[#allocation2 + $0xd8] sm:$0xff]  ;;  %v6699_v15 = vld [vmem:[#allocation3] sm:$0xff] }
 0x253   : > { %v1734_v35 = vpop.f32.mrf.mxu0  ;;  %v1160_v31 = vpop.f32.mrf.mxu2  ;;  %8611 = vst [vmem:[#allocation10_spill] sm:$0xff] %v7642_v10 }
 0x254   : > { %v1201_v57 = vadd.f32 %v1160_v31, %v8610_v4 }
 0x256   : > { %v1487_v39 = vadd.f32 %v1446_v14, %v1201_v57  ;;  %v6595_v14 = vld [vmem:[%s8589_s3 + $0x78] sm:$0xff] }
 0x257   : > { %3585 = vmatpush.bf16.msrb.mxu2 %v6595_v14 }
 0x258   : > { %v1773_v52 = vadd.f32 %v1732_v41, %v1487_v39  ;;  %v8616_v39 = vld [vmem:[#allocation12_spill] sm:$0xff] }
 0x25a   : > { %v7644_v43 = vadd.f32 %v2018_v28, %v1773_v52  ;;  %v1448_v34 = vpop.f32.mrf.mxu3  ;;  %v2023_v4 = vpop.f32.mrf.mxu1 }
 0x25b   : > { %v1737_v53 = vpop.f32.mrf.mxu0  ;;  %v1162_v45 = vpop.f32.mrf.mxu2 }
 0x25c   : > { %8612 = vst [vmem:[#allocation9_spill] sm:$0xff] %v7644_v43  ;;  %v1202_v36 = vadd.f32 %v1162_v45, %v8613_v44  ;;  %v2113_v45 = vld [vmem:[#allocation2 + $0xe0] sm:$0xff] }
 0x25d   : > { %v2137_v43 = vpack.c.bf16 %v2113_v45, %v2112_v27  ;;  %v2400_v45 = vld [vmem:[#allocation2 + $0xf1] sm:$0xff] }
 0x25e   : > { %6148 = vmatmul.msk.bf16.gmra.mxu0 %vm224_vm1, %v8614_v29  ;;  %v1488_v31 = vadd.f32 %v1448_v34, %v1202_v36 }
 0x25f   : > { %6131 = vmatmul.msk.bf16.gmra.mxu3 %vm224_vm1, %v2422_v7  ;;  %v2398_v7 = vld [vmem:[#allocation2 + $0xd9] sm:$0xff] }
 0x260   : > { %6114 = vmatmul.msk.bf16.gmra.mxu2 %vm224_vm1, %v2136_v12  ;;  %v7651_v41 = vadd.f32 %v1734_v35, %v1488_v31  ;;  %v3175_v12 = vpack.c.bf16 %v6699_v15, %v6699_v15  ;;  %v2399_v35 = vld [vmem:[#allocation2 + $0xe1] sm:$0xff]  ;;  %v8617_v31 = vld [vmem:[#allocation14_spill] sm:$0xff]  ;;  %v6611_v15 = vld [vmem:[%s8589_s3 + $0xf8] sm:$0xff] }
 0x261   : > { %4181 = vmatpush.bf16.msrb.mxu0 %v6611_v15 }
 0x262   : > { %8615 = vst [vmem:[#allocation11_spill] sm:$0xff] %v7651_v41  ;;  %v1451_v32 = vpop.f32.mrf.mxu3  ;;  %3295 = vmatmul.bf16.vlgmr.msra.gmra.mxu1 %v3175_v12  ;;  %v7663_v14 = vpop.f32.mrf.mxu1  ;;  %v2115_v12 = vld [vmem:[#allocation2 + $0xf8] sm:$0xff] }
 0x263   : > { %v1739_v28 = vpop.f32.mrf.mxu0  ;;  %v1165_v57 = vpop.f32.mrf.mxu2 }
 0x264   : > { %v1203_v52 = vadd.f32 %v1165_v57, %v8616_v39  ;;  %v2423_v57 = vpack.c.bf16 %v2399_v35, %v2398_v7  ;;  %v2401_v7 = vld [vmem:[#allocation2 + $0xf9] sm:$0xff] }
 0x266   : > { %v1489_v23 = vadd.f32 %v1451_v32, %v1203_v52 }
 0x268   : > { %v1775_v29 = vadd.f32 %v1737_v53, %v1489_v23  ;;  %v6603_v53 = vld [vmem:[%s8589_s3 + $0xb8] sm:$0xff] }
 0x269   : > { %3883 = vmatpush.bf16.msrb.mxu3 %v6603_v53  ;;  %v8618_v23 = vld [vmem:[#allocation15_spill] sm:$0xff] }
 0x26a   : > { %v7657_v44 = vadd.f32 %v2023_v4, %v1775_v29  ;;  %v1453_v41 = vpop.f32.mrf.mxu3 }
 0x26b   : > { %v1742_v36 = vpop.f32.mrf.mxu0  ;;  %v1167_v34 = vpop.f32.mrf.mxu2 }
 0x26c   : > { %v1204_v10 = vadd.f32 %v1167_v34, %v8617_v31 }
 0x26e   : > { %6149 = vmatmul.msk.bf16.gmra.mxu0 %vm224_vm1, %v7410_v9  ;;  %v1490_v39 = vadd.f32 %v1453_v41, %v1204_v10  ;;  %v6619_v9 = vld [vmem:[%s8589_s3 + $0x138] sm:$0xff] }
 0x26f   : > { %6132 = vmatmul.msk.bf16.gmra.mxu3 %vm224_vm1, %v2423_v57  ;;  %4479 = vmatpush.bf16.msrb.mxu1 %v6619_v9  ;;  %v8619_v57 = vld [vmem:[#allocation16_spill] sm:$0xff] }
 0x270   : > { %6115 = vmatmul.msk.bf16.gmra.mxu2 %vm224_vm1, %v2137_v43  ;;  %v7669_v4 = vadd.f32 %v1739_v28, %v1490_v39  ;;  %v2028_v43 = vpop.f32.mrf.mxu1  ;;  %v2114_v28 = vld [vmem:[#allocation2 + $0xf0] sm:$0xff] }
 0x272   : > { %v1456_v27 = vpop.f32.mrf.mxu3 }
 0x273   : > { %v1744_v52 = vpop.f32.mrf.mxu0  ;;  %v1170_v32 = vpop.f32.mrf.mxu2 }
 0x274   : > { %v1205_v29 = vadd.f32 %v1170_v32, %v8618_v23  ;;  %v2138_v32 = vpack.c.bf16 %v2115_v12, %v2114_v28  ;;  %v2424_v23 = vpack.c.bf16 %v2401_v7, %v2400_v45  ;;  %v2117_v12 = vld [vmem:[#allocation2 + $0x110] sm:$0xff] }
 0x275   : > { %v2402_v45 = vld [vmem:[#allocation2 + $0x109] sm:$0xff]  ;;  %v2403_v7 = vld [vmem:[#allocation2 + $0x111] sm:$0xff] }
 0x276   : > { %v1491_v10 = vadd.f32 %v1456_v27, %v1205_v29 }
 0x278   : > { %v1777_v41 = vadd.f32 %v1742_v36, %v1491_v10 }
 0x27a   : > { %v7678_v35 = vadd.f32 %v2028_v43, %v1777_v41  ;;  %v1458_v39 = vpop.f32.mrf.mxu3  ;;  %v6594_v43 = vld [vmem:[%s8589_s3 + $0x70] sm:$0xff] }
 0x27b   : > { %v2812_v34 = vpop.f32.mrf.mxu0  ;;  %v1172_v31 = vpop.f32.mrf.mxu2  ;;  %3586 = vmatpush.bf16.msrb.mxu2 %v6594_v43 }
 0x27c   : > { %v1206_v53 = vadd.f32 %v1172_v31, %v8619_v57 }
 0x27e   : > { %6150 = vmatmul.msk.bf16.gmra.mxu0 %vm224_vm1, %v7429_v51  ;;  %v1492_v29 = vadd.f32 %v1458_v39, %v1206_v53  ;;  %v2116_v51 = vld [vmem:[#allocation2 + $0x108] sm:$0xff] }
 0x27f   : > { %6133 = vmatmul.msk.bf16.gmra.mxu3 %vm224_vm1, %v2424_v23  ;;  %v6602_v23 = vld [vmem:[%s8589_s3 + $0xb0] sm:$0xff] }
 0x280   : > { %6116 = vmatmul.msk.bf16.gmra.mxu2 %vm224_vm1, %v2138_v32  ;;  %v7685_v36 = vadd.f32 %v1744_v52, %v1492_v29  ;;  %v2425_v32 = vpack.c.bf16 %v2403_v7, %v2402_v45  ;;  %3884 = vmatpush.bf16.msrb.mxu3 %v6602_v23  ;;  %v2119_v45 = vld [vmem:[#allocation2 + $0x128] sm:$0xff] }
 0x281   : > { %v2404_v7 = vld [vmem:[#allocation2 + $0x121] sm:$0xff] }
 0x282   : > { %v2526_v10 = vpop.f32.mrf.mxu3 }
 0x283   : > { %v2814_v27 = vpop.f32.mrf.mxu0  ;;  %v2240_v15 = vpop.f32.mrf.mxu2 }
 0x284   : > { %v2320_v9 = vadd.f32 %v2240_v15, %v7427_v26  ;;  %v2139_v26 = vpack.c.bf16 %v2117_v12, %v2116_v51  ;;  %v2118_v12 = vld [vmem:[#allocation2 + $0x120] sm:$0xff] }
 0x286   : > { %v2606_v41 = vadd.f32 %v2526_v10, %v2320_v9 }
 0x288   : > { %v2892_v28 = vadd.f32 %v2812_v34, %v2606_v41  ;;  %v6610_v41 = vld [vmem:[%s8589_s3 + $0xf0] sm:$0xff] }
 0x289   : > { %4182 = vmatpush.bf16.msrb.mxu0 %v6610_v41 }
 0x28a   : > { %v2988_v31 = vmax.f32 %v2892_v28, 0.0  ;;  %v2528_v39 = vpop.f32.mrf.mxu3 }
 0x28b   : > { %v2817_v57 = vpop.f32.mrf.mxu0  ;;  %v2242_v52 = vpop.f32.mrf.mxu2 }
 0x28c   : > { %3075 = vst [vmem:[#allocation3 + $0x19] sm:$0xff] %v2988_v31  ;;  %v2321_v53 = vadd.f32 %v2242_v52, %v7442_v1  ;;  %v2405_v52 = vld [vmem:[#allocation2 + $0x129] sm:$0xff] }
 0x28e   : > { %6151 = vmatmul.msk.bf16.gmra.mxu0 %vm224_vm1, %v7447_v25  ;;  %v2607_v34 = vadd.f32 %v2528_v39, %v2321_v53  ;;  %v6618_v25 = vld [vmem:[%s8589_s3 + $0x130] sm:$0xff] }
 0x28f   : > { %6134 = vmatmul.msk.bf16.gmra.mxu3 %vm224_vm1, %v2425_v32  ;;  %4480 = vmatpush.bf16.msrb.mxu1 %v6618_v25 }
 0x290   : > { %v2893_v29 = vadd.f32 %v2814_v27, %v2607_v34  ;;  %6117 = vmatmul.msk.bf16.gmra.mxu2 %vm224_vm1, %v2139_v26 }
 0x292   : > { %v2989_v15 = vmax.f32 %v2893_v29, 0.0  ;;  %v2531_v43 = vpop.f32.mrf.mxu3 }
 0x293   : > { %v2819_v9 = vpop.f32.mrf.mxu0  ;;  %v2245_v1 = vpop.f32.mrf.mxu2  ;;  %v3145_v26 = vld [vmem:[#allocation3 + $0x18] sm:$0xff] }
 0x294   : > { %3076 = vst [vmem:[#allocation3 + $0x21] sm:$0xff] %v2989_v15  ;;  %v2322_v10 = vadd.f32 %v2245_v1, %v7445_v46  ;;  %v7706_v27 = vpack.c.bf16 %v2989_v15, %v2988_v31  ;;  %v2140_v31 = vpack.c.bf16 %v2119_v45, %v2118_v12  ;;  %v2426_v15 = vpack.c.bf16 %v2405_v52, %v2404_v7  ;;  %v2120_v12 = vld [vmem:[#allocation2 + $0x138] sm:$0xff]  ;;  %v2121_v45 = vld [vmem:[#allocation2 + $0x140] sm:$0xff] }
 0x295   : > { %v2406_v7 = vld [vmem:[#allocation2 + $0x139] sm:$0xff]  ;;  %v2407_v52 = vld [vmem:[#allocation2 + $0x141] sm:$0xff] }
 0x296   : > { %v2608_v28 = vadd.f32 %v2531_v43, %v2322_v10 }
 0x298   : > { %v2894_v51 = vadd.f32 %v2817_v57, %v2608_v28  ;;  %v6593_v28 = vld [vmem:[%s8589_s3 + $0x68] sm:$0xff] }
 0x299   : > { %3587 = vmatpush.bf16.msrb.mxu2 %v6593_v28 }
 0x29a   : > { %v2990_v46 = vmax.f32 %v2894_v51, 0.0  ;;  %v2533_v34 = vpop.f32.mrf.mxu3 }
 0x29b   : > { %v2822_v53 = vpop.f32.mrf.mxu0  ;;  %v2247_v39 = vpop.f32.mrf.mxu2  ;;  %v3146_v32 = vld [vmem:[#allocation3 + $0x20] sm:$0xff] }
 0x29c   : > { %3077 = vst [vmem:[#allocation3 + $0x31] sm:$0xff] %v2990_v46  ;;  %v2323_v23 = vadd.f32 %v2247_v39, %v7458_v47  ;;  %v7709_v29 = vpack.c.bf16 %v3146_v32, %v3145_v26 }
 0x29e   : > { %6152 = vmatmul.msk.bf16.gmra.mxu0 %vm224_vm1, %v7463_v24  ;;  %v2609_v57 = vadd.f32 %v2533_v34, %v2323_v23  ;;  %3300 = vmatmul.bf16.gmra.mxu1 %v7709_v29 }
 0x29f   : > { %6135 = vmatmul.msk.bf16.gmra.mxu3 %vm224_vm1, %v2426_v15 }
 0x2a0   : > { %v2895_v1 = vadd.f32 %v2819_v9, %v2609_v57  ;;  %6118 = vmatmul.msk.bf16.gmra.mxu2 %vm224_vm1, %v2140_v31  ;;  %v2427_v57 = vpack.c.bf16 %v2407_v52, %v2406_v7  ;;  %v2123_v7 = vld [vmem:[#allocation2 + $0x158] sm:$0xff] }
 0x2a1   : > { %v2408_v52 = vld [vmem:[#allocation2 + $0x151] sm:$0xff] }
 0x2a2   : > { %v2991_v10 = vmax.f32 %v2895_v1, 0.0  ;;  %v2536_v25 = vpop.f32.mrf.mxu3 }
 0x2a3   : > { %v2824_v43 = vpop.f32.mrf.mxu0  ;;  %v2250_v41 = vpop.f32.mrf.mxu2  ;;  %v3147_v23 = vld [vmem:[#allocation3 + $0x30] sm:$0xff] }
 0x2a4   : > { %3078 = vst [vmem:[#allocation3 + $0x39] sm:$0xff] %v2991_v10  ;;  %v2324_v47 = vadd.f32 %v2250_v41, %v7461_v19  ;;  %v7720_v24 = vpack.c.bf16 %v2991_v10, %v2990_v46  ;;  %v2141_v46 = vpack.c.bf16 %v2121_v45, %v2120_v12  ;;  %v2122_v45 = vld [vmem:[#allocation2 + $0x150] sm:$0xff] }
 0x2a6   : > { %v2610_v51 = vadd.f32 %v2536_v25, %v2324_v47 }
 0x2a8   : > { %v2896_v9 = vadd.f32 %v2822_v53, %v2610_v51  ;;  %v6601_v53 = vld [vmem:[%s8589_s3 + $0xa8] sm:$0xff] }
 0x2a9   : > { %3885 = vmatpush.bf16.msrb.mxu3 %v6601_v53  ;;  %v6617_v51 = vld [vmem:[%s8589_s3 + $0x128] sm:$0xff] }
 0x2aa   : > { %v2992_v39 = vmax.f32 %v2896_v9, 0.0  ;;  %v2538_v31 = vpop.f32.mrf.mxu3  ;;  %4481 = vmatpush.bf16.msrb.mxu1 %v6617_v51 }
 0x2ab   : > { %v2827_v26 = vpop.f32.mrf.mxu0  ;;  %v2252_v32 = vpop.f32.mrf.mxu2  ;;  %v3148_v34 = vld [vmem:[#allocation3 + $0x38] sm:$0xff] }
 0x2ac   : > { %3079 = vst [vmem:[#allocation3 + $0x49] sm:$0xff] %v2992_v39  ;;  %v2325_v19 = vadd.f32 %v2252_v32, %v7477_v63  ;;  %v7723_v15 = vpack.c.bf16 %v3148_v34, %v3147_v23  ;;  %v2409_v32 = vld [vmem:[#allocation2 + $0x159] sm:$0xff] }
 0x2ae   : > { %6153 = vmatmul.msk.bf16.gmra.mxu0 %vm224_vm1, %v7482_v0  ;;  %v2611_v1 = vadd.f32 %v2538_v31, %v2325_v19  ;;  %3305 = vmatmul.bf16.gmra.mxu1 %v7723_v15  ;;  %v6609_v0 = vld [vmem:[%s8589_s3 + $0xe8] sm:$0xff] }
 0x2af   : > { %6136 = vmatmul.msk.bf16.gmra.mxu3 %vm224_vm1, %v2427_v57  ;;  %4183 = vmatpush.bf16.msrb.mxu0 %v6609_v0  ;;  %v6592_v0 = vld [vmem:[%s8589_s3 + $0x60] sm:$0xff] }
 0x2b0   : > { %v2897_v10 = vadd.f32 %v2824_v43, %v2611_v1  ;;  %6119 = vmatmul.msk.bf16.gmra.mxu2 %vm224_vm1, %v2141_v46  ;;  %v2428_v1 = vpack.c.bf16 %v2409_v32, %v2408_v52  ;;  %v6608_v52 = vld [vmem:[%s8589_s3 + $0xe0] sm:$0xff] }
 0x2b1   : > { %3588 = vmatpush.bf16.msrb.mxu2 %v6592_v0 }
 0x2b2   : > { %v2993_v63 = vmax.f32 %v2897_v10, 0.0  ;;  %v2541_v28 = vpop.f32.mrf.mxu3 }
 0x2b3   : > { %v2829_v41 = vpop.f32.mrf.mxu0  ;;  %v2255_v47 = vpop.f32.mrf.mxu2  ;;  %v3149_v19 = vld [vmem:[#allocation3 + $0x48] sm:$0xff]  ;;  %4184 = vmatpush.bf16.msrb.mxu0 %v6608_v52 }
 0x2b4   : > { %3080 = vst [vmem:[#allocation3 + $0x51] sm:$0xff] %v2993_v63  ;;  %v2326_v25 = vadd.f32 %v2255_v47, %v7480_v16  ;;  %v7740_v43 = vpack.c.bf16 %v2993_v63, %v2992_v39  ;;  %v2142_v39 = vpack.c.bf16 %v2123_v7, %v2122_v45  ;;  %v2410_v45 = vld [vmem:[#allocation2 + $0x169] sm:$0xff]  ;;  %v2411_v7 = vld [vmem:[#allocation2 + $0x171] sm:$0xff] }
 0x2b6   : > { %v2612_v9 = vadd.f32 %v2541_v28, %v2326_v25 }
 0x2b8   : > { %v2898_v12 = vadd.f32 %v2827_v26, %v2612_v9  ;;  %v2124_v9 = vld [vmem:[#allocation2 + $0x168] sm:$0xff] }
 0x2ba   : > { %v2994_v16 = vmax.f32 %v2898_v12, 0.0  ;;  %v2543_v57 = vpop.f32.mrf.mxu3  ;;  %v2125_v12 = vld [vmem:[#allocation2 + $0x170] sm:$0xff] }
 0x2bb   : > { %v2832_v23 = vpop.f32.mrf.mxu0  ;;  %v2257_v34 = vpop.f32.mrf.mxu2  ;;  %v3150_v31 = vld [vmem:[#allocation3 + $0x50] sm:$0xff] }
 0x2bc   : > { %3081 = vst [vmem:[#allocation3 + $0x61] sm:$0xff] %v2994_v16  ;;  %v2327_v46 = vadd.f32 %v2257_v34, %v7493_v48  ;;  %v7743_v53 = vpack.c.bf16 %v3150_v31, %v3149_v19 }
 0x2be   : > { %6154 = vmatmul.msk.bf16.gmra.mxu0 %vm224_vm1, %v7504_v21  ;;  %v2613_v26 = vadd.f32 %v2543_v57, %v2327_v46  ;;  %3310 = vmatmul.bf16.gmra.mxu1 %v7743_v53 }
 0x2bf   : > { %6137 = vmatmul.msk.bf16.gmra.mxu3 %vm224_vm1, %v2428_v1  ;;  %v2429_v1 = vpack.c.bf16 %v2411_v7, %v2410_v45  ;;  %v6598_v7 = vld [vmem:[%s8589_s3 + $0x90] sm:$0xff] }
 0x2c0   : > { %v2899_v10 = vadd.f32 %v2829_v41, %v2613_v26  ;;  %6120 = vmatmul.msk.bf16.gmra.mxu2 %vm224_vm1, %v2142_v39  ;;  %v2143_v39 = vpack.c.bf16 %v2125_v12, %v2124_v9  ;;  %v6600_v26 = vld [vmem:[%s8589_s3 + $0xa0] sm:$0xff]  ;;  %v6605_v12 = vld [vmem:[%s8589_s3 + $0xc8] sm:$0xff] }
 0x2c1   : > { %3886 = vmatpush.bf16.msrb.mxu3 %v6600_v26  ;;  %v6597_v26 = vld [vmem:[%s8589_s3 + $0x88] sm:$0xff] }
 0x2c2   : > { %v2995_v63 = vmax.f32 %v2899_v10, 0.0  ;;  %v2546_v28 = vpop.f32.mrf.mxu3 }
 0x2c3   : > { %v2834_v47 = vpop.f32.mrf.mxu0  ;;  %v2260_v25 = vpop.f32.mrf.mxu2  ;;  %v3151_v31 = vld [vmem:[#allocation3 + $0x60] sm:$0xff] }
 0x2c4   : > { %3082 = vst [vmem:[#allocation3 + $0x69] sm:$0xff] %v2995_v63  ;;  %v2328_v48 = vadd.f32 %v2260_v25, %v7502_v22  ;;  %v7754_v21 = vpack.c.bf16 %v2995_v63, %v2994_v16  ;;  %v2042_v22 = vadd.f32 %v7498_v58, %v7518_v38  ;;  %v6607_v58 = vld [vmem:[%s8589_s3 + $0xd8] sm:$0xff]  ;;  %v6606_v63 = vld [vmem:[%s8589_s3 + $0xd0] sm:$0xff] }
 0x2c5   : > { %4185 = vmatpush.bf16.msrb.mxu0 %v6607_v58 }
 0x2c6   : > { %v2614_v51 = vadd.f32 %v2546_v28, %v2328_v48 }
 0x2c8   : > { %v2900_v41 = vadd.f32 %v2832_v23, %v2614_v51 }
 0x2c9   : > { %4186 = vmatpush.bf16.msrb.mxu0 %v6606_v63  ;;  %v6588_v63 = vld [vmem:[%s8589_s3 + $0x40] sm:$0xff] }
 0x2ca   : > { %v2996_v32 = vmax.f32 %v2900_v41, 0.0  ;;  %v2548_v23 = vpop.f32.mrf.mxu3  ;;  %v6616_v41 = vld [vmem:[%s8589_s3 + $0x120] sm:$0xff] }
 0x2cb   : > { %v2837_v34 = vpop.f32.mrf.mxu0  ;;  %v2262_v19 = vpop.f32.mrf.mxu2  ;;  %v3152_v16 = vld [vmem:[#allocation3 + $0x68] sm:$0xff]  ;;  %4482 = vmatpush.bf16.msrb.mxu1 %v6616_v41 }
 0x2cc   : > { %3083 = vst [vmem:[#allocation3 + $0x79] sm:$0xff] %v2996_v32  ;;  %v2329_v46 = vadd.f32 %v2262_v19, %v2042_v22  ;;  %v7761_v57 = vpack.c.bf16 %v3152_v16, %v3151_v31  ;;  %v2412_v22 = vld [vmem:[#allocation2 + $0x181] sm:$0xff]  ;;  %v2044_v31 = vadd.f32 %v7521_v42, %v7536_v61 }
 0x2cd   : > { %4187 = vmatpush.bf16.msrb.mxu0 %v6605_v12  ;;  %v6604_v19 = vld [vmem:[%s8589_s3 + $0xc0] sm:$0xff] }
 0x2ce   : > { %6155 = vmatmul.msk.bf16.gmra.mxu0 %vm224_vm1, %v7525_v55  ;;  %v2615_v38 = vadd.f32 %v2548_v23, %v2329_v46  ;;  %3315 = vmatmul.bf16.gmra.mxu1 %v7761_v57  ;;  %v6591_v55 = vld [vmem:[%s8589_s3 + $0x58] sm:$0xff] }
 0x2cf   : > { %6138 = vmatmul.msk.bf16.gmra.mxu3 %vm224_vm1, %v2429_v1  ;;  %3589 = vmatpush.bf16.msrb.mxu2 %v6591_v55 }
 0x2d0   : > { %v2901_v10 = vadd.f32 %v2834_v47, %v2615_v38  ;;  %6121 = vmatmul.msk.bf16.gmra.mxu2 %vm224_vm1, %v2143_v39  ;;  %v6599_v47 = vld [vmem:[%s8589_s3 + $0x98] sm:$0xff] }
 0x2d1   : > { %3887 = vmatpush.bf16.msrb.mxu3 %v6599_v47  ;;  %4188 = vmatpush.bf16.msrb.mxu0 %v6604_v19 }
 0x2d2   : > { %v2997_v25 = vmax.f32 %v2901_v10, 0.0  ;;  %v2551_v51 = vpop.f32.mrf.mxu3 }
 0x2d3   : > { %v2839_v48 = vpop.f32.mrf.mxu0  ;;  %v2265_v28 = vpop.f32.mrf.mxu2  ;;  %v3153_v46 = vld [vmem:[#allocation3 + $0x78] sm:$0xff] }
 0x2d4   : > { %3084 = vst [vmem:[#allocation3 + $0x81] sm:$0xff] %v2997_v25  ;;  %v2330_v0 = vadd.f32 %v2265_v28, %v7523_v3  ;;  %v7787_v9 = vpack.c.bf16 %v2997_v25, %v2996_v32  ;;  %v6590_v3 = vld [vmem:[%s8589_s3 + $0x50] sm:$0xff]  ;;  %v6596_v25 = vld [vmem:[%s8589_s3 + $0x80] sm:$0xff] }
 0x2d5   : > { %v2413_v32 = vld [vmem:[#allocation2 + $0x189] sm:$0xff]  ;;  %3590 = vmatpush.bf16.msrb.mxu2 %v6590_v3  ;;  %3888 = vmatpush.bf16.msrb.mxu3 %v6598_v7  ;;  %v2128_v7 = vld [vmem:[#allocation2 + $0x198] sm:$0xff] }
 0x2d6   : > { %v2616_v45 = vadd.f32 %v2551_v51, %v2330_v0  ;;  %v2430_v42 = vpack.c.bf16 %v2413_v32, %v2412_v22  ;;  %v2701_v3 = vld [vmem:[#allocation2 + $0x1a2] sm:$0xff]  ;;  %v2046_v32 = vadd.f32 %v7539_v62, %v7558_v40 }
 0x2d7   : > { %v2415_v22 = vld [vmem:[#allocation2 + $0x1a1] sm:$0xff] }
 0x2d8   : > { %v2902_v52 = vadd.f32 %v2837_v34, %v2616_v45  ;;  %v6589_v34 = vld [vmem:[%s8589_s3 + $0x48] sm:$0xff]  ;;  %v2700_v45 = vld [vmem:[#allocation2 + $0x19a] sm:$0xff] }
 0x2d9   : > { %3591 = vmatpush.bf16.msrb.mxu2 %v6589_v34  ;;  %3889 = vmatpush.bf16.msrb.mxu3 %v6597_v26 }
 0x2da   : > { %v2998_v16 = vmax.f32 %v2902_v52, 0.0  ;;  %v2553_v38 = vpop.f32.mrf.mxu3  ;;  %v2129_v52 = vld [vmem:[#allocation2 + $0x1a0] sm:$0xff] }
 0x2db   : > { %v2842_v23 = vpop.f32.mrf.mxu0  ;;  %v2267_v39 = vpop.f32.mrf.mxu2  ;;  %v3154_v1 = vld [vmem:[#allocation3 + $0x80] sm:$0xff] }
 0x2dc   : > { %3085 = vst [vmem:[#allocation3 + $0x91] sm:$0xff] %v2998_v16  ;;  %v2331_v58 = vadd.f32 %v2267_v39, %v2044_v31  ;;  %v7809_v10 = vpack.c.bf16 %v3154_v1, %v3153_v46  ;;  %v2717_v31 = vpack.c.bf16 %v2701_v3, %v2700_v45  ;;  %v3739_v45 = vld [vmem:[#allocation3 + $0xa] sm:$0xff]  ;;  %v2048_v3 = vadd.f32 %v7561_v13, %v7570_v20  ;;  %v7846_v13 = vpop.f32.mrf.mxu1 }
 0x2dd   : > { %3592 = vmatpush.bf16.msrb.mxu2 %v6588_v63  ;;  %3890 = vmatpush.bf16.msrb.mxu3 %v6596_v25 }
 0x2de   : > { %6156 = vmatmul.msk.bf16.gmra.mxu0 %vm224_vm1, %v7543_v49  ;;  %v2617_v61 = vadd.f32 %v2553_v38, %v2331_v58  ;;  %3320 = vmatmul.bf16.gmra.mxu1 %v7809_v10  ;;  %v2145_v58 = vpack.c.bf16 %v2129_v52, %v2128_v7 }
 0x2df   : > { %6139 = vmatmul.msk.bf16.gmra.mxu3 %vm224_vm1, %v2430_v42 }
 0x2e0   : > { %v2903_v28 = vadd.f32 %v2839_v48, %v2617_v61  ;;  %6122 = vmatmul.msk.bf16.gmra.mxu2 %vm224_vm1, %v7546_v5  ;;  %v2414_v5 = vld [vmem:[#allocation2 + $0x199] sm:$0xff] }
 0x2e2   : > { %v2999_v49 = vmax.f32 %v2903_v28, 0.0  ;;  %v2556_v51 = vpop.f32.mrf.mxu3  ;;  %v6615_v28 = vld [vmem:[%s8589_s3 + $0x118] sm:$0xff] }
 0x2e3   : > { %v2844_v55 = vpop.f32.mrf.mxu0  ;;  %v2270_v47 = vpop.f32.mrf.mxu2  ;;  %v3155_v1 = vld [vmem:[#allocation3 + $0x90] sm:$0xff]  ;;  %4483 = vmatpush.bf16.msrb.mxu1 %v6615_v28 }
 0x2e4   : > { %3086 = vst [vmem:[#allocation3 + $0x99] sm:$0xff] %v2999_v49  ;;  %v2332_v0 = vadd.f32 %v2270_v47, %v7541_v30  ;;  %v7824_v41 = vpack.c.bf16 %v2999_v49, %v2998_v16 }
 0x2e6   : > { %v2618_v12 = vadd.f32 %v2556_v51, %v2332_v0  ;;  %v3440_v0 = vld [vmem:[#allocation3 + $0x1] sm:$0xff]  ;;  %v3441_v51 = vld [vmem:[#allocation3 + $0x9] sm:$0xff] }
 0x2e8   : > { %v2904_v48 = vadd.f32 %v2842_v23, %v2618_v12  ;;  %v2431_v23 = vpack.c.bf16 %v2415_v22, %v2414_v5  ;;  %v3738_v12 = vld [vmem:[#allocation3 + $0x2] sm:$0xff] }
 0x2ea   : > { %v3000_v19 = vmax.f32 %v2904_v48, 0.0  ;;  %v2558_v34 = vpop.f32.mrf.mxu3 }
 0x2eb   : > { %v2847_v46 = vpop.f32.mrf.mxu0  ;;  %v2272_v39 = vpop.f32.mrf.mxu2  ;;  %v3156_v30 = vld [vmem:[#allocation3 + $0x98] sm:$0xff] }
 0x2ec   : > { %3087 = vst [vmem:[#allocation3 + $0xa9] sm:$0xff] %v3000_v19  ;;  %v2333_v16 = vadd.f32 %v2272_v39, %v2046_v32  ;;  %v7828_v26 = vpack.c.bf16 %v3156_v30, %v3155_v1  ;;  %v3770_v39 = vpack.c.bf16 %v3739_v45, %v3738_v12 }
 0x2ee   : > { %6157 = vmatmul.msk.bf16.gmra.mxu0 %vm224_vm1, %v2717_v31  ;;  %v2619_v38 = vadd.f32 %v2558_v34, %v2333_v16  ;;  %3325 = vmatmul.bf16.gmra.mxu1 %v7828_v26  ;;  %v3472_v31 = vpack.c.bf16 %v3441_v51, %v3440_v0 }
 0x2ef   : > { %6140 = vmatmul.msk.bf16.gmra.mxu3 %vm224_vm1, %v2431_v23 }
 0x2f0   : > { %v2905_v42 = vadd.f32 %v2844_v55, %v2619_v38  ;;  %6123 = vmatmul.msk.bf16.gmra.mxu2 %vm224_vm1, %v2145_v58 }
 0x2f2   : > { %v3001_v62 = vmax.f32 %v2905_v42, 0.0  ;;  %v2561_v25 = vpop.f32.mrf.mxu3 }
 0x2f3   : > { %v2849_v40 = vpop.f32.mrf.mxu0  ;;  %v2275_v61 = vpop.f32.mrf.mxu2  ;;  %v3157_v52 = vld [vmem:[#allocation3 + $0xa8] sm:$0xff] }
 0x2f4   : > { %3088 = vst [vmem:[#allocation3 + $0xb1] sm:$0xff] %v3001_v62  ;;  %v2334_v63 = vadd.f32 %v2275_v61, %v7563_v6  ;;  %v7838_v49 = vpack.c.bf16 %v3001_v62, %v3000_v19  ;;  %v3740_v61 = vld [vmem:[#allocation3 + $0x1a] sm:$0xff] }
 0x2f6   : > { %v2620_v47 = vadd.f32 %v2561_v25, %v2334_v63 }
 0x2f8   : > { %v2906_v55 = vadd.f32 %v2847_v46, %v2620_v47 }
 0x2fa   : > { %v3002_v48 = vmax.f32 %v2906_v55, 0.0  ;;  %v2563_v32 = vpop.f32.mrf.mxu3  ;;  %v3741_v55 = vld [vmem:[#allocation3 + $0x22] sm:$0xff] }
 0x2fb   : > { %v2852_v7 = vpop.f32.mrf.mxu0  ;;  %v2277_v6 = vpop.f32.mrf.mxu2  ;;  %v3158_v5 = vld [vmem:[#allocation3 + $0xb0] sm:$0xff] }
 0x2fc   : > { %3089 = vst [vmem:[#allocation3 + $0xc1] sm:$0xff] %v3002_v48  ;;  %v2335_v22 = vadd.f32 %v2277_v6, %v2048_v3  ;;  %v7842_v19 = vpack.c.bf16 %v3158_v5, %v3157_v52 }
 0x2fe   : > { %4189 = vmatmul.bf16.vlgmr.msrb.gmra.mxu0 %v7709_v29  ;;  %v2621_v46 = vadd.f32 %v2563_v32, %v2335_v22  ;;  %3330 = vmatmul.bf16.gmra.mxu1 %v7842_v19  ;;  %v2050_v29 = vadd.f32 %v7573_v56, %v7585_v8  ;;  %v3771_v56 = vpack.c.bf16 %v3741_v55, %v3740_v61 }
 0x2ff   : > { %3891 = vmatmul.bf16.vlgmr.msrb.gmra.mxu3 %v3770_v39  ;;  %v3742_v39 = vld [vmem:[#allocation3 + $0x32] sm:$0xff] }
 0x300   : > { %v2907_v1 = vadd.f32 %v2849_v40, %v2621_v46  ;;  %3593 = vmatmul.bf16.vlgmr.msrb.gmra.mxu2 %v3472_v31  ;;  %v7853_v40 = vpop.f32.mrf.mxu1 }
 0x302   : > { %v3003_v20 = vmax.f32 %v2907_v1, 0.0  ;;  %v2566_v58 = vpop.f32.mrf.mxu3 }
 0x303   : > { %v2854_v30 = vpop.f32.mrf.mxu0  ;;  %v2280_v16 = vpop.f32.mrf.mxu2  ;;  %v3159_v28 = vld [vmem:[#allocation3 + $0xc0] sm:$0xff] }
 0x304   : > { %3090 = vst [vmem:[#allocation3 + $0xc9] sm:$0xff] %v3003_v20  ;;  %v2336_v34 = vadd.f32 %v2280_v16, %v7575_v33  ;;  %v7849_v23 = vpack.c.bf16 %v3003_v20, %v3002_v48 }
 0x306   : > { %v2622_v38 = vadd.f32 %v2566_v58, %v2336_v34 }
 0x308   : > { %v2908_v42 = vadd.f32 %v2852_v7, %v2622_v38  ;;  %v7860_v7 = vpop.f32.mrf.mxu1 }
 0x30a   : > { %v3004_v62 = vmax.f32 %v2908_v42, 0.0  ;;  %v2568_v33 = vpop.f32.mrf.mxu3 }
 0x30b   : > { %v2857_v63 = vpop.f32.mrf.mxu0  ;;  %v2282_v25 = vpop.f32.mrf.mxu2  ;;  %v3160_v47 = vld [vmem:[#allocation3 + $0xc8] sm:$0xff] }
 0x30c   : > { %3091 = vst [vmem:[#allocation3 + $0xd9] sm:$0xff] %v3004_v62  ;;  %v2337_v0 = vadd.f32 %v2282_v25, %v2050_v29  ;;  %v7855_v51 = vpack.c.bf16 %v3160_v47, %v3159_v28 }
 0x30e   : > { %4194 = vmatmul.bf16.gmra.mxu0 %v7723_v15  ;;  %v2623_v12 = vadd.f32 %v2568_v33, %v2337_v0  ;;  %3335 = vmatmul.bf16.gmra.mxu1 %v7855_v51  ;;  %v6614_v15 = vld [vmem:[%s8589_s3 + $0x110] sm:$0xff]  ;;  %v2054_v0 = vadd.f32 %v7600_v50, %v7612_v60 }
 0x30f   : > { %3896 = vmatmul.bf16.gmra.mxu3 %v3771_v56  ;;  %4484 = vmatpush.bf16.msrb.mxu1 %v6614_v15 }
 0x310   : > { %v2909_v8 = vadd.f32 %v2854_v30, %v2623_v12  ;;  %3598 = vmatmul.bf16.gmra.mxu2 %v7706_v27  ;;  %v2052_v27 = vadd.f32 %v7588_v18, %v7597_v59  ;;  %v3744_v12 = vld [vmem:[#allocation3 + $0x4a] sm:$0xff] }
 0x312   : > { %v3005_v45 = vmax.f32 %v2909_v8, 0.0  ;;  %v2571_v52 = vpop.f32.mrf.mxu3 }
 0x313   : > { %v2859_v3 = vpop.f32.mrf.mxu0  ;;  %v2285_v48 = vpop.f32.mrf.mxu2  ;;  %v3161_v20 = vld [vmem:[#allocation3 + $0xd8] sm:$0xff] }
 0x314   : > { %3092 = vst [vmem:[#allocation3 + $0xe1] sm:$0xff] %v3005_v45  ;;  %v2338_v6 = vadd.f32 %v2285_v48, %v7590_v11  ;;  %v7866_v5 = vpack.c.bf16 %v3005_v45, %v3004_v62  ;;  %v3743_v11 = vld [vmem:[#allocation3 + $0x3a] sm:$0xff] }
 0x315   : > { %v3772_v18 = vpack.c.bf16 %v3743_v11, %v3742_v39 }
 0x316   : > { %v2624_v22 = vadd.f32 %v2571_v52, %v2338_v6 }
 0x318   : > { %v2910_v32 = vadd.f32 %v2857_v63, %v2624_v22 }
 0x31a   : > { %v3006_v31 = vmax.f32 %v2910_v32, 0.0  ;;  %v2573_v34 = vpop.f32.mrf.mxu3 }
 0x31b   : > { %v2862_v46 = vpop.f32.mrf.mxu0  ;;  %v2287_v1 = vpop.f32.mrf.mxu2  ;;  %v3162_v30 = vld [vmem:[#allocation3 + $0xe0] sm:$0xff] }
 0x31c   : > { %3093 = vst [vmem:[#allocation3 + $0xf1] sm:$0xff] %v3006_v31  ;;  %v2339_v16 = vadd.f32 %v2287_v1, %v2052_v27  ;;  %v7870_v58 = vpop.f32.mrf.mxu1  ;;  %v7872_v38 = vpack.c.bf16 %v3162_v30, %v3161_v20 }
 0x31e   : > { %4199 = vmatmul.bf16.gmra.mxu0 %v7743_v53  ;;  %v2625_v42 = vadd.f32 %v2573_v34, %v2339_v16  ;;  %3340 = vmatmul.bf16.gmra.mxu1 %v7872_v38  ;;  %v3746_v16 = vld [vmem:[#allocation3 + $0x62] sm:$0xff] }
 0x31f   : > { %3901 = vmatmul.bf16.gmra.mxu3 %v3772_v18 }
 0x320   : > { %v2911_v59 = vadd.f32 %v2859_v3, %v2625_v42  ;;  %3603 = vmatmul.bf16.gmra.mxu2 %v7720_v24  ;;  %v3745_v3 = vld [vmem:[#allocation3 + $0x52] sm:$0xff] }
 0x321   : > { %v3773_v50 = vpack.c.bf16 %v3745_v3, %v3744_v12  ;;  %v8621_v3 = vld [vmem:[#allocation8_spill] sm:$0xff] }
 0x322   : > { %v3007_v29 = vmax.f32 %v2911_v59, 0.0  ;;  %v2576_v25 = vpop.f32.mrf.mxu3  ;;  %v3747_v59 = vld [vmem:[#allocation3 + $0x6a] sm:$0xff] }
 0x323   : > { %v2864_v62 = vpop.f32.mrf.mxu0  ;;  %v2290_v61 = vpop.f32.mrf.mxu2  ;;  %v3163_v8 = vld [vmem:[#allocation3 + $0xf0] sm:$0xff] }
 0x324   : > { %3094 = vst [vmem:[#allocation3 + $0xf9] sm:$0xff] %v3007_v29  ;;  %v2340_v63 = vadd.f32 %v2290_v61, %v7602_v2  ;;  %v7878_v28 = vpop.f32.mrf.mxu1  ;;  %v7880_v47 = vpack.c.bf16 %v3007_v29, %v3006_v31 }
 0x326   : > { %v2626_v53 = vadd.f32 %v2576_v25, %v2340_v63 }
 0x328   : > { %v2912_v55 = vadd.f32 %v2862_v46, %v2626_v53 }
 0x32a   : > { %v3008_v33 = vmax.f32 %v2912_v55, 0.0  ;;  %v2578_v2 = vpop.f32.mrf.mxu3 }
 0x32b   : > { %v2867_v24 = vpop.f32.mrf.mxu0  ;;  %v2292_v56 = vpop.f32.mrf.mxu2  ;;  %v3164_v45 = vld [vmem:[#allocation3 + $0xf8] sm:$0xff] }
 0x32c   : > { %3095 = vst [vmem:[#allocation3 + $0x109] sm:$0xff] %v3008_v33  ;;  %v2341_v48 = vadd.f32 %v2292_v56, %v2054_v0  ;;  %v7884_v6 = vpop.f32.mrf.mxu1  ;;  %v7886_v52 = vpack.c.bf16 %v3164_v45, %v3163_v8 }
 0x32e   : > { %4204 = vmatmul.bf16.gmra.mxu0 %v7761_v57  ;;  %v2627_v15 = vadd.f32 %v2578_v2, %v2341_v48  ;;  %3345 = vmatmul.bf16.gmra.mxu1 %v7886_v52  ;;  %v6613_v57 = vld [vmem:[%s8589_s3 + $0x108] sm:$0xff] }
 0x32f   : > { %3906 = vmatmul.bf16.gmra.mxu3 %v3773_v50  ;;  %4485 = vmatpush.bf16.msrb.mxu1 %v6613_v57  ;;  %v8622_v48 = vld [vmem:[#allocation17_spill] sm:$0xff] }
 0x330   : > { %v2913_v60 = vadd.f32 %v2864_v62, %v2627_v15  ;;  %3608 = vmatmul.bf16.gmra.mxu2 %v7740_v43  ;;  %v2056_v43 = vadd.f32 %v7615_v54, %v7624_v37  ;;  %v3774_v54 = vpack.c.bf16 %v3747_v59, %v3746_v16  ;;  %v2058_v2 = vadd.f32 %v8622_v48, %v8621_v3  ;;  %v3748_v50 = vld [vmem:[#allocation3 + $0x7a] sm:$0xff] }
 0x332   : > { %v3009_v22 = vmax.f32 %v2913_v60, 0.0  ;;  %v2581_v39 = vpop.f32.mrf.mxu3 }
 0x333   : > { %v2869_v32 = vpop.f32.mrf.mxu0  ;;  %v2295_v27 = vpop.f32.mrf.mxu2 }
 0x334   : > { %3096 = vst [vmem:[#allocation3 + $0x111] sm:$0xff] %v3009_v22  ;;  %v2342_v31 = vadd.f32 %v2295_v27, %v7617_v17  ;;  %v7892_v46 = vpop.f32.mrf.mxu1  ;;  %v7897_v1 = vpack.c.bf16 %v3009_v22, %v3008_v33  ;;  %v3165_v17 = vld [vmem:[#allocation3 + $0x108] sm:$0xff]  ;;  %v8620_v33 = vld [vmem:[#allocation18_spill] sm:$0xff] }
 0x335   : > { %v3749_v27 = vld [vmem:[#allocation3 + $0x82] sm:$0xff] }
 0x336   : > { %v2628_v20 = vadd.f32 %v2581_v39, %v2342_v31 }
 0x338   : > { %v2914_v30 = vadd.f32 %v2867_v24, %v2628_v20 }
 0x33a   : > { %v3010_v11 = vmax.f32 %v2914_v30, 0.0  ;;  %v2583_v62 = vpop.f32.mrf.mxu3 }
 0x33b   : > { %v2872_v34 = vpop.f32.mrf.mxu0  ;;  %v2297_v42 = vpop.f32.mrf.mxu2  ;;  %v3166_v18 = vld [vmem:[#allocation3 + $0x110] sm:$0xff] }
 0x33c   : > { %3097 = vst [vmem:[#allocation3 + $0x121] sm:$0xff] %v3010_v11  ;;  %v2343_v29 = vadd.f32 %v2297_v42, %v2056_v43  ;;  %v7901_v61 = vpop.f32.mrf.mxu1  ;;  %v7903_v63 = vpack.c.bf16 %v3166_v18, %v3165_v17  ;;  %v3775_v43 = vpack.c.bf16 %v3749_v27, %v3748_v50  ;;  %v8623_v17 = vld [vmem:[#allocation9_spill] sm:$0xff] }
 0x33e   : > { %4209 = vmatmul.bf16.gmra.mxu0 %v7809_v10  ;;  %v2629_v25 = vadd.f32 %v2583_v62, %v2343_v29  ;;  %3350 = vmatmul.bf16.gmra.mxu1 %v7903_v63 }
 0x33f   : > { %3911 = vmatmul.bf16.gmra.mxu3 %v3774_v54 }
 0x340   : > { %v2915_v37 = vadd.f32 %v2869_v32, %v2629_v25  ;;  %3613 = vmatmul.bf16.gmra.mxu2 %v7754_v21 }
 0x342   : > { %v3011_v53 = vmax.f32 %v2915_v37, 0.0  ;;  %v2586_v24 = vpop.f32.mrf.mxu3  ;;  %v8625_v37 = vld [vmem:[#allocation10_spill] sm:$0xff] }
 0x343   : > { %v2874_v55 = vpop.f32.mrf.mxu0  ;;  %v2300_v0 = vpop.f32.mrf.mxu2  ;;  %v3167_v22 = vld [vmem:[#allocation3 + $0x120] sm:$0xff] }
 0x344   : > { %3098 = vst [vmem:[#allocation3 + $0x129] sm:$0xff] %v3011_v53  ;;  %v2344_v12 = vadd.f32 %v2300_v0, %v8620_v33  ;;  %v7909_v56 = vpop.f32.mrf.mxu1  ;;  %v7911_v8 = vpack.c.bf16 %v3011_v53, %v3010_v11  ;;  %v3750_v0 = vld [vmem:[#allocation3 + $0x92] sm:$0xff] }
 0x346   : > { %v2630_v10 = vadd.f32 %v2586_v24, %v2344_v12 }
 0x348   : > { %v2916_v45 = vadd.f32 %v2872_v34, %v2630_v10 }
 0x34a   : > { %v3012_v15 = vmax.f32 %v2916_v45, 0.0  ;;  %v2588_v39 = vpop.f32.mrf.mxu3  ;;  %v3751_v45 = vld [vmem:[#allocation3 + $0x9a] sm:$0xff] }
 0x34b   : > { %v2877_v21 = vpop.f32.mrf.mxu0  ;;  %v2302_v60 = vpop.f32.mrf.mxu2  ;;  %v3168_v32 = vld [vmem:[#allocation3 + $0x128] sm:$0xff] }
 0x34c   : > { %3099 = vst [vmem:[#allocation3 + $0x139] sm:$0xff] %v3012_v15  ;;  %v2345_v31 = vadd.f32 %v2302_v60, %v2058_v2  ;;  %v7915_v57 = vpop.f32.mrf.mxu1  ;;  %v7917_v20 = vpack.c.bf16 %v3168_v32, %v3167_v22 }
 0x34e   : > { %4214 = vmatmul.bf16.gmra.mxu0 %v7828_v26  ;;  %v2631_v30 = vadd.f32 %v2588_v39, %v2345_v31  ;;  %3355 = vmatmul.bf16.gmra.mxu1 %v7917_v20  ;;  %v6612_v26 = vld [vmem:[%s8589_s3 + $0x100] sm:$0xff] }
 0x34f   : > { %3916 = vmatmul.bf16.gmra.mxu3 %v3775_v43  ;;  %4486 = vmatpush.bf16.msrb.mxu1 %v6612_v26 }
 0x350   : > { %v2917_v11 = vadd.f32 %v2874_v55, %v2631_v30  ;;  %3618 = vmatmul.bf16.gmra.mxu2 %v7787_v9  ;;  %v8624_v9 = vld [vmem:[#allocation11_spill] sm:$0xff] }
 0x351   : > { %v2060_v53 = vadd.f32 %v8625_v37, %v8624_v9 }
 0x352   : > { %v3013_v16 = vmax.f32 %v2917_v11, 0.0  ;;  %v2591_v59 = vpop.f32.mrf.mxu3 }
 0x353   : > { %v2879_v34 = vpop.f32.mrf.mxu0  ;;  %v2305_v42 = vpop.f32.mrf.mxu2  ;;  %v3169_v24 = vld [vmem:[#allocation3 + $0x138] sm:$0xff] }
 0x354   : > { %3100 = vst [vmem:[#allocation3 + $0x141] sm:$0xff] %v3013_v16  ;;  %v2346_v18 = vadd.f32 %v2305_v42, %v8623_v17  ;;  %v7923_v29 = vpop.f32.mrf.mxu1  ;;  %v7928_v62 = vpack.c.bf16 %v3013_v16, %v3012_v15  ;;  %v3752_v42 = vld [vmem:[#allocation3 + $0xaa] sm:$0xff] }
 0x356   : > { %v2632_v25 = vadd.f32 %v2591_v59, %v2346_v18 }
 0x358   : > { %v2918_v54 = vadd.f32 %v2877_v21, %v2632_v25  ;;  %v3776_v21 = vpack.c.bf16 %v3751_v45, %v3750_v0  ;;  %v3753_v25 = vld [vmem:[#allocation3 + $0xb2] sm:$0xff]  ;;  %v6651_v0 = vld [vmem:[%s8589_s3 + $0x238] sm:$0xff] }
 0x359   : > { %5672 = vmatpush.bf16.msra.mxu1 %v6651_v0 }
 0x35a   : > { %v3014_v55 = vmax.f32 %v2918_v54, 0.0  ;;  %v2593_v48 = vpop.f32.mrf.mxu3 }
 0x35b   : > { %v2882_v33 = vpop.f32.mrf.mxu0  ;;  %v2307_v12 = vpop.f32.mrf.mxu2  ;;  %v3170_v10 = vld [vmem:[#allocation3 + $0x140] sm:$0xff] }
 0x35c   : > { %3101 = vst [vmem:[#allocation3 + $0x151] sm:$0xff] %v3014_v55  ;;  %v2347_v3 = vadd.f32 %v2307_v12, %v2060_v53  ;;  %v7932_v2 = vpop.f32.mrf.mxu1  ;;  %v7934_v15 = vpack.c.bf16 %v3170_v10, %v3169_v24 }
 0x35e   : > { %4219 = vmatmul.bf16.gmra.mxu0 %v7842_v19  ;;  %v2633_v50 = vadd.f32 %v2593_v48, %v2347_v3  ;;  %3360 = vmatmul.bf16.gmra.mxu1 %v7934_v15  ;;  %v6627_v19 = vld [vmem:[%s8589_s3 + $0x178] sm:$0xff] }
 0x35f   : > { %3921 = vmatmul.bf16.gmra.mxu3 %v3776_v21  ;;  %4777 = vmatpush.bf16.msra.mxu2 %v6627_v19  ;;  %v3755_v19 = vld [vmem:[#allocation3 + $0xca] sm:$0xff] }
 0x360   : > { %v2919_v60 = vadd.f32 %v2879_v34, %v2633_v50  ;;  %3623 = vmatmul.bf16.gmra.mxu2 %v7824_v41  ;;  %v6635_v41 = vld [vmem:[%s8589_s3 + $0x1b8] sm:$0xff] }
 0x361   : > { %5076 = vmatpush.bf16.msra.mxu3 %v6635_v41 }
 0x362   : > { %v3015_v22 = vmax.f32 %v2919_v60, 0.0  ;;  %v2596_v39 = vpop.f32.mrf.mxu3  ;;  %v2064_v60 = vadd.f32 %v7846_v13, %v7685_v36 }
 0x363   : > { %v2884_v32 = vpop.f32.mrf.mxu0  ;;  %v2310_v27 = vpop.f32.mrf.mxu2  ;;  %v3171_v59 = vld [vmem:[#allocation3 + $0x150] sm:$0xff] }
 0x364   : > { %3102 = vst [vmem:[#allocation3 + $0x159] sm:$0xff] %v3015_v22  ;;  %v2348_v31 = vadd.f32 %v2310_v27, %v7657_v44  ;;  %v7940_v30 = vpop.f32.mrf.mxu1  ;;  %v7945_v43 = vpack.c.bf16 %v3015_v22, %v3014_v55  ;;  %v2062_v44 = vadd.f32 %v7663_v14, %v7669_v4  ;;  %v3777_v14 = vpack.c.bf16 %v3753_v25, %v3752_v42  ;;  %v6643_v4 = vld [vmem:[%s8589_s3 + $0x1f8] sm:$0xff] }
 0x365   : > { %5374 = vmatpush.bf16.msra.mxu0 %v6643_v4  ;;  %v3754_v22 = vld [vmem:[#allocation3 + $0xc2] sm:$0xff] }
 0x366   : > { %v2634_v11 = vadd.f32 %v2596_v39, %v2348_v31  ;;  %v3778_v13 = vpack.c.bf16 %v3755_v19, %v3754_v22 }
 0x368   : > { %v2920_v16 = vadd.f32 %v2882_v33, %v2634_v11 }
 0x36a   : > { %v3016_v34 = vmax.f32 %v2920_v16, 0.0  ;;  %v2598_v9 = vpop.f32.mrf.mxu3 }
 0x36b   : > { %v2887_v17 = vpop.f32.mrf.mxu0  ;;  %v2312_v18 = vpop.f32.mrf.mxu2  ;;  %v3172_v26 = vld [vmem:[#allocation3 + $0x158] sm:$0xff] }
 0x36c   : > { %3103 = vst [vmem:[#allocation3 + $0x169] sm:$0xff] %v3016_v34  ;;  %v2349_v54 = vadd.f32 %v2312_v18, %v2062_v44  ;;  %v7952_v37 = vpop.f32.mrf.mxu1  ;;  %v7954_v53 = vpack.c.bf16 %v3172_v26, %v3171_v59  ;;  %v7979_v44 = vld [vmem:[%s8590_s4] ss:$0 sm:$0xff]  ;;  %v6626_v26 = vld [vmem:[%s8589_s3 + $0x170] sm:$0xff] }
 0x36d   : > { %v3376_v42 = vadd.f32 %v7979_v44, %v7853_v40  ;;  %4778 = vmatpush.bf16.msra.mxu2 %v6626_v26 }
 0x36e   : > { %4224 = vmatmul.bf16.gmra.mxu0 %v7855_v51  ;;  %v2635_v55 = vadd.f32 %v2598_v9, %v2349_v54  ;;  %3365 = vmatmul.bf16.gmra.mxu1 %v7954_v53 }
 0x36f   : > { %3926 = vmatmul.bf16.gmra.mxu3 %v3777_v14  ;;  %v3377_v14 = vadd.f32 %v7979_v44, %v7860_v7  ;;  %v6650_v7 = vld [vmem:[%s8589_s3 + $0x230] sm:$0xff] }
 0x370   : > { %v2921_v33 = vadd.f32 %v2884_v32, %v2635_v55  ;;  %3628 = vmatmul.bf16.gmra.mxu2 %v7838_v49  ;;  %v4335_v55 = vld [vmem:[#allocation3 + $0x21] sm:$0xff]  ;;  %5673 = vmatpush.bf16.msra.mxu1 %v6650_v7 }
 0x372   : > { %v3017_v12 = vmax.f32 %v2921_v33, 0.0  ;;  %v2601_v45 = vpop.f32.mrf.mxu3  ;;  %v4334_v33 = vld [vmem:[#allocation3 + $0x19] sm:$0xff] }
 0x373   : > { %v2889_v51 = vpop.f32.mrf.mxu0  ;;  %v2315_v24 = vpop.f32.mrf.mxu2  ;;  %v3173_v31 = vld [vmem:[#allocation3 + $0x168] sm:$0xff] }
 0x374   : > { %3104 = vst [vmem:[#allocation3 + $0x171] sm:$0xff] %v3017_v12  ;;  %v2350_v10 = vadd.f32 %v2315_v24, %v7678_v35  ;;  %v7966_v3 = vpop.f32.mrf.mxu1  ;;  %v7968_v48 = vpack.c.bf16 %v3017_v12, %v3016_v34  ;;  %v3756_v12 = vld [vmem:[#allocation3 + $0xda] sm:$0xff] }
 0x376   : > { %v2636_v50 = vadd.f32 %v2601_v45, %v2350_v10 }
 0x378   : > { %v2922_v21 = vadd.f32 %v2887_v17, %v2636_v50  ;;  %v4366_v50 = vpack.c.bf16 %v4335_v55, %v4334_v33 }
 0x37a   : > { %v3018_v49 = vmax.f32 %v2922_v21, 0.0  ;;  %v2603_v35 = vpop.f32.mrf.mxu3 }
 0x37b   : > { %v4190_v32 = vpop.f32.mrf.mxu0  ;;  %v2317_v27 = vpop.f32.mrf.mxu2  ;;  %v3174_v39 = vld [vmem:[#allocation3 + $0x170] sm:$0xff] }
 0x37c   : > { %3105 = vst [vmem:[#allocation3 + $0x181] sm:$0xff] %v3018_v49  ;;  %v2351_v11 = vadd.f32 %v2317_v27, %v2064_v60  ;;  %v7972_v41 = vpop.f32.mrf.mxu1  ;;  %v7974_v16 = vpack.c.bf16 %v3174_v39, %v3173_v31  ;;  %v6642_v49 = vld [vmem:[%s8589_s3 + $0x1f0] sm:$0xff] }
 0x37d   : > { %5375 = vmatpush.bf16.msra.mxu0 %v6642_v49  ;;  %v3761_v49 = vld [vmem:[#allocation3 + $0x112] sm:$0xff] }
 0x37e   : > { %4229 = vmatmul.bf16.gmra.mxu0 %v7872_v38  ;;  %v2637_v36 = vadd.f32 %v2603_v35, %v2351_v11  ;;  %3370 = vmatmul.bf16.gmra.mxu1 %v7974_v16 }
 0x37f   : > { %3931 = vmatmul.bf16.gmra.mxu3 %v3778_v13 }
 0x380   : > { %v2923_v34 = vadd.f32 %v2889_v51, %v2637_v36  ;;  %3633 = vmatmul.bf16.gmra.mxu2 %v7849_v23  ;;  %v6634_v23 = vld [vmem:[%s8589_s3 + $0x1b0] sm:$0xff] }
 0x381   : > { %5077 = vmatpush.bf16.msra.mxu3 %v6634_v23  ;;  %v3757_v51 = vld [vmem:[#allocation3 + $0xe2] sm:$0xff]  ;;  %v4337_v36 = vld [vmem:[#allocation3 + $0x39] sm:$0xff]  ;;  %v3380_v23 = vadd.f32 %v7979_v44, %v7884_v6  ;;  %v4339_v6 = vld [vmem:[#allocation3 + $0x51] sm:$0xff] }
 0x382   : > { %v3019_v17 = vmax.f32 %v2923_v34, 0.0  ;;  %v3892_v54 = vpop.f32.mrf.mxu3  ;;  %v3779_v60 = vpack.c.bf16 %v3757_v51, %v3756_v12 }
 0x383   : > { %v4192_v18 = vpop.f32.mrf.mxu0  ;;  %v3594_v59 = vpop.f32.mrf.mxu2 }
 0x384   : > { %3106 = vst [vmem:[#allocation3 + $0x189] sm:$0xff] %v3019_v17  ;;  %v7989_v38 = vpop.f32.mrf.mxu1  ;;  %v3674_v25 = vadd.f32 %v3594_v59, %v3376_v42  ;;  %v4336_v42 = vld [vmem:[#allocation3 + $0x31] sm:$0xff] }
 0x385   : > { %v3758_v17 = vld [vmem:[#allocation3 + $0xf2] sm:$0xff] }
 0x386   : > { %v3972_v9 = vadd.f32 %v3892_v54, %v3674_v25  ;;  %v8020_v25 = vpack.c.bf16 %v4337_v36, %v4336_v42 }
 0x388   : > { %v7994_v40 = vadd.f32 %v4190_v32, %v3972_v9 }
 0x38a   : > { %v3894_v45 = vpop.f32.mrf.mxu3 }
 0x38b   : > { %v4195_v4 = vpop.f32.mrf.mxu0  ;;  %v3596_v0 = vpop.f32.mrf.mxu2 }
 0x38c   : > { %v7998_v24 = vpop.f32.mrf.mxu1  ;;  %v3675_v10 = vadd.f32 %v3596_v0, %v3377_v14 }
 0x38e   : > { %4234 = vmatmul.bf16.gmra.mxu0 %v7886_v52  ;;  %v3973_v21 = vadd.f32 %v3894_v45, %v3675_v10  ;;  %4487 = vmatmul.bf16.vlgmr.msrb.gmra.mxu1 %v4366_v50  ;;  %v3378_v52 = vadd.f32 %v7979_v44, %v7870_v58  ;;  %v3381_v10 = vadd.f32 %v7979_v44, %v7892_v46  ;;  %v6641_v46 = vld [vmem:[%s8589_s3 + $0x1e8] sm:$0xff] }
 0x38f   : > { %3936 = vmatmul.bf16.gmra.mxu3 %v3779_v60  ;;  %v3760_v60 = vld [vmem:[#allocation3 + $0x10a] sm:$0xff]  ;;  %5376 = vmatpush.bf16.msra.mxu0 %v6641_v46 }
 0x390   : > { %3638 = vmatmul.bf16.gmra.mxu2 %v7866_v5  ;;  %v8008_v22 = vadd.f32 %v4192_v18, %v3973_v21  ;;  %v3379_v5 = vadd.f32 %v7979_v44, %v7878_v28  ;;  %v3759_v18 = vld [vmem:[#allocation3 + $0xfa] sm:$0xff]  ;;  %v4338_v21 = vld [vmem:[#allocation3 + $0x49] sm:$0xff] }
 0x391   : > { %v3780_v9 = vpack.c.bf16 %v3759_v18, %v3758_v17 }
 0x392   : > { %v3897_v19 = vpop.f32.mrf.mxu3 }
 0x393   : > { %v4197_v32 = vpop.f32.mrf.mxu0  ;;  %v3599_v27 = vpop.f32.mrf.mxu2 }
 0x394   : > { %v8012_v31 = vpop.f32.mrf.mxu1  ;;  %v3676_v39 = vadd.f32 %v3599_v27, %v3378_v52  ;;  %v8043_v27 = vpack.c.bf16 %v4339_v6, %v4338_v21  ;;  %v3384_v6 = vadd.f32 %v7979_v44, %v7915_v57  ;;  %v4343_v57 = vld [vmem:[#allocation3 + $0x81] sm:$0xff] }
 0x396   : > { %v3974_v11 = vadd.f32 %v3897_v19, %v3676_v39  ;;  %v3781_v19 = vpack.c.bf16 %v3761_v49, %v3760_v60 }
 0x398   : > { %v8014_v35 = vadd.f32 %v4195_v4, %v3974_v11  ;;  %v6625_v4 = vld [vmem:[%s8589_s3 + $0x168] sm:$0xff] }
 0x399   : > { %4779 = vmatpush.bf16.msra.mxu2 %v6625_v4  ;;  %v6649_v11 = vld [vmem:[%s8589_s3 + $0x228] sm:$0xff] }
 0x39a   : > { %v3899_v26 = vpop.f32.mrf.mxu3  ;;  %5674 = vmatpush.bf16.msra.mxu1 %v6649_v11  ;;  %v4342_v11 = vld [vmem:[#allocation3 + $0x79] sm:$0xff] }
 0x39b   : > { %v4200_v13 = vpop.f32.mrf.mxu0  ;;  %v3601_v34 = vpop.f32.mrf.mxu2 }
 0x39c   : > { %v8018_v59 = vpop.f32.mrf.mxu1  ;;  %v3677_v58 = vadd.f32 %v3601_v34, %v3379_v5 }
 0x39e   : > { %4239 = vmatmul.bf16.gmra.mxu0 %v7903_v63  ;;  %v3975_v54 = vadd.f32 %v3899_v26, %v3677_v58  ;;  %4492 = vmatmul.bf16.gmra.mxu1 %v8020_v25  ;;  %v4341_v26 = vld [vmem:[#allocation3 + $0x69] sm:$0xff] }
 0x39f   : > { %3941 = vmatmul.bf16.gmra.mxu3 %v3780_v9 }
 0x3a0   : > { %3643 = vmatmul.bf16.gmra.mxu2 %v7880_v47  ;;  %v8025_v28 = vadd.f32 %v4197_v32, %v3975_v54  ;;  %v6633_v47 = vld [vmem:[%s8589_s3 + $0x1a8] sm:$0xff] }
 0x3a1   : > { %5078 = vmatpush.bf16.msra.mxu3 %v6633_v47 }
 0x3a2   : > { %v3902_v33 = vpop.f32.mrf.mxu3 }
 0x3a3   : > { %v4202_v55 = vpop.f32.mrf.mxu0  ;;  %v3604_v14 = vpop.f32.mrf.mxu2 }
 0x3a4   : > { %v8032_v0 = vpop.f32.mrf.mxu1  ;;  %v3678_v63 = vadd.f32 %v3604_v14, %v3380_v23  ;;  %v4340_v23 = vld [vmem:[#allocation3 + $0x61] sm:$0xff]  ;;  %v3763_v14 = vld [vmem:[#allocation3 + $0x12a] sm:$0xff] }
 0x3a6   : > { %v3976_v12 = vadd.f32 %v3902_v33, %v3678_v63  ;;  %v8066_v33 = vpack.c.bf16 %v4341_v26, %v4340_v23  ;;  %v6639_v26 = vld [vmem:[%s8589_s3 + $0x1d8] sm:$0xff]  ;;  %v6638_v23 = vld [vmem:[%s8589_s3 + $0x1d0] sm:$0xff] }
 0x3a8   : > { %v8037_v51 = vadd.f32 %v4200_v13, %v3976_v12 }
 0x3aa   : > { %v3904_v32 = vpop.f32.mrf.mxu3 }
 0x3ab   : > { %v4205_v45 = vpop.f32.mrf.mxu0  ;;  %v3606_v50 = vpop.f32.mrf.mxu2 }
 0x3ac   : > { %v8041_v7 = vpop.f32.mrf.mxu1  ;;  %v3679_v52 = vadd.f32 %v3606_v50, %v3381_v10  ;;  %v6624_v50 = vld [vmem:[%s8589_s3 + $0x160] sm:$0xff] }
 0x3ad   : > { %4780 = vmatpush.bf16.msra.mxu2 %v6624_v50 }
 0x3ae   : > { %4244 = vmatmul.bf16.gmra.mxu0 %v7917_v20  ;;  %v3977_v39 = vadd.f32 %v3904_v32, %v3679_v52  ;;  %4497 = vmatmul.bf16.gmra.mxu1 %v8043_v27  ;;  %v3382_v20 = vadd.f32 %v7979_v44, %v7901_v61  ;;  %v6640_v32 = vld [vmem:[%s8589_s3 + $0x1e0] sm:$0xff] }
 0x3af   : > { %3946 = vmatmul.bf16.gmra.mxu3 %v3781_v19  ;;  %5377 = vmatpush.bf16.msra.mxu0 %v6640_v32 }
 0x3b0   : > { %3648 = vmatmul.bf16.gmra.mxu2 %v7897_v1  ;;  %v8054_v36 = vadd.f32 %v4202_v55, %v3977_v39  ;;  %v3383_v1 = vadd.f32 %v7979_v44, %v7909_v56  ;;  %v3762_v55 = vld [vmem:[#allocation3 + $0x122] sm:$0xff]  ;;  %v3385_v39 = vadd.f32 %v7979_v44, %v7923_v29 }
 0x3b1   : > { %v3782_v47 = vpack.c.bf16 %v3763_v14, %v3762_v55 }
 0x3b2   : > { %v3907_v17 = vpop.f32.mrf.mxu3 }
 0x3b3   : > { %v4207_v5 = vpop.f32.mrf.mxu0  ;;  %v3609_v13 = vpop.f32.mrf.mxu2  ;;  %5378 = vmatpush.bf16.msra.mxu0 %v6639_v26 }
 0x3b4   : > { %v8058_v34 = vpop.f32.mrf.mxu1  ;;  %v3680_v42 = vadd.f32 %v3609_v13, %v3382_v20  ;;  %v3764_v20 = vld [vmem:[#allocation3 + $0x13a] sm:$0xff] }
 0x3b6   : > { %v3978_v18 = vadd.f32 %v3907_v17, %v3680_v42 }
 0x3b7   : > { %5379 = vmatpush.bf16.msra.mxu0 %v6638_v23 }
 0x3b8   : > { %v8060_v58 = vadd.f32 %v4205_v45, %v3978_v18  ;;  %v8092_v18 = vpack.c.bf16 %v4343_v57, %v4342_v11  ;;  %v3766_v57 = vld [vmem:[#allocation3 + $0x152] sm:$0xff] }
 0x3b9   : > { %v6629_v11 = vld [vmem:[%s8589_s3 + $0x188] sm:$0xff] }
 0x3ba   : > { %v3909_v63 = vpop.f32.mrf.mxu3 }
 0x3bb   : > { %v4210_v54 = vpop.f32.mrf.mxu0  ;;  %v3611_v9 = vpop.f32.mrf.mxu2 }
 0x3bc   : > { %v8064_v4 = vpop.f32.mrf.mxu1  ;;  %v3681_v61 = vadd.f32 %v3611_v9, %v3383_v1 }
 0x3be   : > { %4249 = vmatmul.bf16.gmra.mxu0 %v7934_v15  ;;  %v3979_v12 = vadd.f32 %v3909_v63, %v3681_v61  ;;  %4502 = vmatmul.bf16.gmra.mxu1 %v8066_v33  ;;  %v6623_v61 = vld [vmem:[%s8589_s3 + $0x158] sm:$0xff] }
 0x3bf   : > { %3951 = vmatmul.bf16.gmra.mxu3 %v3782_v47  ;;  %4781 = vmatpush.bf16.msra.mxu2 %v6623_v61 }
 0x3c0   : > { %3653 = vmatmul.bf16.gmra.mxu2 %v7911_v8  ;;  %v8071_v56 = vadd.f32 %v4207_v5, %v3979_v12  ;;  %v6632_v8 = vld [vmem:[%s8589_s3 + $0x1a0] sm:$0xff]  ;;  %v3765_v5 = vld [vmem:[#allocation3 + $0x142] sm:$0xff] }
 0x3c1   : > { %5079 = vmatpush.bf16.msra.mxu3 %v6632_v8  ;;  %v3783_v29 = vpack.c.bf16 %v3765_v5, %v3764_v20  ;;  %v4344_v8 = vld [vmem:[#allocation3 + $0x91] sm:$0xff] }
 0x3c2   : > { %v3912_v60 = vpop.f32.mrf.mxu3 }
 0x3c3   : > { %v4212_v10 = vpop.f32.mrf.mxu0  ;;  %v3614_v45 = vpop.f32.mrf.mxu2 }
 0x3c4   : > { %v8078_v21 = vpop.f32.mrf.mxu1  ;;  %v3682_v15 = vadd.f32 %v3614_v45, %v3384_v6  ;;  %v6630_v45 = vld [vmem:[%s8589_s3 + $0x190] sm:$0xff] }
 0x3c6   : > { %v3980_v49 = vadd.f32 %v3912_v60, %v3682_v15  ;;  %v4345_v15 = vld [vmem:[#allocation3 + $0x99] sm:$0xff]  ;;  %v6636_v60 = vld [vmem:[%s8589_s3 + $0x1c0] sm:$0xff] }
 0x3c8   : > { %v8083_v52 = vadd.f32 %v4210_v54, %v3980_v49  ;;  %v6648_v54 = vld [vmem:[%s8589_s3 + $0x220] sm:$0xff]  ;;  %v3387_v49 = vadd.f32 %v7979_v44, %v7940_v30 }
 0x3c9   : > { %5675 = vmatpush.bf16.msra.mxu1 %v6648_v54 }
 0x3ca   : > { %v3914_v17 = vpop.f32.mrf.mxu3 }
 0x3cb   : > { %v4215_v19 = vpop.f32.mrf.mxu0  ;;  %v3616_v46 = vpop.f32.mrf.mxu2 }
 0x3cc   : > { %v8090_v13 = vpop.f32.mrf.mxu1  ;;  %v3683_v42 = vadd.f32 %v3616_v46, %v3385_v39  ;;  %v3767_v46 = vld [vmem:[#allocation3 + $0x15a] sm:$0xff] }
 0x3cd   : > { %v3784_v26 = vpack.c.bf16 %v3767_v46, %v3766_v57 }
 0x3ce   : > { %4254 = vmatmul.bf16.gmra.mxu0 %v7954_v53  ;;  %v3981_v1 = vadd.f32 %v3914_v17, %v3683_v42  ;;  %4507 = vmatmul.bf16.gmra.mxu1 %v8092_v18  ;;  %v3386_v53 = vadd.f32 %v7979_v44, %v7932_v2  ;;  %v6637_v2 = vld [vmem:[%s8589_s3 + $0x1c8] sm:$0xff]  ;;  %v8142_v17 = vpack.c.bf16 %v4345_v15, %v4344_v8 }
 0x3cf   : > { %3956 = vmatmul.bf16.gmra.mxu3 %v3783_v29  ;;  %5380 = vmatpush.bf16.msra.mxu0 %v6637_v2  ;;  %v6628_v29 = vld [vmem:[%s8589_s3 + $0x180] sm:$0xff]  ;;  %v4067_v2 = vld [vmem:[#allocation3 + $0x188] sm:$0xff] }
 0x3d0   : > { %3658 = vmatmul.bf16.gmra.mxu2 %v7928_v62  ;;  %v8103_v9 = vadd.f32 %v4212_v10, %v3981_v1  ;;  %v6631_v62 = vld [vmem:[%s8589_s3 + $0x198] sm:$0xff]  ;;  %v6622_v10 = vld [vmem:[%s8589_s3 + $0x150] sm:$0xff]  ;;  %v6620_v1 = vld [vmem:[%s8589_s3 + $0x140] sm:$0xff] }
 0x3d1   : > { %5080 = vmatpush.bf16.msra.mxu3 %v6631_v62  ;;  %4782 = vmatpush.bf16.msra.mxu2 %v6622_v10 }
 0x3d2   : > { %v3917_v47 = vpop.f32.mrf.mxu3 }
 0x3d3   : > { %v4217_v55 = vpop.f32.mrf.mxu0  ;;  %v3619_v14 = vpop.f32.mrf.mxu2  ;;  %5381 = vmatpush.bf16.msra.mxu0 %v6636_v60  ;;  %v3768_v60 = vld [vmem:[#allocation3 + $0x16a] sm:$0xff] }
 0x3d4   : > { %v8116_v63 = vpop.f32.mrf.mxu1  ;;  %v3684_v12 = vadd.f32 %v3619_v14, %v3386_v53 }
 0x3d5   : > { %5081 = vmatpush.bf16.msra.mxu3 %v6630_v45  ;;  %v4066_v45 = vld [vmem:[#allocation3 + $0x180] sm:$0xff] }
 0x3d6   : > { %v3982_v6 = vadd.f32 %v3917_v47, %v3684_v12 }
 0x3d8   : > { %v8127_v50 = vadd.f32 %v4215_v19, %v3982_v6  ;;  %v6621_v19 = vld [vmem:[%s8589_s3 + $0x148] sm:$0xff] }
 0x3d9   : > { %4783 = vmatpush.bf16.msra.mxu2 %v6621_v19  ;;  %5082 = vmatpush.bf16.msra.mxu3 %v6629_v11  ;;  %v4347_v6 = vld [vmem:[#allocation3 + $0xb1] sm:$0xff] }
 0x3da   : > { %v3919_v42 = vpop.f32.mrf.mxu3 }
 0x3db   : > { %v4220_v32 = vpop.f32.mrf.mxu0  ;;  %v3621_v39 = vpop.f32.mrf.mxu2 }
 0x3dc   : > { %v8140_v20 = vpop.f32.mrf.mxu1  ;;  %v3685_v5 = vadd.f32 %v3621_v39, %v3387_v49  ;;  %v4083_v49 = vpack.c.bf16 %v4067_v2, %v4066_v45  ;;  %v4348_v2 = vld [vmem:[#allocation3 + $0xc1] sm:$0xff] }
 0x3dd   : > { %4784 = vmatpush.bf16.msra.mxu2 %v6620_v1  ;;  %5083 = vmatpush.bf16.msra.mxu3 %v6628_v29 }
 0x3de   : > { %4259 = vmatmul.bf16.gmra.mxu0 %v7974_v16  ;;  %v3983_v30 = vadd.f32 %v3919_v42, %v3685_v5  ;;  %4512 = vmatmul.bf16.gmra.mxu1 %v8142_v17  ;;  %v3388_v16 = vadd.f32 %v7979_v44, %v7952_v37  ;;  %v3769_v37 = vld [vmem:[#allocation3 + $0x172] sm:$0xff]  ;;  %v3390_v5 = vadd.f32 %v7979_v44, %v7972_v41 }
 0x3df   : > { %3961 = vmatmul.bf16.gmra.mxu3 %v3784_v26  ;;  %v3785_v19 = vpack.c.bf16 %v3769_v37, %v3768_v60  ;;  %v4931_v60 = vld [vmem:[#allocation3 + $0x30] sm:$0xff] }
 0x3e0   : > { %3663 = vmatmul.bf16.gmra.mxu2 %v7945_v43  ;;  %v8153_v54 = vadd.f32 %v4217_v55, %v3983_v30  ;;  %v3389_v43 = vadd.f32 %v7979_v44, %v7966_v3  ;;  %v4346_v55 = vld [vmem:[#allocation3 + $0xa9] sm:$0xff] }
 0x3e1   : > { %v8165_v46 = vpack.c.bf16 %v4347_v6, %v4346_v55  ;;  %v6647_v3 = vld [vmem:[%s8589_s3 + $0x218] sm:$0xff] }
 0x3e2   : > { %v3922_v62 = vpop.f32.mrf.mxu3  ;;  %5676 = vmatpush.bf16.msra.mxu1 %v6647_v3  ;;  %v4633_v6 = vld [vmem:[#allocation3 + $0x22] sm:$0xff] }
 0x3e3   : > { %v4222_v23 = vpop.f32.mrf.mxu0  ;;  %v3624_v53 = vpop.f32.mrf.mxu2 }
 0x3e4   : > { %v8157_v14 = vpop.f32.mrf.mxu1  ;;  %v3686_v61 = vadd.f32 %v3624_v53, %v3388_v16 }
 0x3e6   : > { %v3984_v12 = vadd.f32 %v3922_v62, %v3686_v61  ;;  %v4349_v61 = vld [vmem:[#allocation3 + $0xc9] sm:$0xff]  ;;  %v4632_v62 = vld [vmem:[#allocation3 + $0x1a] sm:$0xff] }
 0x3e7   : > { %v4664_v37 = vpack.c.bf16 %v4633_v6, %v4632_v62  ;;  %v4635_v62 = vld [vmem:[#allocation3 + $0x3a] sm:$0xff] }
 0x3e8   : > { %v8159_v47 = vadd.f32 %v4220_v32, %v3984_v12 }
 0x3ea   : > { %v3924_v39 = vpop.f32.mrf.mxu3 }
 0x3eb   : > { %v4225_v10 = vpop.f32.mrf.mxu0  ;;  %v3626_v15 = vpop.f32.mrf.mxu2 }
 0x3ec   : > { %v8163_v8 = vpop.f32.mrf.mxu1  ;;  %v3687_v57 = vadd.f32 %v3626_v15, %v3389_v43  ;;  %v4932_v43 = vld [vmem:[#allocation3 + $0x38] sm:$0xff]  ;;  %v8184_v15 = vpack.c.bf16 %v4349_v61, %v4348_v2 }
 0x3ee   : > { %4264 = vmatmul.bf16.gmra.mxu0 %v4083_v49  ;;  %v3985_v32 = vadd.f32 %v3924_v39, %v3687_v57  ;;  %4517 = vmatmul.bf16.gmra.mxu1 %v8165_v46  ;;  %v3392_v57 = vadd.f32 %v7979_v44, %v7998_v24 }
 0x3ef   : > { %3966 = vmatmul.bf16.gmra.mxu3 %v3785_v19 }
 0x3f0   : > { %3668 = vmatmul.bf16.gmra.mxu2 %v7968_v48  ;;  %v8172_v11 = vadd.f32 %v4222_v23, %v3985_v32  ;;  %v3391_v48 = vadd.f32 %v7979_v44, %v7989_v38  ;;  %v4963_v38 = vpack.c.bf16 %v4932_v43, %v4931_v60 }
 0x3f2   : > { %v3927_v29 = vpop.f32.mrf.mxu3 }
 0x3f3   : > { %v4227_v42 = vpop.f32.mrf.mxu0  ;;  %v3629_v30 = vpop.f32.mrf.mxu2 }
 0x3f4   : > { %v8176_v26 = vpop.f32.mrf.mxu1  ;;  %v3688_v1 = vadd.f32 %v3629_v30, %v3390_v5 }
 0x3f6   : > { %v3986_v16 = vadd.f32 %v3927_v29, %v3688_v1  ;;  %v4351_v1 = vld [vmem:[#allocation3 + $0xe1] sm:$0xff]  ;;  %v3393_v29 = vadd.f32 %v7979_v44, %v8012_v31 }
 0x3f8   : > { %v8178_v53 = vadd.f32 %v4225_v10, %v3986_v16  ;;  %v4634_v16 = vld [vmem:[#allocation3 + $0x32] sm:$0xff] }
 0x3f9   : > { %v8205_v31 = vpack.c.bf16 %v4635_v62, %v4634_v16  ;;  %v4636_v16 = vld [vmem:[#allocation3 + $0x4a] sm:$0xff] }
 0x3fa   : > { %v3929_v45 = vpop.f32.mrf.mxu3  ;;  %v4352_v62 = vld [vmem:[#allocation3 + $0xf1] sm:$0xff] }
 0x3fb   : > { %v4230_v23 = vpop.f32.mrf.mxu0  ;;  %v3631_v12 = vpop.f32.mrf.mxu2 }
 0x3fc   : > { %v8182_v41 = vpop.f32.mrf.mxu1  ;;  %v3689_v55 = vadd.f32 %v3631_v12, %v3391_v48  ;;  %v4350_v48 = vld [vmem:[#allocation3 + $0xd9] sm:$0xff]  ;;  %v4934_v12 = vld [vmem:[#allocation3 + $0x50] sm:$0xff] }
 0x3fd   : > { %v8198_v43 = vpack.c.bf16 %v4351_v1, %v4350_v48 }
 0x3fe   : > { %5382 = vmatmul.bf16.vlgmr.msra.gmra.mxu0 %v8020_v25  ;;  %v3987_v10 = vadd.f32 %v3929_v45, %v3689_v55  ;;  %4522 = vmatmul.bf16.gmra.mxu1 %v8184_v15 }
 0x3ff   : > { %5084 = vmatmul.bf16.vlgmr.msra.gmra.mxu3 %v4963_v38 }
 0x400   : > { %4785 = vmatmul.bf16.vlgmr.msra.gmra.mxu2 %v4664_v37  ;;  %v8188_v49 = vadd.f32 %v4227_v42, %v3987_v10  ;;  %v6646_v10 = vld [vmem:[%s8589_s3 + $0x210] sm:$0xff] }
 0x401   : > { %5677 = vmatpush.bf16.msra.mxu1 %v6646_v10 }
 0x402   : > { %v3932_v5 = vpop.f32.mrf.mxu3 }
 0x403   : > { %v4232_v39 = vpop.f32.mrf.mxu0  ;;  %v3634_v32 = vpop.f32.mrf.mxu2 }
 0x404   : > { %v8192_v19 = vpop.f32.mrf.mxu1  ;;  %v3690_v3 = vadd.f32 %v3634_v32, %v3392_v57 }
 0x406   : > { %v3988_v30 = vadd.f32 %v3932_v5, %v3690_v3 }
 0x408   : > { %v8194_v25 = vadd.f32 %v4230_v23, %v3988_v30  ;;  %v4933_v23 = vld [vmem:[#allocation3 + $0x48] sm:$0xff] }
 0x409   : > { %v4964_v60 = vpack.c.bf16 %v4934_v12, %v4933_v23  ;;  %v4936_v12 = vld [vmem:[#allocation3 + $0x68] sm:$0xff] }
 0x40a   : > { %v3934_v2 = vpop.f32.mrf.mxu3 }
 0x40b   : > { %v4235_v61 = vpop.f32.mrf.mxu0  ;;  %v3636_v42 = vpop.f32.mrf.mxu2 }
 0x40c   : > { %v3691_v24 = vadd.f32 %v3636_v42, %v3393_v29  ;;  %v4488_v6 = vpop.f32.mrf.mxu1  ;;  %v4353_v29 = vld [vmem:[#allocation3 + $0xf9] sm:$0xff] }
 0x40d   : > { %v8201_v55 = vadd.f32 %v4488_v6, %v7994_v40  ;;  %v3394_v40 = vadd.f32 %v7979_v44, %v8018_v59  ;;  %v4637_v59 = vld [vmem:[#allocation3 + $0x52] sm:$0xff]  ;;  %v8222_v23 = vpack.c.bf16 %v4353_v29, %v4352_v62 }
 0x40e   : > { %5387 = vmatmul.bf16.gmra.mxu0 %v8043_v27  ;;  %v3989_v45 = vadd.f32 %v3934_v2, %v3691_v24  ;;  %4527 = vmatmul.bf16.gmra.mxu1 %v8198_v43 }
 0x40f   : > { %5089 = vmatmul.bf16.gmra.mxu3 %v4964_v60 }
 0x410   : > { %4790 = vmatmul.bf16.gmra.mxu2 %v8205_v31  ;;  %v8211_v37 = vadd.f32 %v4232_v39, %v3989_v45  ;;  %v3395_v39 = vadd.f32 %v7979_v44, %v8032_v0  ;;  %v8229_v0 = vpack.c.bf16 %v4637_v59, %v4636_v16  ;;  %v3397_v16 = vadd.f32 %v7979_v44, %v8058_v34  ;;  %v4354_v59 = vld [vmem:[#allocation3 + $0x109] sm:$0xff] }
 0x412   : > { %v3937_v32 = vpop.f32.mrf.mxu3 }
 0x413   : > { %v4237_v27 = vpop.f32.mrf.mxu0  ;;  %v3639_v38 = vpop.f32.mrf.mxu2 }
 0x414   : > { %v3692_v57 = vadd.f32 %v3639_v38, %v3394_v40  ;;  %v4490_v3 = vpop.f32.mrf.mxu1  ;;  %v3396_v40 = vadd.f32 %v7979_v44, %v8041_v7  ;;  %v4639_v7 = vld [vmem:[#allocation3 + $0x6a] sm:$0xff] }
 0x415   : > { %v8216_v5 = vadd.f32 %v4490_v3, %v8008_v22 }
 0x416   : > { %v3990_v30 = vadd.f32 %v3937_v32, %v3692_v57 }
 0x418   : > { %v8218_v1 = vadd.f32 %v4235_v61, %v3990_v30  ;;  %v4935_v61 = vld [vmem:[#allocation3 + $0x60] sm:$0xff] }
 0x419   : > { %v4965_v60 = vpack.c.bf16 %v4936_v12, %v4935_v61  ;;  %v4938_v12 = vld [vmem:[#allocation3 + $0x80] sm:$0xff] }
 0x41a   : > { %v3939_v2 = vpop.f32.mrf.mxu3 }
 0x41b   : > { %v4240_v42 = vpop.f32.mrf.mxu0  ;;  %v3641_v48 = vpop.f32.mrf.mxu2 }
 0x41c   : > { %v3693_v24 = vadd.f32 %v3641_v48, %v3395_v39  ;;  %v4493_v6 = vpop.f32.mrf.mxu1  ;;  %v4355_v39 = vld [vmem:[#allocation3 + $0x111] sm:$0xff] }
 0x41d   : > { %v8225_v22 = vadd.f32 %v4493_v6, %v8014_v35  ;;  %v8243_v61 = vpack.c.bf16 %v4355_v39, %v4354_v59  ;;  %v4640_v59 = vld [vmem:[#allocation3 + $0x7a] sm:$0xff] }
 0x41e   : > { %5392 = vmatmul.bf16.gmra.mxu0 %v8066_v33  ;;  %v3991_v45 = vadd.f32 %v3939_v2, %v3693_v24  ;;  %4532 = vmatmul.bf16.gmra.mxu1 %v8222_v23 }
 0x41f   : > { %5094 = vmatmul.bf16.gmra.mxu3 %v4965_v60 }
 0x420   : > { %4795 = vmatmul.bf16.gmra.mxu2 %v8229_v0  ;;  %v8232_v10 = vadd.f32 %v4237_v27, %v3991_v45  ;;  %v4638_v27 = vld [vmem:[#allocation3 + $0x62] sm:$0xff] }
 0x421   : > { %v8250_v34 = vpack.c.bf16 %v4639_v7, %v4638_v27 }
 0x422   : > { %v3942_v32 = vpop.f32.mrf.mxu3 }
 0x423   : > { %v4242_v38 = vpop.f32.mrf.mxu0  ;;  %v3644_v35 = vpop.f32.mrf.mxu2 }
 0x424   : > { %v3694_v57 = vadd.f32 %v3644_v35, %v3396_v40  ;;  %v4495_v3 = vpop.f32.mrf.mxu1  ;;  %v6645_v40 = vld [vmem:[%s8589_s3 + $0x208] sm:$0xff] }
 0x425   : > { %v8237_v33 = vadd.f32 %v4495_v3, %v8025_v28  ;;  %5678 = vmatpush.bf16.msra.mxu1 %v6645_v40 }
 0x426   : > { %v3992_v30 = vadd.f32 %v3942_v32, %v3694_v57 }
 0x428   : > { %v8239_v29 = vadd.f32 %v4240_v42, %v3992_v30  ;;  %v4937_v42 = vld [vmem:[#allocation3 + $0x78] sm:$0xff] }
 0x429   : > { %v4966_v60 = vpack.c.bf16 %v4938_v12, %v4937_v42 }
 0x42a   : > { %v3944_v2 = vpop.f32.mrf.mxu3 }
 0x42b   : > { %v4245_v48 = vpop.f32.mrf.mxu0  ;;  %v3646_v62 = vpop.f32.mrf.mxu2 }
 0x42c   : > { %v3695_v24 = vadd.f32 %v3646_v62, %v3397_v16  ;;  %v4498_v6 = vpop.f32.mrf.mxu1  ;;  %v4357_v62 = vld [vmem:[#allocation3 + $0x129] sm:$0xff] }
 0x42d   : > { %v8246_v28 = vadd.f32 %v4498_v6, %v8037_v51  ;;  %v3398_v51 = vadd.f32 %v7979_v44, %v8064_v4  ;;  %v4641_v4 = vld [vmem:[#allocation3 + $0x82] sm:$0xff] }
 0x42e   : > { %5397 = vmatmul.bf16.gmra.mxu0 %v8092_v18  ;;  %v3993_v45 = vadd.f32 %v3944_v2, %v3695_v24  ;;  %4537 = vmatmul.bf16.gmra.mxu1 %v8243_v61  ;;  %v4356_v24 = vld [vmem:[#allocation3 + $0x121] sm:$0xff]  ;;  %v4940_v2 = vld [vmem:[#allocation3 + $0x98] sm:$0xff] }
 0x42f   : > { %5099 = vmatmul.bf16.gmra.mxu3 %v4966_v60  ;;  %v8267_v60 = vpack.c.bf16 %v4357_v62, %v4356_v24  ;;  %v3401_v24 = vadd.f32 %v7979_v44, %v8116_v63 }
 0x430   : > { %4800 = vmatmul.bf16.gmra.mxu2 %v8250_v34  ;;  %v8256_v35 = vadd.f32 %v4242_v38, %v3993_v45  ;;  %v3399_v38 = vadd.f32 %v7979_v44, %v8078_v21  ;;  %v8274_v21 = vpack.c.bf16 %v4641_v4, %v4640_v59 }
 0x432   : > { %v3947_v3 = vpop.f32.mrf.mxu3 }
 0x433   : > { %v4247_v18 = vpop.f32.mrf.mxu0  ;;  %v3649_v57 = vpop.f32.mrf.mxu2 }
 0x434   : > { %v3696_v32 = vadd.f32 %v3649_v57, %v3398_v51  ;;  %v4500_v30 = vpop.f32.mrf.mxu1 }
 0x435   : > { %v8261_v39 = vadd.f32 %v4500_v30, %v8054_v36 }
 0x436   : > { %v3994_v16 = vadd.f32 %v3947_v3, %v3696_v32  ;;  %v3400_v32 = vadd.f32 %v7979_v44, %v8090_v13  ;;  %v4643_v13 = vld [vmem:[#allocation3 + $0x9a] sm:$0xff] }
 0x438   : > { %v8263_v27 = vadd.f32 %v4245_v48, %v3994_v16  ;;  %v4939_v48 = vld [vmem:[#allocation3 + $0x90] sm:$0xff] }
 0x439   : > { %v4967_v51 = vpack.c.bf16 %v4940_v2, %v4939_v48 }
 0x43a   : > { %v3949_v42 = vpop.f32.mrf.mxu3 }
 0x43b   : > { %v4250_v7 = vpop.f32.mrf.mxu0  ;;  %v3651_v12 = vpop.f32.mrf.mxu2 }
 0x43c   : > { %v3697_v6 = vadd.f32 %v3651_v12, %v3399_v38  ;;  %v4503_v45 = vpop.f32.mrf.mxu1  ;;  %v4359_v12 = vld [vmem:[#allocation3 + $0x141] sm:$0xff] }
 0x43d   : > { %v8270_v36 = vadd.f32 %v4503_v45, %v8060_v58 }
 0x43e   : > { %5402 = vmatmul.bf16.gmra.mxu0 %v8142_v17  ;;  %v3995_v40 = vadd.f32 %v3949_v42, %v3697_v6  ;;  %4542 = vmatmul.bf16.gmra.mxu1 %v8267_v60  ;;  %v4358_v6 = vld [vmem:[#allocation3 + $0x139] sm:$0xff]  ;;  %v4942_v42 = vld [vmem:[#allocation3 + $0xb0] sm:$0xff] }
 0x43f   : > { %5104 = vmatmul.bf16.gmra.mxu3 %v4967_v51  ;;  %v8288_v51 = vpack.c.bf16 %v4359_v12, %v4358_v6 }
 0x440   : > { %4805 = vmatmul.bf16.gmra.mxu2 %v8274_v21  ;;  %v8277_v57 = vadd.f32 %v4247_v18, %v3995_v40  ;;  %v4642_v18 = vld [vmem:[#allocation3 + $0x92] sm:$0xff] }
 0x441   : > { %v8295_v63 = vpack.c.bf16 %v4643_v13, %v4642_v18  ;;  %v4361_v13 = vld [vmem:[#allocation3 + $0x159] sm:$0xff] }
 0x442   : > { %v3952_v16 = vpop.f32.mrf.mxu3 }
 0x443   : > { %v4252_v3 = vpop.f32.mrf.mxu0  ;;  %v3654_v58 = vpop.f32.mrf.mxu2 }
 0x444   : > { %v3698_v30 = vadd.f32 %v3654_v58, %v3400_v32  ;;  %v4505_v62 = vpop.f32.mrf.mxu1 }
 0x445   : > { %v8282_v17 = vadd.f32 %v4505_v62, %v8071_v56 }
 0x446   : > { %v3996_v38 = vadd.f32 %v3952_v16, %v3698_v30  ;;  %v6644_v30 = vld [vmem:[%s8589_s3 + $0x200] sm:$0xff] }
 0x447   : > { %5679 = vmatpush.bf16.msra.mxu1 %v6644_v30 }
 0x448   : > { %v8284_v59 = vadd.f32 %v4250_v7, %v3996_v38  ;;  %v4941_v7 = vld [vmem:[#allocation3 + $0xa8] sm:$0xff] }
 0x449   : > { %v4968_v58 = vpack.c.bf16 %v4942_v42, %v4941_v7  ;;  %v4644_v42 = vld [vmem:[#allocation3 + $0xaa] sm:$0xff] }
 0x44a   : > { %v3954_v48 = vpop.f32.mrf.mxu3  ;;  %v4944_v7 = vld [vmem:[#allocation3 + $0xc8] sm:$0xff] }
 0x44b   : > { %v4255_v4 = vpop.f32.mrf.mxu0  ;;  %v3656_v2 = vpop.f32.mrf.mxu2 }
 0x44c   : > { %v3699_v45 = vadd.f32 %v3656_v2, %v3401_v24  ;;  %v4508_v40 = vpop.f32.mrf.mxu1 }
 0x44d   : > { %v8291_v56 = vadd.f32 %v4508_v40, %v8083_v52  ;;  %v3402_v52 = vadd.f32 %v7979_v44, %v8140_v20  ;;  %v4360_v40 = vld [vmem:[#allocation3 + $0x151] sm:$0xff] }
 0x44e   : > { %5407 = vmatmul.bf16.gmra.mxu0 %v8165_v46  ;;  %v3997_v32 = vadd.f32 %v3954_v48, %v3699_v45  ;;  %4547 = vmatmul.bf16.gmra.mxu1 %v8288_v51  ;;  %v4645_v20 = vld [vmem:[#allocation3 + $0xb2] sm:$0xff] }
 0x44f   : > { %5109 = vmatmul.bf16.gmra.mxu3 %v4968_v58 }
 0x450   : > { %4810 = vmatmul.bf16.gmra.mxu2 %v8295_v63  ;;  %v8301_v16 = vadd.f32 %v4252_v3, %v3997_v32  ;;  %v3403_v3 = vadd.f32 %v7979_v44, %v8157_v14  ;;  %v8319_v14 = vpack.c.bf16 %v4645_v20, %v4644_v42  ;;  %v4363_v20 = vld [vmem:[#allocation3 + $0x171] sm:$0xff] }
 0x452   : > { %v3957_v12 = vpop.f32.mrf.mxu3 }
 0x453   : > { %v4257_v46 = vpop.f32.mrf.mxu0  ;;  %v3659_v62 = vpop.f32.mrf.mxu2 }
 0x454   : > { %v3700_v38 = vadd.f32 %v3659_v62, %v3402_v52  ;;  %v4510_v24 = vpop.f32.mrf.mxu1  ;;  %v8312_v52 = vpack.c.bf16 %v4361_v13, %v4360_v40 }
 0x455   : > { %v8306_v18 = vadd.f32 %v4510_v24, %v8103_v9  ;;  %v3404_v24 = vadd.f32 %v7979_v44, %v8163_v8  ;;  %v4647_v8 = vld [vmem:[#allocation3 + $0xca] sm:$0xff] }
 0x456   : > { %v3998_v2 = vadd.f32 %v3957_v12, %v3700_v38 }
 0x458   : > { %v8308_v6 = vadd.f32 %v4255_v4, %v3998_v2  ;;  %v4943_v4 = vld [vmem:[#allocation3 + $0xc0] sm:$0xff] }
 0x459   : > { %v4969_v38 = vpack.c.bf16 %v4944_v7, %v4943_v4  ;;  %v3405_v7 = vadd.f32 %v7979_v44, %v8176_v26  ;;  %v4946_v4 = vld [vmem:[#allocation3 + $0xe0] sm:$0xff] }
 0x45a   : > { %v3959_v58 = vpop.f32.mrf.mxu3 }
 0x45b   : > { %v4260_v45 = vpop.f32.mrf.mxu0  ;;  %v3661_v48 = vpop.f32.mrf.mxu2 }
 0x45c   : > { %v3701_v32 = vadd.f32 %v3661_v48, %v3403_v3  ;;  %v4513_v30 = vpop.f32.mrf.mxu1 }
 0x45d   : > { %v8315_v9 = vadd.f32 %v4513_v30, %v8127_v50  ;;  %v4362_v30 = vld [vmem:[#allocation3 + $0x169] sm:$0xff] }
 0x45e   : > { %5412 = vmatmul.bf16.gmra.mxu0 %v8184_v15  ;;  %v3999_v62 = vadd.f32 %v3959_v58, %v3701_v32  ;;  %4552 = vmatmul.bf16.gmra.mxu1 %v8312_v52 }
 0x45f   : > { %5114 = vmatmul.bf16.gmra.mxu3 %v4969_v38 }
 0x460   : > { %4815 = vmatmul.bf16.gmra.mxu2 %v8319_v14  ;;  %v8322_v12 = vadd.f32 %v4257_v46, %v3999_v62  ;;  %v4646_v46 = vld [vmem:[#allocation3 + $0xc2] sm:$0xff] }
 0x461   : > { %v8340_v26 = vpack.c.bf16 %v4647_v8, %v4646_v46  ;;  %v4365_v8 = vld [vmem:[#allocation3 + $0x189] sm:$0xff] }
 0x462   : > { %v3962_v3 = vpop.f32.mrf.mxu3 }
 0x463   : > { %v4262_v2 = vpop.f32.mrf.mxu0  ;;  %v3664_v50 = vpop.f32.mrf.mxu2 }
 0x464   : > { %v3702_v13 = vadd.f32 %v3664_v50, %v3404_v24  ;;  %v4515_v48 = vpop.f32.mrf.mxu1  ;;  %v8333_v50 = vpack.c.bf16 %v4363_v20, %v4362_v30 }
 0x465   : > { %v8327_v15 = vadd.f32 %v4515_v48, %v8153_v54 }
 0x466   : > { %v4000_v40 = vadd.f32 %v3962_v3, %v3702_v13 }
 0x468   : > { %v8329_v42 = vadd.f32 %v4260_v45, %v4000_v40  ;;  %v4945_v45 = vld [vmem:[#allocation3 + $0xd8] sm:$0xff]  ;;  %v3406_v40 = vadd.f32 %v7979_v44, %v8182_v41  ;;  %v4649_v41 = vld [vmem:[#allocation3 + $0xe2] sm:$0xff] }
 0x469   : > { %v4970_v3 = vpack.c.bf16 %v4946_v4, %v4945_v45  ;;  %v3407_v4 = vadd.f32 %v7979_v44, %v8192_v19  ;;  %v4364_v45 = vld [vmem:[#allocation3 + $0x181] sm:$0xff] }
 0x46a   : > { %v3964_v38 = vpop.f32.mrf.mxu3 }
 0x46b   : > { %v4265_v32 = vpop.f32.mrf.mxu0  ;;  %v3666_v58 = vpop.f32.mrf.mxu2 }
 0x46c   : > { %v3703_v62 = vadd.f32 %v3666_v58, %v3405_v7  ;;  %v4518_v24 = vpop.f32.mrf.mxu1 }
 0x46d   : > { %v8336_v54 = vadd.f32 %v4518_v24, %v8159_v47 }
 0x46e   : > { %5417 = vmatmul.bf16.gmra.mxu0 %v8198_v43  ;;  %v4001_v13 = vadd.f32 %v3964_v38, %v3703_v62  ;;  %4557 = vmatmul.bf16.gmra.mxu1 %v8333_v50 }
 0x46f   : > { %8626 = vst [vmem:[#allocation13_spill] sm:$0xff] %v8336_v54  ;;  %5119 = vmatmul.bf16.gmra.mxu3 %v4970_v3  ;;  %v8354_v54 = vpack.c.bf16 %v4365_v8, %v4364_v45 }
 0x470   : > { %4820 = vmatmul.bf16.gmra.mxu2 %v8340_v26  ;;  %v8343_v48 = vadd.f32 %v4262_v2, %v4001_v13  ;;  %v4648_v2 = vld [vmem:[#allocation3 + $0xda] sm:$0xff] }
 0x471   : > { %v4948_v13 = vld [vmem:[#allocation3 + $0xf8] sm:$0xff]  ;;  %v8361_v44 = vpack.c.bf16 %v4649_v41, %v4648_v2 }
 0x472   : > { %v3967_v58 = vpop.f32.mrf.mxu3  ;;  %v4650_v41 = vld [vmem:[#allocation3 + $0xf2] sm:$0xff] }
 0x473   : > { %v4267_v20 = vpop.f32.mrf.mxu0  ;;  %v3669_v47 = vpop.f32.mrf.mxu2 }
 0x474   : > { %v3704_v7 = vadd.f32 %v3669_v47, %v3406_v40  ;;  %v4520_v30 = vpop.f32.mrf.mxu1 }
 0x475   : > { %v8348_v43 = vadd.f32 %v4520_v30, %v8172_v11 }
 0x476   : > { %v4002_v62 = vadd.f32 %v3967_v58, %v3704_v7 }
 0x478   : > { %v8350_v46 = vadd.f32 %v4265_v32, %v4002_v62  ;;  %v4947_v32 = vld [vmem:[#allocation3 + $0xf0] sm:$0xff] }
 0x479   : > { %v4971_v19 = vpack.c.bf16 %v4948_v13, %v4947_v32  ;;  %v4651_v13 = vld [vmem:[#allocation3 + $0xfa] sm:$0xff] }
 0x47a   : > { %v3969_v40 = vpop.f32.mrf.mxu3 }
 0x47b   : > { %v5383_v38 = vpop.f32.mrf.mxu0  ;;  %v3671_v24 = vpop.f32.mrf.mxu2 }
 0x47c   : > { %v3705_v3 = vadd.f32 %v3671_v24, %v3407_v4  ;;  %v4523_v47 = vpop.f32.mrf.mxu1 }
 0x47d   : > { %v8357_v11 = vadd.f32 %v4523_v47, %v8178_v53 }
 0x47e   : > { %5422 = vmatmul.bf16.gmra.mxu0 %v8222_v23  ;;  %v4003_v7 = vadd.f32 %v3969_v40, %v3705_v3  ;;  %4562 = vmatmul.bf16.gmra.mxu1 %v8354_v54  ;;  %v4950_v3 = vld [vmem:[#allocation3 + $0x110] sm:$0xff] }
 0x47f   : > { %5124 = vmatmul.bf16.gmra.mxu3 %v4971_v19 }
 0x480   : > { %4825 = vmatmul.bf16.gmra.mxu2 %v8361_v44  ;;  %v8364_v58 = vadd.f32 %v4267_v20, %v4003_v7 }
 0x482   : > { %v5085_v4 = vpop.f32.mrf.mxu3 }
 0x483   : > { %v5385_v30 = vpop.f32.mrf.mxu0  ;;  %v4786_v62 = vpop.f32.mrf.mxu2 }
 0x484   : > { %v4525_v8 = vpop.f32.mrf.mxu1  ;;  %v4866_v53 = vadd.f32 %v4786_v62, %v8201_v55  ;;  %v4949_v55 = vld [vmem:[#allocation3 + $0x108] sm:$0xff] }
 0x485   : > { %v8368_v24 = vadd.f32 %v4525_v8, %v8188_v49  ;;  %v4972_v19 = vpack.c.bf16 %v4950_v3, %v4949_v55  ;;  %v4952_v3 = vld [vmem:[#allocation3 + $0x128] sm:$0xff] }
 0x486   : > { %v5165_v23 = vadd.f32 %v5085_v4, %v4866_v53 }
 0x488   : > { %v8370_v45 = vadd.f32 %v5383_v38, %v5165_v23  ;;  %v8378_v38 = vpack.c.bf16 %v4651_v13, %v4650_v41  ;;  %v4652_v41 = vld [vmem:[#allocation3 + $0x10a] sm:$0xff]  ;;  %v4653_v13 = vld [vmem:[#allocation3 + $0x112] sm:$0xff] }
 0x489   : > { %v8395_v55 = vpack.c.bf16 %v4653_v13, %v4652_v41  ;;  %v4655_v41 = vld [vmem:[#allocation3 + $0x12a] sm:$0xff]  ;;  %v4954_v13 = vld [vmem:[#allocation3 + $0x140] sm:$0xff] }
 0x48a   : > { %v5087_v47 = vpop.f32.mrf.mxu3 }
 0x48b   : > { %v4788_v2 = vpop.f32.mrf.mxu2  ;;  %v5388_v32 = vpop.f32.mrf.mxu0 }
 0x48c   : > { %v4528_v40 = vpop.f32.mrf.mxu1  ;;  %v4867_v20 = vadd.f32 %v4788_v2, %v8216_v5 }
 0x48d   : > { %v8374_v7 = vadd.f32 %v4528_v40, %v8194_v25 }
 0x48e   : > { %5427 = vmatmul.bf16.gmra.mxu0 %v8243_v61  ;;  %v5166_v49 = vadd.f32 %v5087_v47, %v4867_v20  ;;  %5680 = vmatmul.bf16.vlgmr.msra.gmra.mxu1 %v8205_v31 }
 0x48f   : > { %5129 = vmatmul.bf16.gmra.mxu3 %v4972_v19 }
 0x490   : > { %4830 = vmatmul.bf16.gmra.mxu2 %v8378_v38  ;;  %v8381_v62 = vadd.f32 %v5385_v30, %v5166_v49 }
 0x492   : > { %v5090_v25 = vpop.f32.mrf.mxu3 }
 0x493   : > { %v4791_v5 = vpop.f32.mrf.mxu2  ;;  %v5390_v23 = vpop.f32.mrf.mxu0 }
 0x494   : > { %v4530_v8 = vpop.f32.mrf.mxu1  ;;  %v4868_v53 = vadd.f32 %v4791_v5, %v8225_v22  ;;  %v4951_v22 = vld [vmem:[#allocation3 + $0x120] sm:$0xff] }
 0x495   : > { %v8385_v4 = vadd.f32 %v4530_v8, %v8211_v37 }
 0x496   : > { %v5167_v61 = vadd.f32 %v5090_v25, %v4868_v53 }
 0x498   : > { %v8387_v2 = vadd.f32 %v5388_v32, %v5167_v61  ;;  %v4973_v32 = vpack.c.bf16 %v4952_v3, %v4951_v22 }
 0x49a   : > { %v5092_v20 = vpop.f32.mrf.mxu3 }
 0x49b   : > { %v4793_v31 = vpop.f32.mrf.mxu2  ;;  %v5393_v19 = vpop.f32.mrf.mxu0 }
 0x49c   : > { %v4533_v40 = vpop.f32.mrf.mxu1  ;;  %v4869_v30 = vadd.f32 %v4793_v31, %v8237_v33  ;;  %v4654_v31 = vld [vmem:[#allocation3 + $0x122] sm:$0xff] }
 0x49d   : > { %v8391_v47 = vadd.f32 %v4533_v40, %v8218_v1 }
 0x49e   : > { %5432 = vmatmul.bf16.gmra.mxu0 %v8267_v60  ;;  %v5168_v37 = vadd.f32 %v5092_v20, %v4869_v30  ;;  %5685 = vmatmul.bf16.gmra.mxu1 %v8229_v0  ;;  %v8412_v20 = vpack.c.bf16 %v4655_v41, %v4654_v31 }
 0x49f   : > { %5134 = vmatmul.bf16.gmra.mxu3 %v4973_v32 }
 0x4a0   : > { %4835 = vmatmul.bf16.gmra.mxu2 %v8395_v55  ;;  %v8398_v49 = vadd.f32 %v5390_v23, %v5168_v37 }
 0x4a2   : > { %v5095_v8 = vpop.f32.mrf.mxu3 }
 0x4a3   : > { %v4796_v33 = vpop.f32.mrf.mxu2  ;;  %v5395_v0 = vpop.f32.mrf.mxu0 }
 0x4a4   : > { %v4535_v5 = vpop.f32.mrf.mxu1  ;;  %v4870_v1 = vadd.f32 %v4796_v33, %v8246_v28  ;;  %v4953_v28 = vld [vmem:[#allocation3 + $0x138] sm:$0xff] }
 0x4a5   : > { %v8402_v53 = vadd.f32 %v4535_v5, %v8232_v10  ;;  %v4974_v22 = vpack.c.bf16 %v4954_v13, %v4953_v28 }
 0x4a6   : > { %v5169_v60 = vadd.f32 %v5095_v8, %v4870_v1  ;;  %v4656_v8 = vld [vmem:[#allocation3 + $0x13a] sm:$0xff] }
 0x4a8   : > { %v8404_v25 = vadd.f32 %v5393_v19, %v5169_v60  ;;  %v4657_v60 = vld [vmem:[#allocation3 + $0x142] sm:$0xff] }
 0x4aa   : > { %v5097_v40 = vpop.f32.mrf.mxu3 }
 0x4ab   : > { %v4798_v61 = vpop.f32.mrf.mxu2  ;;  %v5398_v33 = vpop.f32.mrf.mxu0 }
 0x4ac   : > { %v4538_v3 = vpop.f32.mrf.mxu1  ;;  %v4871_v23 = vadd.f32 %v4798_v61, %v8261_v39  ;;  %v4956_v61 = vld [vmem:[#allocation3 + $0x158] sm:$0xff] }
 0x4ad   : > { %v8408_v30 = vadd.f32 %v4538_v3, %v8239_v29 }
 0x4ae   : > { %5437 = vmatmul.bf16.gmra.mxu0 %v8288_v51  ;;  %v5170_v10 = vadd.f32 %v5097_v40, %v4871_v23  ;;  %5690 = vmatmul.bf16.gmra.mxu1 %v8250_v34 }
 0x4af   : > { %5139 = vmatmul.bf16.gmra.mxu3 %v4974_v22  ;;  %v4659_v22 = vld [vmem:[#allocation3 + $0x15a] sm:$0xff] }
 0x4b0   : > { %4840 = vmatmul.bf16.gmra.mxu2 %v8412_v20  ;;  %v8415_v37 = vadd.f32 %v5395_v0, %v5170_v10  ;;  %v4658_v10 = vld [vmem:[#allocation3 + $0x152] sm:$0xff] }
 0x4b2   : > { %v5100_v29 = vpop.f32.mrf.mxu3 }
 0x4b3   : > { %v4801_v32 = vpop.f32.mrf.mxu2  ;;  %v5400_v40 = vpop.f32.mrf.mxu0 }
 0x4b4   : > { %v4540_v39 = vpop.f32.mrf.mxu1  ;;  %v4872_v19 = vadd.f32 %v4801_v32, %v8270_v36  ;;  %v4955_v36 = vld [vmem:[#allocation3 + $0x150] sm:$0xff] }
 0x4b5   : > { %v8419_v5 = vadd.f32 %v4540_v39, %v8256_v35  ;;  %v8429_v35 = vpack.c.bf16 %v4657_v60, %v4656_v8  ;;  %v4975_v23 = vpack.c.bf16 %v4956_v61, %v4955_v36  ;;  %v4958_v32 = vld [vmem:[#allocation3 + $0x170] sm:$0xff]  ;;  %v4960_v8 = vld [vmem:[#allocation3 + $0x188] sm:$0xff] }
 0x4b6   : > { %v5171_v51 = vadd.f32 %v5100_v29, %v4872_v19  ;;  %v8442_v19 = vpack.c.bf16 %v4659_v22, %v4658_v10 }
 0x4b8   : > { %v8421_v1 = vadd.f32 %v5398_v33, %v5171_v51  ;;  %v4660_v51 = vld [vmem:[#allocation3 + $0x16a] sm:$0xff] }
 0x4ba   : > { %v5102_v13 = vpop.f32.mrf.mxu3 }
 0x4bb   : > { %v4803_v34 = vpop.f32.mrf.mxu2 }
 0x4bc   : > { %v4543_v31 = vpop.f32.mrf.mxu1  ;;  %v4873_v0 = vadd.f32 %v4803_v34, %v8282_v17  ;;  %v4661_v34 = vld [vmem:[#allocation3 + $0x172] sm:$0xff] }
 0x4bd   : > { %v8425_v41 = vadd.f32 %v4543_v31, %v8263_v27 }
 0x4be   : > { %5442 = vmatmul.bf16.gmra.mxu0 %v8312_v52  ;;  %v5172_v3 = vadd.f32 %v5102_v13, %v4873_v0  ;;  %5695 = vmatmul.bf16.gmra.mxu1 %v8274_v21  ;;  %v4957_v21 = vld [vmem:[#allocation3 + $0x168] sm:$0xff]  ;;  %v5259_v0 = vld [vmem:[#allocation3 + $0x199] sm:$0xff] }
 0x4bf   : > { %5144 = vmatmul.bf16.gmra.mxu3 %v4975_v23  ;;  %v4976_v29 = vpack.c.bf16 %v4958_v32, %v4957_v21  ;;  %v5260_v13 = vld [vmem:[#allocation3 + $0x1a1] sm:$0xff] }
 0x4c0   : > { %4845 = vmatmul.bf16.gmra.mxu2 %v8429_v35  ;;  %v8432_v28 = vadd.f32 %v5400_v40, %v5172_v3  ;;  %v5276_v36 = vpack.c.bf16 %v5260_v13, %v5259_v0  ;;  %v4663_v3 = vld [vmem:[#allocation3 + $0x18a] sm:$0xff] }
 0x4c4   : > { %v4545_v17 = vpop.f32.mrf.mxu1 }
 0x4c5   : > { %v8435_v27 = vadd.f32 %v4545_v17, %v8277_v57 }
 0x4cc   : > { %v4548_v52 = vpop.f32.mrf.mxu1 }
 0x4cd   : > { %v8438_v39 = vadd.f32 %v4548_v52, %v8284_v59 }
 0x4ce   : > { %5447 = vmatmul.bf16.gmra.mxu0 %v8333_v50  ;;  %5700 = vmatmul.bf16.gmra.mxu1 %v8295_v63  ;;  %v4959_v50 = vld [vmem:[#allocation3 + $0x180] sm:$0xff]  ;;  %v8453_v63 = vpack.c.bf16 %v4661_v34, %v4660_v51  ;;  %v5403_v51 = vpop.f32.mrf.mxu0 }
 0x4cf   : > { %5149 = vmatmul.bf16.gmra.mxu3 %v4976_v29  ;;  %v4977_v61 = vpack.c.bf16 %v4960_v8, %v4959_v50 }
 0x4d0   : > { %4850 = vmatmul.bf16.gmra.mxu2 %v8442_v19 }
 0x4d4   : > { %v4550_v57 = vpop.f32.mrf.mxu1 }
 0x4d5   : > { %v8446_v33 = vadd.f32 %v4550_v57, %v8301_v16  ;;  %v5105_v57 = vpop.f32.mrf.mxu3 }
 0x4dc   : > { %v4553_v59 = vpop.f32.mrf.mxu1 }
 0x4dd   : > { %v8449_v60 = vadd.f32 %v4553_v59, %v8308_v6  ;;  %v4662_v6 = vld [vmem:[#allocation3 + $0x182] sm:$0xff]  ;;  %v5107_v59 = vpop.f32.mrf.mxu3 }
 0x4de   : > { %5452 = vmatmul.bf16.gmra.mxu0 %v8354_v54  ;;  %5705 = vmatmul.bf16.gmra.mxu1 %v8319_v14  ;;  %v6700_v54 = vld [vmem:[#allocation3] sm:$0xff]  ;;  %v8463_v17 = vpack.c.bf16 %v4663_v3, %v4662_v6 }
 0x4df   : > { %5154 = vmatmul.bf16.gmra.mxu3 %v4977_v61  ;;  %v4978_v14 = vpack.c.bf16 %v6700_v54, %v6700_v54  ;;  %v5405_v61 = vpop.f32.mrf.mxu0 }
 0x4e0   : > { %4855 = vmatmul.bf16.gmra.mxu2 %v8453_v63 }
 0x4e4   : > { %v4555_v16 = vpop.f32.mrf.mxu1 }
 0x4e5   : > { %v8457_v31 = vadd.f32 %v4555_v16, %v8322_v12  ;;  %v5110_v13 = vpop.f32.mrf.mxu3 }
 0x4ec   : > { %v4558_v23 = vpop.f32.mrf.mxu1 }
 0x4ed   : > { %v8460_v40 = vadd.f32 %v4558_v23, %v8329_v42 }
 0x4ee   : > { %5710 = vmatmul.bf16.gmra.mxu1 %v8340_v26  ;;  %5457 = vmatmul.bf16.gmra.mxu0 %v5276_v36 }
 0x4ef   : > { %5159 = vmatmul.bf16.gmra.mxu3 %v4978_v14  ;;  %v5112_v14 = vpop.f32.mrf.mxu3 }
 0x4f0   : > { %4860 = vmatmul.bf16.gmra.mxu2 %v8463_v17 }
 0x4f4   : > { %v4560_v12 = vpop.f32.mrf.mxu1 }
 0x4f5   : > { %v8467_v10 = vadd.f32 %v4560_v12, %v8343_v48 }
 0x4fc   : > { %v4563_v22 = vpop.f32.mrf.mxu1 }
 0x4fd   : > { %v8470_v32 = vadd.f32 %v4563_v22, %v8350_v46  ;;  %v4806_v46 = vpop.f32.mrf.mxu2 }
 0x4fe   : > { %5715 = vmatmul.bf16.gmra.mxu1 %v8361_v44 }
 0x504   : > { %v4565_v42 = vpop.f32.mrf.mxu1 }
 0x505   : > { %v8474_v52 = vadd.f32 %v4565_v42, %v8364_v58  ;;  %v4808_v34 = vpop.f32.mrf.mxu2 }
 0x50c   : > { %v5681_v26 = vpop.f32.mrf.mxu1 }
 0x50d   : > { %v5761_v21 = vadd.f32 %v5681_v26, %v8370_v45 }
 0x50e   : > { %5720 = vmatmul.bf16.gmra.mxu1 %v8378_v38 }
 0x50f   : > { %v5857_v48 = vmax.f32 %v5761_v21, 0.0  ;;  %v4874_v21 = vadd.f32 %v4806_v46, %v8291_v56 }
 0x511   : > { %5889 = vst [vmem:[%s8481_s25] sm:$0xff] %v5857_v48 }
 0x514   : > { %v5683_v44 = vpop.f32.mrf.mxu1 }
 0x515   : > { %v5762_v58 = vadd.f32 %v5683_v44, %v8381_v62  ;;  %v4811_v62 = vpop.f32.mrf.mxu2 }
 0x517   : > { %v5858_v29 = vmax.f32 %v5762_v58, 0.0 }
 0x519   : > { %5890 = vst [vmem:[%s8481_s25 + $0x8] sm:$0xff] %v5858_v29  ;;  %v5173_v29 = vadd.f32 %v5105_v57, %v4874_v21 }
 0x51c   : > { %v5686_v45 = vpop.f32.mrf.mxu1 }
 0x51d   : > { %v5763_v38 = vadd.f32 %v5686_v45, %v8387_v2  ;;  %v5408_v2 = vpop.f32.mrf.mxu0  ;;  %v4813_v3 = vpop.f32.mrf.mxu2 }
 0x51e   : > { %5725 = vmatmul.bf16.gmra.mxu1 %v8395_v55 }
 0x51f   : > { %v5859_v8 = vmax.f32 %v5763_v38, 0.0 }
 0x521   : > { %5891 = vst [vmem:[%s8481_s25 + $0x10] sm:$0xff] %v5859_v8  ;;  %v4875_v8 = vadd.f32 %v4808_v34, %v8306_v18 }
 0x523   : > { %v5174_v56 = vadd.f32 %v5107_v59, %v4875_v8 }
 0x524   : > { %v5688_v50 = vpop.f32.mrf.mxu1 }
 0x525   : > { %v5764_v16 = vadd.f32 %v5688_v50, %v8398_v49  ;;  %v5410_v12 = vpop.f32.mrf.mxu0  ;;  %v4816_v22 = vpop.f32.mrf.mxu2 }
 0x527   : > { %v5860_v0 = vmax.f32 %v5764_v16, 0.0 }
 0x529   : > { %5892 = vst [vmem:[%s8481_s25 + $0x18] sm:$0xff] %v5860_v0 }
 0x52c   : > { %v5691_v36 = vpop.f32.mrf.mxu1 }
 0x52d   : > { %v5765_v6 = vadd.f32 %v5691_v36, %v8404_v25  ;;  %v5413_v48 = vpop.f32.mrf.mxu0  ;;  %v4818_v44 = vpop.f32.mrf.mxu2  ;;  %v4876_v36 = vadd.f32 %v4811_v62, %v8315_v9 }
 0x52e   : > { %5730 = vmatmul.bf16.gmra.mxu1 %v8412_v20  ;;  %v5115_v20 = vpop.f32.mrf.mxu3 }
 0x52f   : > { %v5861_v55 = vmax.f32 %v5765_v6, 0.0 }
 0x531   : > { %5893 = vst [vmem:[%s8481_s25 + $0x20] sm:$0xff] %v5861_v55 }
 0x534   : > { %v5693_v23 = vpop.f32.mrf.mxu1 }
 0x535   : > { %v5766_v54 = vadd.f32 %v5693_v23, %v8415_v37  ;;  %v4821_v0 = vpop.f32.mrf.mxu2  ;;  %v5175_v23 = vadd.f32 %v5110_v13, %v4876_v36 }
 0x536   : > { %v5117_v38 = vpop.f32.mrf.mxu3 }
 0x537   : > { %v5862_v49 = vmax.f32 %v5766_v54, 0.0  ;;  %v4877_v54 = vadd.f32 %v4813_v3, %v8327_v15  ;;  %v4879_v3 = vadd.f32 %v4818_v44, %v8348_v43  ;;  %v5557_v44 = vld [vmem:[#allocation3 + $0x19a] sm:$0xff] }
 0x539   : > { %5894 = vst [vmem:[%s8481_s25 + $0x28] sm:$0xff] %v5862_v49  ;;  %v5473_v49 = vadd.f32 %v5408_v2, %v5175_v23  ;;  %v5176_v9 = vadd.f32 %v5112_v14, %v4877_v54 }
 0x53b   : > { %v5474_v21 = vadd.f32 %v5410_v12, %v5176_v9 }
 0x53c   : > { %v5696_v42 = vpop.f32.mrf.mxu1 }
 0x53d   : > { %v5767_v26 = vadd.f32 %v5696_v42, %v8421_v1  ;;  %v5471_v1 = vadd.f32 %v5403_v51, %v5173_v29  ;;  %v4823_v34 = vpop.f32.mrf.mxu2 }
 0x53e   : > { %5735 = vmatmul.bf16.gmra.mxu1 %v8429_v35  ;;  %v5415_v35 = vpop.f32.mrf.mxu0  ;;  %v5120_v57 = vpop.f32.mrf.mxu3 }
 0x53f   : > { %v5863_v25 = vmax.f32 %v5767_v26, 0.0 }
 0x541   : > { %5895 = vst [vmem:[%s8481_s25 + $0x30] sm:$0xff] %v5863_v25  ;;  %v8627_v25 = vld [vmem:[#allocation13_spill] sm:$0xff] }
 0x542   : > { %v4878_v13 = vadd.f32 %v4816_v22, %v8627_v25 }
 0x544   : > { %v5698_v37 = vpop.f32.mrf.mxu1  ;;  %v5177_v29 = vadd.f32 %v5115_v20, %v4878_v13 }
 0x545   : > { %v5768_v58 = vadd.f32 %v5698_v37, %v8432_v28  ;;  %v5472_v28 = vadd.f32 %v5405_v61, %v5174_v56  ;;  %v4826_v26 = vpop.f32.mrf.mxu2 }
 0x546   : > { %v5418_v18 = vpop.f32.mrf.mxu0  ;;  %v5122_v59 = vpop.f32.mrf.mxu3  ;;  %v5475_v8 = vadd.f32 %v5413_v48, %v5177_v29 }
 0x547   : > { %v5864_v45 = vmax.f32 %v5768_v58, 0.0 }
 0x549   : > { %5896 = vst [vmem:[%s8481_s25 + $0x38] sm:$0xff] %v5864_v45 }
 0x54c   : > { %v5701_v50 = vpop.f32.mrf.mxu1 }
 0x54d   : > { %v5769_v16 = vadd.f32 %v5701_v50, %v5471_v1  ;;  %v5178_v50 = vadd.f32 %v5117_v38, %v4879_v3 }
 0x54e   : > { %5740 = vmatmul.bf16.gmra.mxu1 %v8442_v19  ;;  %v5420_v62 = vpop.f32.mrf.mxu0  ;;  %v5125_v2 = vpop.f32.mrf.mxu3 }
 0x54f   : > { %v5865_v46 = vmax.f32 %v5769_v16, 0.0  ;;  %v4880_v16 = vadd.f32 %v4821_v0, %v8357_v11  ;;  %v5476_v20 = vadd.f32 %v5415_v35, %v5178_v50 }
 0x551   : > { %5897 = vst [vmem:[%s8481_s25 + $0x40] sm:$0xff] %v5865_v46  ;;  %v5179_v43 = vadd.f32 %v5120_v57, %v4880_v16  ;;  %v4882_v57 = vadd.f32 %v4826_v26, %v8374_v7 }
 0x553   : > { %v5477_v38 = vadd.f32 %v5418_v18, %v5179_v43  ;;  %v5181_v25 = vadd.f32 %v5125_v2, %v4882_v57 }
 0x554   : > { %v5703_v6 = vpop.f32.mrf.mxu1 }
 0x555   : > { %v5770_v55 = vadd.f32 %v5703_v6, %v5472_v28  ;;  %v5558_v6 = vld [vmem:[#allocation3 + $0x1a2] sm:$0xff] }
 0x556   : > { %v5423_v45 = vpop.f32.mrf.mxu0  ;;  %v5127_v12 = vpop.f32.mrf.mxu3 }
 0x557   : > { %v5866_v51 = vmax.f32 %v5770_v55, 0.0  ;;  %v5574_v55 = vpack.c.bf16 %v5558_v6, %v5557_v44 }
 0x559   : > { %5898 = vst [vmem:[%s8481_s25 + $0x48] sm:$0xff] %v5866_v51 }
 0x55c   : > { %v5706_v42 = vpop.f32.mrf.mxu1 }
 0x55d   : > { %v5771_v19 = vadd.f32 %v5706_v42, %v5473_v49 }
 0x55e   : > { %5745 = vmatmul.bf16.gmra.mxu1 %v8453_v63  ;;  %v4828_v63 = vpop.f32.mrf.mxu2  ;;  %v5425_v46 = vpop.f32.mrf.mxu0 }
 0x55f   : > { %v5867_v61 = vmax.f32 %v5771_v19, 0.0  ;;  %v5130_v23 = vpop.f32.mrf.mxu3  ;;  %v4883_v13 = vadd.f32 %v4828_v63, %v8385_v4 }
 0x561   : > { %5899 = vst [vmem:[%s8481_s25 + $0x50] sm:$0xff] %v5867_v61 }
 0x564   : > { %v5708_v37 = vpop.f32.mrf.mxu1 }
 0x565   : > { %v5772_v58 = vadd.f32 %v5708_v37, %v5474_v21 }
 0x566   : > { %v4831_v28 = vpop.f32.mrf.mxu2  ;;  %v5428_v35 = vpop.f32.mrf.mxu0 }
 0x567   : > { %v5868_v15 = vmax.f32 %v5772_v58, 0.0  ;;  %v5132_v61 = vpop.f32.mrf.mxu3  ;;  %v5182_v58 = vadd.f32 %v5127_v12, %v4883_v13  ;;  %v4884_v7 = vadd.f32 %v4831_v28, %v8391_v47 }
 0x569   : > { %5900 = vst [vmem:[%s8481_s25 + $0x58] sm:$0xff] %v5868_v15  ;;  %v5480_v26 = vadd.f32 %v5425_v46, %v5182_v58 }
 0x56c   : > { %v5711_v14 = vpop.f32.mrf.mxu1 }
 0x56d   : > { %v5773_v1 = vadd.f32 %v5711_v14, %v5475_v8  ;;  %v5183_v14 = vadd.f32 %v5130_v23, %v4884_v7 }
 0x56e   : > { %5750 = vmatmul.bf16.gmra.mxu1 %v8463_v17  ;;  %v4881_v17 = vadd.f32 %v4823_v34, %v8368_v24  ;;  %v4833_v49 = vpop.f32.mrf.mxu2  ;;  %v5430_v18 = vpop.f32.mrf.mxu0 }
 0x56f   : > { %v5869_v22 = vmax.f32 %v5773_v1, 0.0  ;;  %v5135_v15 = vpop.f32.mrf.mxu3  ;;  %v5481_v63 = vadd.f32 %v5428_v35, %v5183_v14 }
 0x570   : > { %v5180_v11 = vadd.f32 %v5122_v59, %v4881_v17  ;;  %v5479_v59 = vadd.f32 %v5423_v45, %v5181_v25  ;;  %v4885_v45 = vadd.f32 %v4833_v49, %v8402_v53 }
 0x571   : > { %5901 = vst [vmem:[%s8481_s25 + $0x60] sm:$0xff] %v5869_v22 }
 0x572   : > { %v5478_v42 = vadd.f32 %v5420_v62, %v5180_v11 }
 0x574   : > { %v5713_v56 = vpop.f32.mrf.mxu1 }
 0x575   : > { %v5774_v36 = vadd.f32 %v5713_v56, %v5476_v20  ;;  %v5184_v20 = vadd.f32 %v5132_v61, %v4885_v45 }
 0x576   : > { %v4836_v34 = vpop.f32.mrf.mxu2  ;;  %v5433_v62 = vpop.f32.mrf.mxu0 }
 0x577   : > { %v5870_v48 = vmax.f32 %v5774_v36, 0.0  ;;  %v5137_v4 = vpop.f32.mrf.mxu3  ;;  %v4886_v56 = vadd.f32 %v4836_v34, %v8408_v30  ;;  %v5482_v46 = vadd.f32 %v5430_v18, %v5184_v20 }
 0x579   : > { %5902 = vst [vmem:[%s8481_s25 + $0x68] sm:$0xff] %v5870_v48  ;;  %v5185_v48 = vadd.f32 %v5135_v15, %v4886_v56 }
 0x57b   : > { %v5483_v17 = vadd.f32 %v5433_v62, %v5185_v48 }
 0x57c   : > { %v5716_v51 = vpop.f32.mrf.mxu1 }
 0x57d   : > { %v5775_v54 = vadd.f32 %v5716_v51, %v5477_v38 }
 0x57e   : > { %5755 = vmatmul.bf16.gmra.mxu1 %v5574_v55  ;;  %v4838_v2 = vpop.f32.mrf.mxu2  ;;  %v5435_v22 = vpop.f32.mrf.mxu0 }
 0x57f   : > { %v5871_v0 = vmax.f32 %v5775_v54, 0.0  ;;  %v5140_v36 = vpop.f32.mrf.mxu3  ;;  %v4887_v55 = vadd.f32 %v4838_v2, %v8419_v5 }
 0x581   : > { %5903 = vst [vmem:[%s8481_s25 + $0x70] sm:$0xff] %v5871_v0  ;;  %v5186_v54 = vadd.f32 %v5137_v4, %v4887_v55 }
 0x583   : > { %v5484_v49 = vadd.f32 %v5435_v22, %v5186_v54 }
 0x584   : > { %v5718_v19 = vpop.f32.mrf.mxu1 }
 0x585   : > { %v5776_v9 = vadd.f32 %v5718_v19, %v5478_v42 }
 0x586   : > { %v4841_v16 = vpop.f32.mrf.mxu2  ;;  %v5438_v44 = vpop.f32.mrf.mxu0 }
 0x587   : > { %v5872_v24 = vmax.f32 %v5776_v9, 0.0  ;;  %v5142_v51 = vpop.f32.mrf.mxu3  ;;  %v4888_v0 = vadd.f32 %v4841_v16, %v8425_v41 }
 0x589   : > { %5904 = vst [vmem:[%s8481_s25 + $0x78] sm:$0xff] %v5872_v24  ;;  %v5187_v19 = vadd.f32 %v5140_v36, %v4888_v0 }
 0x58b   : > { %v5485_v24 = vadd.f32 %v5438_v44, %v5187_v19 }
 0x58c   : > { %v5721_v21 = vpop.f32.mrf.mxu1 }
 0x58d   : > { %v5777_v37 = vadd.f32 %v5721_v21, %v5479_v59 }
 0x58e   : > { %v4843_v53 = vpop.f32.mrf.mxu2  ;;  %v5440_v30 = vpop.f32.mrf.mxu0 }
 0x58f   : > { %v5873_v29 = vmax.f32 %v5777_v37, 0.0  ;;  %v5145_v61 = vpop.f32.mrf.mxu3  ;;  %v4889_v25 = vadd.f32 %v4843_v53, %v8435_v27 }
 0x591   : > { %5905 = vst [vmem:[%s8481_s25 + $0x80] sm:$0xff] %v5873_v29  ;;  %v5188_v59 = vadd.f32 %v5142_v51, %v4889_v25 }
 0x593   : > { %v5486_v58 = vadd.f32 %v5440_v30, %v5188_v59 }
 0x594   : > { %v5723_v3 = vpop.f32.mrf.mxu1 }
 0x595   : > { %v5778_v8 = vadd.f32 %v5723_v3, %v5480_v26 }
 0x596   : > { %v4846_v35 = vpop.f32.mrf.mxu2  ;;  %v5443_v5 = vpop.f32.mrf.mxu0 }
 0x597   : > { %v5874_v1 = vmax.f32 %v5778_v8, 0.0  ;;  %v5147_v41 = vpop.f32.mrf.mxu3  ;;  %v4890_v37 = vadd.f32 %v4846_v35, %v8438_v39 }
 0x599   : > { %5906 = vst [vmem:[%s8481_s25 + $0x88] sm:$0xff] %v5874_v1  ;;  %v5189_v26 = vadd.f32 %v5145_v61, %v4890_v37 }
 0x59b   : > { %v5487_v3 = vadd.f32 %v5443_v5, %v5189_v26 }
 0x59c   : > { %v5726_v50 = vpop.f32.mrf.mxu1 }
 0x59d   : > { %v5779_v12 = vadd.f32 %v5726_v50, %v5481_v63 }
 0x59e   : > { %v4848_v18 = vpop.f32.mrf.mxu2  ;;  %v5445_v15 = vpop.f32.mrf.mxu0 }
 0x59f   : > { %v5875_v47 = vmax.f32 %v5779_v12, 0.0  ;;  %v4891_v27 = vadd.f32 %v4848_v18, %v8446_v33  ;;  %v5150_v8 = vpop.f32.mrf.mxu3 }
 0x5a1   : > { %5907 = vst [vmem:[%s8481_s25 + $0x90] sm:$0xff] %v5875_v47  ;;  %v5190_v45 = vadd.f32 %v5147_v41, %v4891_v27 }
 0x5a3   : > { %v5488_v22 = vadd.f32 %v5445_v15, %v5190_v45 }
 0x5a4   : > { %v5728_v28 = vpop.f32.mrf.mxu1 }
 0x5a5   : > { %v5780_v43 = vadd.f32 %v5728_v28, %v5482_v46 }
 0x5a6   : > { %v4851_v62 = vpop.f32.mrf.mxu2  ;;  %v5448_v4 = vpop.f32.mrf.mxu0 }
 0x5a7   : > { %v5876_v6 = vmax.f32 %v5780_v43, 0.0  ;;  %v4892_v50 = vadd.f32 %v4851_v62, %v8449_v60  ;;  %v5152_v20 = vpop.f32.mrf.mxu3 }
 0x5a9   : > { %5908 = vst [vmem:[%s8481_s25 + $0x98] sm:$0xff] %v5876_v6  ;;  %v5191_v47 = vadd.f32 %v5150_v8, %v4892_v50 }
 0x5ab   : > { %v5489_v28 = vadd.f32 %v5448_v4, %v5191_v47 }
 0x5ac   : > { %v5731_v38 = vpop.f32.mrf.mxu1 }
 0x5ad   : > { %v5781_v23 = vadd.f32 %v5731_v38, %v5483_v17 }
 0x5ae   : > { %v4853_v39 = vpop.f32.mrf.mxu2  ;;  %v5450_v33 = vpop.f32.mrf.mxu0 }
 0x5af   : > { %v5877_v11 = vmax.f32 %v5781_v23, 0.0  ;;  %v4893_v36 = vadd.f32 %v4853_v39, %v8457_v31  ;;  %v5155_v53 = vpop.f32.mrf.mxu3 }
 0x5b1   : > { %5909 = vst [vmem:[%s8481_s25 + $0xa0] sm:$0xff] %v5877_v11  ;;  %v5192_v44 = vadd.f32 %v5152_v20, %v4893_v36 }
 0x5b3   : > { %v5490_v17 = vadd.f32 %v5450_v33, %v5192_v44 }
 0x5b4   : > { %v5733_v57 = vpop.f32.mrf.mxu1 }
 0x5b5   : > { %v5782_v42 = vadd.f32 %v5733_v57, %v5484_v49 }
 0x5b6   : > { %v4856_v46 = vpop.f32.mrf.mxu2  ;;  %v5453_v60 = vpop.f32.mrf.mxu0 }
 0x5b7   : > { %v5878_v9 = vmax.f32 %v5782_v42, 0.0  ;;  %v4894_v55 = vadd.f32 %v4856_v46, %v8460_v40  ;;  %v5157_v31 = vpop.f32.mrf.mxu3 }
 0x5b9   : > { %5910 = vst [vmem:[%s8481_s25 + $0xa8] sm:$0xff] %v5878_v9  ;;  %v5193_v54 = vadd.f32 %v5155_v53, %v4894_v55 }
 0x5bb   : > { %v5491_v35 = vadd.f32 %v5453_v60, %v5193_v54 }
 0x5bc   : > { %v5736_v34 = vpop.f32.mrf.mxu1 }
 0x5bd   : > { %v5783_v13 = vadd.f32 %v5736_v34, %v5485_v24 }
 0x5be   : > { %v4858_v38 = vpop.f32.mrf.mxu2  ;;  %v5455_v57 = vpop.f32.mrf.mxu0 }
 0x5bf   : > { %v5879_v21 = vmax.f32 %v5783_v13, 0.0  ;;  %v4895_v30 = vadd.f32 %v4858_v38, %v8467_v10  ;;  %v5160_v40 = vpop.f32.mrf.mxu3 }
 0x5c1   : > { %5911 = vst [vmem:[%s8481_s25 + $0xb0] sm:$0xff] %v5879_v21  ;;  %v5194_v19 = vadd.f32 %v5157_v31, %v4895_v30 }
 0x5c3   : > { %v5492_v5 = vadd.f32 %v5455_v57, %v5194_v19 }
 0x5c4   : > { %v5738_v29 = vpop.f32.mrf.mxu1 }
 0x5c5   : > { %v5784_v7 = vadd.f32 %v5738_v29, %v5486_v58 }
 0x5c6   : > { %v4861_v42 = vpop.f32.mrf.mxu2  ;;  %v5458_v18 = vpop.f32.mrf.mxu0 }
 0x5c7   : > { %v5880_v2 = vmax.f32 %v5784_v7, 0.0  ;;  %v4896_v61 = vadd.f32 %v4861_v42, %v8470_v32  ;;  %v5162_v41 = vpop.f32.mrf.mxu3 }
 0x5c9   : > { %5912 = vst [vmem:[%s8481_s25 + $0xb8] sm:$0xff] %v5880_v2  ;;  %v5195_v34 = vadd.f32 %v5160_v40, %v4896_v61 }
 0x5cb   : > { %v5493_v59 = vadd.f32 %v5458_v18, %v5195_v34 }
 0x5cc   : > { %v5741_v14 = vpop.f32.mrf.mxu1 }
 0x5cd   : > { %v5785_v1 = vadd.f32 %v5741_v14, %v5487_v3 }
 0x5ce   : > { %v4863_v13 = vpop.f32.mrf.mxu2  ;;  %v5460_v15 = vpop.f32.mrf.mxu0 }
 0x5cf   : > { %v5881_v63 = vmax.f32 %v5785_v1, 0.0  ;;  %v4897_v21 = vadd.f32 %v4863_v13, %v8474_v52 }
 0x5d1   : > { %5913 = vst [vmem:[%s8481_s25 + $0xc0] sm:$0xff] %v5881_v63  ;;  %v5196_v32 = vadd.f32 %v5162_v41, %v4897_v21 }
 0x5d3   : > { %v5494_v7 = vadd.f32 %v5460_v15, %v5196_v32 }
 0x5d4   : > { %v5743_v12 = vpop.f32.mrf.mxu1 }
 0x5d5   : > { %v5786_v16 = vadd.f32 %v5743_v12, %v5488_v22 }
 0x5d7   : > { %v5882_v56 = vmax.f32 %v5786_v16, 0.0 }
 0x5d9   : > { %5914 = vst [vmem:[%s8481_s25 + $0xc8] sm:$0xff] %v5882_v56 }
 0x5dc   : > { %v5746_v43 = vpop.f32.mrf.mxu1 }
 0x5dd   : > { %v5787_v48 = vadd.f32 %v5746_v43, %v5489_v28 }
 0x5df   : > { %v5883_v6 = vmax.f32 %v5787_v48, 0.0 }
 0x5e1   : > { %5915 = vst [vmem:[%s8481_s25 + $0xd0] sm:$0xff] %v5883_v6 }
 0x5e4   : > { %v5748_v23 = vpop.f32.mrf.mxu1 }
 0x5e5   : > { %v5788_v51 = vadd.f32 %v5748_v23, %v5490_v17 }
 0x5e7   : > { %v5884_v11 = vmax.f32 %v5788_v51, 0.0 }
 0x5e9   : > { %5916 = vst [vmem:[%s8481_s25 + $0xd8] sm:$0xff] %v5884_v11 }
 0x5ec   : > { %v5751_v0 = vpop.f32.mrf.mxu1 }
 0x5ed   : > { %v5789_v49 = vadd.f32 %v5751_v0, %v5491_v35 }
 0x5ef   : > { %v5885_v9 = vmax.f32 %v5789_v49, 0.0 }
 0x5f1   : > { %5917 = vst [vmem:[%s8481_s25 + $0xe0] sm:$0xff] %v5885_v9 }
 0x5f4   : > { %v5753_v25 = vpop.f32.mrf.mxu1 }
 0x5f5   : > { %v5790_v24 = vadd.f32 %v5753_v25, %v5492_v5 }
 0x5f7   : > { %v5886_v10 = vmax.f32 %v5790_v24, 0.0 }
 0x5f9   : > { %5918 = vst [vmem:[%s8481_s25 + $0xe8] sm:$0xff] %v5886_v10 }
 0x5fc   : > { %v5756_v37 = vpop.f32.mrf.mxu1 }
 0x5fd   : > { %v5791_v58 = vadd.f32 %v5756_v37, %v5493_v59 }
 0x5ff   : > { %v5887_v29 = vmax.f32 %v5791_v58, 0.0 }
 0x601   : > { %5919 = vst [vmem:[%s8481_s25 + $0xf0] sm:$0xff] %v5887_v29 }
 0x604   : > { %v5758_v62 = vpop.f32.mrf.mxu1 }
 0x605   : > { %v5792_v52 = vadd.f32 %v5758_v62, %v5494_v7 }
 0x607   : > { %v5888_v26 = vmax.f32 %v5792_v52, 0.0 }
 0x609   : > { %5920 = vst [vmem:[%s8481_s25 + $0xf8] sm:$0xff] %v5888_v26 }
 0x60a   : > { %6728 = shalt.err (!%p6725_p3)
}
 0x60b   : > { %s6766_s16 = smov 128   ;;  %s6767_s23 = smov 8  }
 0x60c   : > { %6655 = dma.vmem_to_hbm [thread:$0]  (%p6836_p5), %s5935_s7, 4096, %s5937_s8, %s5922_s22, %s6766_s16, %s6766_s16, %s6767_s23  }
 0x60d PF: > { %p6661_p4 = scmp.ge.s32.totalorder %s6763_s21, 2  ;;  %s5951_s25 = sand.u32 1, %s6751_s18  }
 0x60e   : > { %s5952_s26 = scalar_lea.sflag [#allocation6], %s5951_s25 }
 0x60f   : > { %p6658_p7 = pnand %p6661_p4, %p6840_p6 }
 0x611   : > { %p6659_p8 = pneg %p6658_p7 }
 0x613   : > { %6746 = dma.done.wait (%p6659_p8), %s5952_s26, 4096  }
 0x614   : > { %6748 = vsyncadd (%p6659_p8), %s5952_s26, 4294963200  ;;  %p15_p9 = scmp.ge.s32.totalorder %s6823_s24, 4   ;;  %s8628_s18 = smov %s6755_s19 }
 0x615   : > { %s8629_s19 = smov %s6759_s20  ;;  %s8630_s20 = smov %s6834_s27 }
 0x616   : > { %s8631_s21 = smov %s6823_s24  ;;  %17 = sbr.rel (!%p15_p9) target bundleno = 3 (0x3), region = 95 }
 0x61b   :  { %5958 = vsyncpa [#allocation6], 1 }
 0x61c   :  { %5960 = vsyncpa [#allocation6 + $0x1], 1 }

</bundles_post_ra>
